<compile_context>
chip_gen: v6e
topology: v6e:2x2x1
jax: 0.10.0
libtpu: 0.0.40
codegen_flags: <defaults>
</compile_context>

<pallas_src>
import functools

import jax
import jax.numpy as jnp
from jax import lax
from jax.experimental import pallas as pl
from jax.experimental.pallas import tpu as pltpu

# Gate order used inside the kernel, permuted from PyTorch's [i, f, z, o, ibar, fbar, delta]
# so the five sigmoid gates form one contiguous lane slab: [i, f, o, ibar, fbar, z, delta].
_GATE_PERM = (0, 1, 3, 4, 5, 2, 6)


def _round_up(x, m):
    return (x + m - 1) // m * m


def _device_defaults():
    """Per-TPU-generation chunk / VMEM budget defaults."""
    try:
        kind = jax.devices()[0].device_kind.lower()
    except Exception:
        kind = ""
    if ("v7" in kind) or ("tpu7" in kind):
        # v7x: 64 MiB VMEM per core -> smaller time chunk, tighter scoped limit.
        return {"chunk": 8, "vmem_limit": 56 * 1024 * 1024}
    if any(t in kind for t in ("v4", "v5", "v6")):
        # 128 MiB VMEM: large time chunks amortize per-grid-step overhead and
        # make the gx DMA large.
        return {"chunk": 16, "vmem_limit": 100 * 1024 * 1024}
    # Unknown backend (e.g. interpret mode): conservative settings.
    return {"chunk": 8, "vmem_limit": 48 * 1024 * 1024}


def _softplus(x):
    # Numerically stable softplus using only exp/log (safe inside Mosaic).
    return jnp.maximum(x, 0.0) + jnp.log(1.0 + jnp.exp(-jnp.abs(x)))


def ctlstm_kernel(gx_ref, dur_ref, whh_ref, out_ref, state_sc, *, hidden_size, chunk):
    H = hidden_size  # lane-padded hidden size (multiple of 128)

    # init_hidden: all four carried states start at zero (once per batch shard).
    @pl.when(pl.program_id(1) == 0)
    def _():
        state_sc[...] = jnp.zeros_like(state_sc)

    whh = whh_ref[...]                       # (H, 7H), resident across the grid

    def step(s, _):
        # Carried state lives in VMEM (state_sc), not in loop-carried vregs:
        # removes register spills when Bb * 4H exceeds the register file.
        st = state_sc[...]                   # (Bb, 4H) f32: [c | cbar | delta | o]
        c = st[:, 0 * H:1 * H]
        cbar = st[:, 1 * H:2 * H]
        delta = st[:, 2 * H:3 * H]
        o = st[:, 3 * H:4 * H]

        dt = dur_ref[s]                      # (Bb, 1)
        gx = gx_ref[s]                       # (Bb, 7H): precomputed x @ W_ih + b (f32)

        # get_ctlstm_hidden: decay cell state over elapsed duration.
        c_t = cbar + (c - cbar) * jnp.exp(-delta * dt)
        h_t = o * jnp.tanh(c_t)

        # Only the hidden projection stays inside the recurrence (MXU, bf16 operands,
        # f32 accumulation).
        gates = gx + jnp.dot(h_t.astype(whh.dtype), whh,
                             preferred_element_type=jnp.float32)   # (Bb, 7H) f32

        # Slab-wide activations: one sigmoid over 5H lanes, one tanh, one softplus.
        sig = jax.nn.sigmoid(gates[:, 0:5 * H])        # [i, f, o, ibar, fbar]
        z_g = jnp.tanh(gates[:, 5 * H:6 * H])
        delta_new = _softplus(gates[:, 6 * H:7 * H])

        i_g = sig[:, 0 * H:1 * H]
        f_g = sig[:, 1 * H:2 * H]
        o_g = sig[:, 2 * H:3 * H]
        ibar = sig[:, 3 * H:4 * H]
        fbar = sig[:, 4 * H:5 * H]

        c_new = f_g * c_t + i_g * z_g
        cbar_new = fbar * cbar + ibar * z_g

        # One lane-dense (Bb, 4H) store per step: [c | cbar | delta | o].
        new_st = jnp.concatenate([c_new, cbar_new, delta_new, o_g], axis=-1)
        state_sc[...] = new_st
        out_ref[s] = new_st
        return 0

    lax.fori_loop(0, chunk, step, 0, unroll=True)


def ctlstm_forward(x, duration, w_ih, w_hh, bias, *,
                   chunk=None, compute_dtype=jnp.bfloat16, batch_block=None,
                   vmem_limit_bytes=None):
    """CTLSTM forward.

    x: (B, T, I) batch-first inputs; duration: (B, T) elapsed time before each step.
    w_ih: (7H, I), w_hh: (7H, H), bias: (7H,) in PyTorch gate order
    [i, f, z, o, ibar, fbar, delta].
    Returns (c_seq, cbar_seq, delta_seq, o_seq), each (B, T, H) float32.
    """
    # TODO(synk): non-None initial `states` (user-provided) not supported; zeros only.
    B, T, I = x.shape
    H = w_hh.shape[1]
    Hp = _round_up(H, 128)                  # lane-pad hidden size

    defaults = _device_defaults()
    if chunk is None:
        chunk = defaults["chunk"]
    if vmem_limit_bytes is None:
        vmem_limit_bytes = defaults["vmem_limit"]
    chunk = max(1, min(chunk, T))

    f32 = jnp.float32
    perm = jnp.array(_GATE_PERM)            # (fix: list indexing is not allowed in JAX)

    # Reorder gates so activations act on contiguous slabs; zero-pad H -> Hp so every
    # gate slab is lane-aligned (padded lanes produce harmless finite values, sliced off).
    w_ih_r = jnp.pad(w_ih.astype(f32).reshape(7, H, I)[perm],
                     ((0, 0), (0, Hp - H), (0, 0))).reshape(7 * Hp, I)
    w_hh_r = jnp.pad(w_hh.astype(f32).reshape(7, H, H)[perm],
                     ((0, 0), (0, Hp - H), (0, Hp - H))).reshape(7 * Hp, Hp)
    bias_r = jnp.pad(bias.astype(f32).reshape(7, H)[perm],
                     ((0, 0), (0, Hp - H))).reshape(7 * Hp)

    # Hoist the input projection out of the recurrence: one big T-parallel matmul.
    # Transpose the narrow (I-wide) x BEFORE projecting so the wide gx needs no transpose.
    x_t = jnp.transpose(x, (1, 0, 2)).astype(f32)                 # (T, B, I)
    gx = jnp.dot(x_t.reshape(T * B, I), w_ih_r.T,
                 precision=lax.Precision.HIGHEST) + bias_r        # (T*B, 7Hp)
    gx = gx.reshape(T, B, 7 * Hp)
    dur = jnp.transpose(duration.astype(f32), (1, 0))[:, :, None]  # (T, B, 1)

    # Batch block: >=2 shards when B permits (fills v7x's second TensorCore); pad B to a
    # multiple of the block so no rows are dropped.
    B8 = _round_up(B, 8)
    if batch_block is None:
        if B8 >= 512:
            Bb = 256                        # fill MXU M dimension per core
        elif B8 >= 16:
            Bb = _round_up(B8 // 2, 8)      # 2 parallel batch shards
        else:
            Bb = B8
    else:
        Bb = _round_up(batch_block, 8)
    B_pad = _round_up(B8, Bb)
    T_pad = _round_up(T, chunk)

    gx = jnp.pad(gx, ((0, T_pad - T), (0, B_pad - B), (0, 0)))
    dur = jnp.pad(dur, ((0, T_pad - T), (0, B_pad - B), (0, 0)))

    # Recurrent weight, pre-transposed to (Hp, 7Hp); bf16 by default for the MXU.
    whh_k = w_hh_r.T.astype(compute_dtype)

    grid = (B_pad // Bb, T_pad // chunk)    # (parallel batch shards, sequential time)
    kernel = functools.partial(ctlstm_kernel, hidden_size=Hp, chunk=chunk)

    gx_spec = pl.BlockSpec((chunk, Bb, 7 * Hp), lambda b, g: (g, b, 0))
    dur_spec = pl.BlockSpec((chunk, Bb, 1), lambda b, g: (g, b, 0))
    whh_spec = pl.BlockSpec((Hp, 7 * Hp), lambda b, g: (0, 0))
    out_spec = pl.BlockSpec((chunk, Bb, 4 * Hp), lambda b, g: (g, b, 0))

    out = pl.pallas_call(
        kernel,
        out_shape=jax.ShapeDtypeStruct((T_pad, B_pad, 4 * Hp), jnp.float32),
        grid_spec=pltpu.PrefetchScalarGridSpec(
            num_scalar_prefetch=0,
            grid=grid,
            in_specs=[gx_spec, dur_spec, whh_spec],
            out_specs=out_spec,
            scratch_shapes=[pltpu.VMEM((Bb, 4 * Hp), jnp.float32)],
        ),
        compiler_params=pltpu.CompilerParams(
            dimension_semantics=("parallel", "arbitrary"),
            vmem_limit_bytes=vmem_limit_bytes,
        ),
    )(gx, dur, whh_k)

    # Slice each slab to the true H before the batch-first transpose (slim traffic).
    return tuple(
        jnp.transpose(out[:T, :B, k * Hp:k * Hp + H], (1, 0, 2)) for k in range(4)
    )


def ctlstm_ref(x, duration, w_ih, w_hh, bias):
    """Pure-JAX reference (lax.scan) with PyTorch-ordered/shaped parameters."""
    B, T, I = x.shape
    H = w_hh.shape[1]
    w_ih_t = w_ih.T.astype(jnp.float32)      # (I, 7H)
    w_hh_t = w_hh.T.astype(jnp.float32)      # (H, 7H)
    b = bias.astype(jnp.float32)
    hi = lax.Precision.HIGHEST

    def step(carry, inp):
        c, cbar, delta, o = carry
        xt, dt = inp
        c_t = cbar + (c - cbar) * jnp.exp(-delta * dt[:, None])
        h_t = o * jnp.tanh(c_t)
        gates = (jnp.dot(xt, w_ih_t, precision=hi)
                 + jnp.dot(h_t, w_hh_t, precision=hi) + b)
        i_g, f_g, z_g, o_g, ibar, fbar, dl = jnp.split(gates, 7, axis=-1)
        i_g = jax.nn.sigmoid(i_g); f_g = jax.nn.sigmoid(f_g); z_g = jnp.tanh(z_g)
        o_g = jax.nn.sigmoid(o_g); ibar = jax.nn.sigmoid(ibar); fbar = jax.nn.sigmoid(fbar)
        dl = jax.nn.softplus(dl)
        c_new = f_g * c_t + i_g * z_g
        cbar_new = fbar * cbar + ibar * z_g
        new = (c_new, cbar_new, dl, o_g)
        return new, new

    z = jnp.zeros((B, H), jnp.float32)
    _, seq = jax.lax.scan(step, (z, z, z, z),
                          (jnp.transpose(x, (1, 0, 2)).astype(jnp.float32),
                           jnp.transpose(duration, (1, 0)).astype(jnp.float32)))
    return tuple(jnp.transpose(s, (1, 0, 2)) for s in seq)


if __name__ == "__main__":
    B, T, I, H = 2, 8, 4, 32

    key = jax.random.PRNGKey(0)
    k_x, k_d, k_wih, k_whh, k_b = jax.random.split(key, 5)

    x = jax.random.normal(k_x, (B, T, I), dtype=jnp.float32)
    duration = jax.random.uniform(k_d, (B, T), dtype=jnp.float32)

    # PyTorch-style uniform(-1/sqrt(H), 1/sqrt(H)) init, PyTorch shapes/order.
    bound = 1.0 / jnp.sqrt(jnp.float32(H))
    w_ih = jax.random.uniform(k_wih, (7 * H, I), minval=-bound, maxval=bound, dtype=jnp.float32)
    w_hh = jax.random.uniform(k_whh, (7 * H, H), minval=-bound, maxval=bound, dtype=jnp.float32)
    bias = jax.random.uniform(k_b, (7 * H,), minval=-bound, maxval=bound, dtype=jnp.float32)

    refs = ctlstm_ref(x, duration, w_ih, w_hh, bias)

    # f32 recurrent-matmul operands: tight correctness check.
    outs_f32 = jax.block_until_ready(
        ctlstm_forward(x, duration, w_ih, w_hh, bias, compute_dtype=jnp.float32))
    for got, want in zip(outs_f32, refs):
        assert got.shape == (B, T, H), got.shape
        err = float(jnp.max(jnp.abs(got - want)))
        assert jnp.allclose(got, want, atol=1e-4, rtol=1e-4), err

    # Default path (bf16 MXU operands, carried state stays f32): loose correctness check.
    outs_bf16 = jax.block_until_ready(ctlstm_forward(x, duration, w_ih, w_hh, bias))
    for got, want in zip(outs_bf16, refs):
        assert got.shape == (B, T, H), got.shape
        err = float(jnp.max(jnp.abs(got - want)))
        assert jnp.allclose(got, want, atol=5e-2, rtol=5e-2), err

    print("KERNEL_OK")
</pallas_src>

<mosaic_0001>
module attributes {stable_mosaic.version = 11 : i64} {
  func.func @ctlstm_kernel(%arg0: i32, %arg1: i32, %arg2: memref<8x8x896xf32, #tpu.memory_space<vmem>>, %arg3: memref<8x8x1xf32, #tpu.memory_space<vmem>>, %arg4: memref<128x896xf32, #tpu.memory_space<vmem>>, %arg5: memref<8x8x512xf32, #tpu.memory_space<vmem>>, %arg6: memref<8x512xf32, #tpu.memory_space<vmem>>) attributes {dimension_semantics = [#tpu.dimension_semantics<parallel>, #tpu.dimension_semantics<arbitrary>], iteration_bounds = array<i64: 1, 1>, scalar_prefetch = 0 : i64, scratch_operands = 1 : i64, tpu.core_type = #tpu.core_type<tc>, window_params = [{transform_indices = @transform_0, window_bounds = array<i64: 8, 8, 896>}, {transform_indices = @transform_1, window_bounds = array<i64: 8, 8, 1>}, {pipeline_mode = #tpu.pipeline_mode<synchronous>, transform_indices = @transform_2, window_bounds = array<i64: 128, 896>}, {transform_indices = @transform_3, window_bounds = array<i64: 8, 8, 512>}]} {
    %c0_i32 = arith.constant 0 : i32
    %0 = arith.cmpi eq, %arg1, %c0_i32 : i32
    %1 = arith.extui %0 : i1 to i32
    %c0_i32_0 = arith.constant 0 : i32
    %2 = arith.cmpi ne, %1, %c0_i32_0 : i32
    scf.if %2 {
      %cst_130 = arith.constant 0.000000e+00 : f32
      %476 = vector.broadcast %cst_130 : f32 to vector<8x512xf32>
      %c0_131 = arith.constant 0 : index
      %c0_132 = arith.constant 0 : index
      %477 = vector.load %arg6[%c0_131, %c0_132] : memref<8x512xf32, #tpu.memory_space<vmem>>, vector<8x512xf32>
      tpu.vector_store %arg6[%c0_131, %c0_132], %476 {strides = array<i32>} : memref<8x512xf32, #tpu.memory_space<vmem>>, vector<8x512xf32>,
    } else {
    }
    %c0 = arith.constant 0 : index
    %c0_1 = arith.constant 0 : index
    %3 = vector.load %arg4[%c0, %c0_1] : memref<128x896xf32, #tpu.memory_space<vmem>>, vector<128x896xf32>
    %c0_i32_2 = arith.constant 0 : i32
    %c0_3 = arith.constant 0 : index
    %c0_4 = arith.constant 0 : index
    %4 = vector.load %arg6[%c0_3, %c0_4] : memref<8x512xf32, #tpu.memory_space<vmem>>, vector<8x512xf32>
    %5 = vector.extract_strided_slice %4 {offsets = [0, 0], sizes = [8, 128], strides = [1, 1]} : vector<8x512xf32> to vector<8x128xf32>
    %6 = vector.extract_strided_slice %4 {offsets = [0, 128], sizes = [8, 128], strides = [1, 1]} : vector<8x512xf32> to vector<8x128xf32>
    %7 = vector.extract_strided_slice %4 {offsets = [0, 256], sizes = [8, 128], strides = [1, 1]} : vector<8x512xf32> to vector<8x128xf32>
    %8 = vector.extract_strided_slice %4 {offsets = [0, 384], sizes = [8, 128], strides = [1, 1]} : vector<8x512xf32> to vector<8x128xf32>
    %9 = arith.index_cast %c0_i32_2 : i32 to index
    %c0_5 = arith.constant 0 : index
    %c0_6 = arith.constant 0 : index
    %10 = vector.load %arg3[%9, %c0_5, %c0_6] : memref<8x8x1xf32, #tpu.memory_space<vmem>>, vector<1x8x1xf32>
    %11 = vector.shape_cast %10 : vector<1x8x1xf32> to vector<8x1xf32>
    %12 = arith.index_cast %c0_i32_2 : i32 to index
    %c0_7 = arith.constant 0 : index
    %c0_8 = arith.constant 0 : index
    %13 = vector.load %arg2[%12, %c0_7, %c0_8] : memref<8x8x896xf32, #tpu.memory_space<vmem>>, vector<1x8x896xf32>
    %14 = vector.shape_cast %13 : vector<1x8x896xf32> to vector<8x896xf32>
    %15 = arith.subf %5, %6 : vector<8x128xf32>
    %cst = arith.constant 0.000000e+00 : f32
    %16 = vector.broadcast %cst : f32 to vector<8x128xf32>
    %17 = arith.subf %16, %7 : vector<8x128xf32>
    %18 = vector.broadcast %11 : vector<8x1xf32> to vector<8x128xf32>
    %19 = arith.mulf %17, %18 : vector<8x128xf32>
    %20 = math.exp %19 : vector<8x128xf32>
    %21 = arith.mulf %15, %20 : vector<8x128xf32>
    %22 = arith.addf %6, %21 : vector<8x128xf32>
    %23 = math.tanh %22 : vector<8x128xf32>
    %24 = arith.mulf %8, %23 : vector<8x128xf32>
    %cst_9 = arith.constant dense<0.000000e+00> : vector<8x896xf32>
    %25 = tpu.matmul %24, %3, %cst_9 {dimension_numbers = #tpu.dot_dimension_numbers<[1], [0], [0], [1], [0, 0, 1, 1], [], []>} : vector<8x128xf32>, vector<128x896xf32>, vector<8x896xf32> -> vector<8x896xf32>
    %26 = arith.addf %14, %25 : vector<8x896xf32>
    %27 = vector.extract_strided_slice %26 {offsets = [0, 0], sizes = [8, 640], strides = [1, 1]} : vector<8x896xf32> to vector<8x640xf32>
    %28 = arith.negf %27 : vector<8x640xf32>
    %29 = math.exp %28 : vector<8x640xf32>
    %cst_10 = arith.constant 1.000000e+00 : f32
    %30 = vector.broadcast %cst_10 : f32 to vector<8x640xf32>
    %31 = arith.addf %30, %29 : vector<8x640xf32>
    %32 = arith.divf %30, %31 : vector<8x640xf32>
    %33 = vector.extract_strided_slice %26 {offsets = [0, 640], sizes = [8, 128], strides = [1, 1]} : vector<8x896xf32> to vector<8x128xf32>
    %34 = math.tanh %33 : vector<8x128xf32>
    %35 = vector.extract_strided_slice %26 {offsets = [0, 768], sizes = [8, 128], strides = [1, 1]} : vector<8x896xf32> to vector<8x128xf32>
    %cst_11 = arith.constant 0.000000e+00 : f32
    %36 = vector.broadcast %cst_11 : f32 to vector<8x128xf32>
    %37 = arith.maximumf %35, %36 : vector<8x128xf32>
    %38 = math.absf %35 : vector<8x128xf32>
    %cst_12 = arith.constant 0.000000e+00 : f32
    %39 = vector.broadcast %cst_12 : f32 to vector<8x128xf32>
    %40 = arith.subf %39, %38 : vector<8x128xf32>
    %41 = math.exp %40 : vector<8x128xf32>
    %cst_13 = arith.constant 1.000000e+00 : f32
    %42 = vector.broadcast %cst_13 : f32 to vector<8x128xf32>
    %43 = arith.addf %42, %41 : vector<8x128xf32>
    %44 = math.log %43 : vector<8x128xf32>
    %45 = arith.addf %37, %44 : vector<8x128xf32>
    %46 = vector.extract_strided_slice %32 {offsets = [0, 0], sizes = [8, 128], strides = [1, 1]} : vector<8x640xf32> to vector<8x128xf32>
    %47 = vector.extract_strided_slice %32 {offsets = [0, 128], sizes = [8, 128], strides = [1, 1]} : vector<8x640xf32> to vector<8x128xf32>
    %48 = vector.extract_strided_slice %32 {offsets = [0, 256], sizes = [8, 128], strides = [1, 1]} : vector<8x640xf32> to vector<8x128xf32>
    %49 = vector.extract_strided_slice %32 {offsets = [0, 384], sizes = [8, 128], strides = [1, 1]} : vector<8x640xf32> to vector<8x128xf32>
    %50 = vector.extract_strided_slice %32 {offsets = [0, 512], sizes = [8, 128], strides = [1, 1]} : vector<8x640xf32> to vector<8x128xf32>
    %51 = arith.mulf %47, %22 : vector<8x128xf32>
    %52 = arith.mulf %46, %34 : vector<8x128xf32>
    %53 = arith.addf %51, %52 : vector<8x128xf32>
    %54 = arith.mulf %50, %6 : vector<8x128xf32>
    %55 = arith.mulf %49, %34 : vector<8x128xf32>
    %56 = arith.addf %54, %55 : vector<8x128xf32>
    %57 = tpu.concatenate %53, %56, %45, %48 in 1 : vector<8x128xf32>, vector<8x128xf32>, vector<8x128xf32>, vector<8x128xf32> -> vector<8x512xf32>
    %c0_14 = arith.constant 0 : index
    %c0_15 = arith.constant 0 : index
    %58 = vector.load %arg6[%c0_14, %c0_15] : memref<8x512xf32, #tpu.memory_space<vmem>>, vector<8x512xf32>
    tpu.vector_store %arg6[%c0_14, %c0_15], %57 {strides = array<i32>} : memref<8x512xf32, #tpu.memory_space<vmem>>, vector<8x512xf32>,
    %59 = arith.index_cast %c0_i32_2 : i32 to index
    %c0_16 = arith.constant 0 : index
    %c0_17 = arith.constant 0 : index
    %60 = vector.load %arg5[%59, %c0_16, %c0_17] : memref<8x8x512xf32, #tpu.memory_space<vmem>>, vector<1x8x512xf32>
    %61 = vector.shape_cast %60 : vector<1x8x512xf32> to vector<8x512xf32>
    %62 = vector.shape_cast %57 : vector<8x512xf32> to vector<1x8x512xf32>
    tpu.vector_store %arg5[%59, %c0_16, %c0_17], %62 {strides = array<i32>} : memref<8x8x512xf32, #tpu.memory_space<vmem>>, vector<1x8x512xf32>,
    %c1_i32 = arith.constant 1 : i32
    %c0_18 = arith.constant 0 : index
    %c0_19 = arith.constant 0 : index
    %63 = vector.load %arg6[%c0_18, %c0_19] : memref<8x512xf32, #tpu.memory_space<vmem>>, vector<8x512xf32>
    %64 = vector.extract_strided_slice %63 {offsets = [0, 0], sizes = [8, 128], strides = [1, 1]} : vector<8x512xf32> to vector<8x128xf32>
    %65 = vector.extract_strided_slice %63 {offsets = [0, 128], sizes = [8, 128], strides = [1, 1]} : vector<8x512xf32> to vector<8x128xf32>
    %66 = vector.extract_strided_slice %63 {offsets = [0, 256], sizes = [8, 128], strides = [1, 1]} : vector<8x512xf32> to vector<8x128xf32>
    %67 = vector.extract_strided_slice %63 {offsets = [0, 384], sizes = [8, 128], strides = [1, 1]} : vector<8x512xf32> to vector<8x128xf32>
    %68 = arith.index_cast %c1_i32 : i32 to index
    %c0_20 = arith.constant 0 : index
    %c0_21 = arith.constant 0 : index
    %69 = vector.load %arg3[%68, %c0_20, %c0_21] : memref<8x8x1xf32, #tpu.memory_space<vmem>>, vector<1x8x1xf32>
    %70 = vector.shape_cast %69 : vector<1x8x1xf32> to vector<8x1xf32>
    %71 = arith.index_cast %c1_i32 : i32 to index
    %c0_22 = arith.constant 0 : index
    %c0_23 = arith.constant 0 : index
    %72 = vector.load %arg2[%71, %c0_22, %c0_23] : memref<8x8x896xf32, #tpu.memory_space<vmem>>, vector<1x8x896xf32>
    %73 = vector.shape_cast %72 : vector<1x8x896xf32> to vector<8x896xf32>
    %74 = arith.subf %64, %65 : vector<8x128xf32>
    %cst_24 = arith.constant 0.000000e+00 : f32
    %75 = vector.broadcast %cst_24 : f32 to vector<8x128xf32>
    %76 = arith.subf %75, %66 : vector<8x128xf32>
    %77 = vector.broadcast %70 : vector<8x1xf32> to vector<8x128xf32>
    %78 = arith.mulf %76, %77 : vector<8x128xf32>
    %79 = math.exp %78 : vector<8x128xf32>
    %80 = arith.mulf %74, %79 : vector<8x128xf32>
    %81 = arith.addf %65, %80 : vector<8x128xf32>
    %82 = math.tanh %81 : vector<8x128xf32>
    %83 = arith.mulf %67, %82 : vector<8x128xf32>
    %cst_25 = arith.constant dense<0.000000e+00> : vector<8x896xf32>
    %84 = tpu.matmul %83, %3, %cst_25 {dimension_numbers = #tpu.dot_dimension_numbers<[1], [0], [0], [1], [0, 0, 1, 1], [], []>} : vector<8x128xf32>, vector<128x896xf32>, vector<8x896xf32> -> vector<8x896xf32>
    %85 = arith.addf %73, %84 : vector<8x896xf32>
    %86 = vector.extract_strided_slice %85 {offsets = [0, 0], sizes = [8, 640], strides = [1, 1]} : vector<8x896xf32> to vector<8x640xf32>
    %87 = arith.negf %86 : vector<8x640xf32>
    %88 = math.exp %87 : vector<8x640xf32>
    %cst_26 = arith.constant 1.000000e+00 : f32
    %89 = vector.broadcast %cst_26 : f32 to vector<8x640xf32>
    %90 = arith.addf %89, %88 : vector<8x640xf32>
    %91 = arith.divf %89, %90 : vector<8x640xf32>
    %92 = vector.extract_strided_slice %85 {offsets = [0, 640], sizes = [8, 128], strides = [1, 1]} : vector<8x896xf32> to vector<8x128xf32>
    %93 = math.tanh %92 : vector<8x128xf32>
    %94 = vector.extract_strided_slice %85 {offsets = [0, 768], sizes = [8, 128], strides = [1, 1]} : vector<8x896xf32> to vector<8x128xf32>
    %cst_27 = arith.constant 0.000000e+00 : f32
    %95 = vector.broadcast %cst_27 : f32 to vector<8x128xf32>
    %96 = arith.maximumf %94, %95 : vector<8x128xf32>
    %97 = math.absf %94 : vector<8x128xf32>
    %cst_28 = arith.constant 0.000000e+00 : f32
    %98 = vector.broadcast %cst_28 : f32 to vector<8x128xf32>
    %99 = arith.subf %98, %97 : vector<8x128xf32>
    %100 = math.exp %99 : vector<8x128xf32>
    %cst_29 = arith.constant 1.000000e+00 : f32
    %101 = vector.broadcast %cst_29 : f32 to vector<8x128xf32>
    %102 = arith.addf %101, %100 : vector<8x128xf32>
    %103 = math.log %102 : vector<8x128xf32>
    %104 = arith.addf %96, %103 : vector<8x128xf32>
    %105 = vector.extract_strided_slice %91 {offsets = [0, 0], sizes = [8, 128], strides = [1, 1]} : vector<8x640xf32> to vector<8x128xf32>
    %106 = vector.extract_strided_slice %91 {offsets = [0, 128], sizes = [8, 128], strides = [1, 1]} : vector<8x640xf32> to vector<8x128xf32>
    %107 = vector.extract_strided_slice %91 {offsets = [0, 256], sizes = [8, 128], strides = [1, 1]} : vector<8x640xf32> to vector<8x128xf32>
    %108 = vector.extract_strided_slice %91 {offsets = [0, 384], sizes = [8, 128], strides = [1, 1]} : vector<8x640xf32> to vector<8x128xf32>
    %109 = vector.extract_strided_slice %91 {offsets = [0, 512], sizes = [8, 128], strides = [1, 1]} : vector<8x640xf32> to vector<8x128xf32>
    %110 = arith.mulf %106, %81 : vector<8x128xf32>
    %111 = arith.mulf %105, %93 : vector<8x128xf32>
    %112 = arith.addf %110, %111 : vector<8x128xf32>
    %113 = arith.mulf %109, %65 : vector<8x128xf32>
    %114 = arith.mulf %108, %93 : vector<8x128xf32>
    %115 = arith.addf %113, %114 : vector<8x128xf32>
    %116 = tpu.concatenate %112, %115, %104, %107 in 1 : vector<8x128xf32>, vector<8x128xf32>, vector<8x128xf32>, vector<8x128xf32> -> vector<8x512xf32>
    %c0_30 = arith.constant 0 : index
    %c0_31 = arith.constant 0 : index
    %117 = vector.load %arg6[%c0_30, %c0_31] : memref<8x512xf32, #tpu.memory_space<vmem>>, vector<8x512xf32>
    tpu.vector_store %arg6[%c0_30, %c0_31], %116 {strides = array<i32>} : memref<8x512xf32, #tpu.memory_space<vmem>>, vector<8x512xf32>,
    %118 = arith.index_cast %c1_i32 : i32 to index
    %c0_32 = arith.constant 0 : index
    %c0_33 = arith.constant 0 : index
    %119 = vector.load %arg5[%118, %c0_32, %c0_33] : memref<8x8x512xf32, #tpu.memory_space<vmem>>, vector<1x8x512xf32>
    %120 = vector.shape_cast %119 : vector<1x8x512xf32> to vector<8x512xf32>
    %121 = vector.shape_cast %116 : vector<8x512xf32> to vector<1x8x512xf32>
    tpu.vector_store %arg5[%118, %c0_32, %c0_33], %121 {strides = array<i32>} : memref<8x8x512xf32, #tpu.memory_space<vmem>>, vector<1x8x512xf32>,
    %c2_i32 = arith.constant 2 : i32
    %c0_34 = arith.constant 0 : index
    %c0_35 = arith.constant 0 : index
    %122 = vector.load %arg6[%c0_34, %c0_35] : memref<8x512xf32, #tpu.memory_space<vmem>>, vector<8x512xf32>
    %123 = vector.extract_strided_slice %122 {offsets = [0, 0], sizes = [8, 128], strides = [1, 1]} : vector<8x512xf32> to vector<8x128xf32>
    %124 = vector.extract_strided_slice %122 {offsets = [0, 128], sizes = [8, 128], strides = [1, 1]} : vector<8x512xf32> to vector<8x128xf32>
    %125 = vector.extract_strided_slice %122 {offsets = [0, 256], sizes = [8, 128], strides = [1, 1]} : vector<8x512xf32> to vector<8x128xf32>
    %126 = vector.extract_strided_slice %122 {offsets = [0, 384], sizes = [8, 128], strides = [1, 1]} : vector<8x512xf32> to vector<8x128xf32>
    %127 = arith.index_cast %c2_i32 : i32 to index
    %c0_36 = arith.constant 0 : index
    %c0_37 = arith.constant 0 : index
    %128 = vector.load %arg3[%127, %c0_36, %c0_37] : memref<8x8x1xf32, #tpu.memory_space<vmem>>, vector<1x8x1xf32>
    %129 = vector.shape_cast %128 : vector<1x8x1xf32> to vector<8x1xf32>
    %130 = arith.index_cast %c2_i32 : i32 to index
    %c0_38 = arith.constant 0 : index
    %c0_39 = arith.constant 0 : index
    %131 = vector.load %arg2[%130, %c0_38, %c0_39] : memref<8x8x896xf32, #tpu.memory_space<vmem>>, vector<1x8x896xf32>
    %132 = vector.shape_cast %131 : vector<1x8x896xf32> to vector<8x896xf32>
    %133 = arith.subf %123, %124 : vector<8x128xf32>
    %cst_40 = arith.constant 0.000000e+00 : f32
    %134 = vector.broadcast %cst_40 : f32 to vector<8x128xf32>
    %135 = arith.subf %134, %125 : vector<8x128xf32>
    %136 = vector.broadcast %129 : vector<8x1xf32> to vector<8x128xf32>
    %137 = arith.mulf %135, %136 : vector<8x128xf32>
    %138 = math.exp %137 : vector<8x128xf32>
    %139 = arith.mulf %133, %138 : vector<8x128xf32>
    %140 = arith.addf %124, %139 : vector<8x128xf32>
    %141 = math.tanh %140 : vector<8x128xf32>
    %142 = arith.mulf %126, %141 : vector<8x128xf32>
    %cst_41 = arith.constant dense<0.000000e+00> : vector<8x896xf32>
    %143 = tpu.matmul %142, %3, %cst_41 {dimension_numbers = #tpu.dot_dimension_numbers<[1], [0], [0], [1], [0, 0, 1, 1], [], []>} : vector<8x128xf32>, vector<128x896xf32>, vector<8x896xf32> -> vector<8x896xf32>
    %144 = arith.addf %132, %143 : vector<8x896xf32>
    %145 = vector.extract_strided_slice %144 {offsets = [0, 0], sizes = [8, 640], strides = [1, 1]} : vector<8x896xf32> to vector<8x640xf32>
    %146 = arith.negf %145 : vector<8x640xf32>
    %147 = math.exp %146 : vector<8x640xf32>
    %cst_42 = arith.constant 1.000000e+00 : f32
    %148 = vector.broadcast %cst_42 : f32 to vector<8x640xf32>
    %149 = arith.addf %148, %147 : vector<8x640xf32>
    %150 = arith.divf %148, %149 : vector<8x640xf32>
    %151 = vector.extract_strided_slice %144 {offsets = [0, 640], sizes = [8, 128], strides = [1, 1]} : vector<8x896xf32> to vector<8x128xf32>
    %152 = math.tanh %151 : vector<8x128xf32>
    %153 = vector.extract_strided_slice %144 {offsets = [0, 768], sizes = [8, 128], strides = [1, 1]} : vector<8x896xf32> to vector<8x128xf32>
    %cst_43 = arith.constant 0.000000e+00 : f32
    %154 = vector.broadcast %cst_43 : f32 to vector<8x128xf32>
    %155 = arith.maximumf %153, %154 : vector<8x128xf32>
    %156 = math.absf %153 : vector<8x128xf32>
    %cst_44 = arith.constant 0.000000e+00 : f32
    %157 = vector.broadcast %cst_44 : f32 to vector<8x128xf32>
    %158 = arith.subf %157, %156 : vector<8x128xf32>
    %159 = math.exp %158 : vector<8x128xf32>
    %cst_45 = arith.constant 1.000000e+00 : f32
    %160 = vector.broadcast %cst_45 : f32 to vector<8x128xf32>
    %161 = arith.addf %160, %159 : vector<8x128xf32>
    %162 = math.log %161 : vector<8x128xf32>
    %163 = arith.addf %155, %162 : vector<8x128xf32>
    %164 = vector.extract_strided_slice %150 {offsets = [0, 0], sizes = [8, 128], strides = [1, 1]} : vector<8x640xf32> to vector<8x128xf32>
    %165 = vector.extract_strided_slice %150 {offsets = [0, 128], sizes = [8, 128], strides = [1, 1]} : vector<8x640xf32> to vector<8x128xf32>
    %166 = vector.extract_strided_slice %150 {offsets = [0, 256], sizes = [8, 128], strides = [1, 1]} : vector<8x640xf32> to vector<8x128xf32>
    %167 = vector.extract_strided_slice %150 {offsets = [0, 384], sizes = [8, 128], strides = [1, 1]} : vector<8x640xf32> to vector<8x128xf32>
    %168 = vector.extract_strided_slice %150 {offsets = [0, 512], sizes = [8, 128], strides = [1, 1]} : vector<8x640xf32> to vector<8x128xf32>
    %169 = arith.mulf %165, %140 : vector<8x128xf32>
    %170 = arith.mulf %164, %152 : vector<8x128xf32>
    %171 = arith.addf %169, %170 : vector<8x128xf32>
    %172 = arith.mulf %168, %124 : vector<8x128xf32>
    %173 = arith.mulf %167, %152 : vector<8x128xf32>
    %174 = arith.addf %172, %173 : vector<8x128xf32>
    %175 = tpu.concatenate %171, %174, %163, %166 in 1 : vector<8x128xf32>, vector<8x128xf32>, vector<8x128xf32>, vector<8x128xf32> -> vector<8x512xf32>
    %c0_46 = arith.constant 0 : index
    %c0_47 = arith.constant 0 : index
    %176 = vector.load %arg6[%c0_46, %c0_47] : memref<8x512xf32, #tpu.memory_space<vmem>>, vector<8x512xf32>
    tpu.vector_store %arg6[%c0_46, %c0_47], %175 {strides = array<i32>} : memref<8x512xf32, #tpu.memory_space<vmem>>, vector<8x512xf32>,
    %177 = arith.index_cast %c2_i32 : i32 to index
    %c0_48 = arith.constant 0 : index
    %c0_49 = arith.constant 0 : index
    %178 = vector.load %arg5[%177, %c0_48, %c0_49] : memref<8x8x512xf32, #tpu.memory_space<vmem>>, vector<1x8x512xf32>
    %179 = vector.shape_cast %178 : vector<1x8x512xf32> to vector<8x512xf32>
    %180 = vector.shape_cast %175 : vector<8x512xf32> to vector<1x8x512xf32>
    tpu.vector_store %arg5[%177, %c0_48, %c0_49], %180 {strides = array<i32>} : memref<8x8x512xf32, #tpu.memory_space<vmem>>, vector<1x8x512xf32>,
    %c3_i32 = arith.constant 3 : i32
    %c0_50 = arith.constant 0 : index
    %c0_51 = arith.constant 0 : index
    %181 = vector.load %arg6[%c0_50, %c0_51] : memref<8x512xf32, #tpu.memory_space<vmem>>, vector<8x512xf32>
    %182 = vector.extract_strided_slice %181 {offsets = [0, 0], sizes = [8, 128], strides = [1, 1]} : vector<8x512xf32> to vector<8x128xf32>
    %183 = vector.extract_strided_slice %181 {offsets = [0, 128], sizes = [8, 128], strides = [1, 1]} : vector<8x512xf32> to vector<8x128xf32>
    %184 = vector.extract_strided_slice %181 {offsets = [0, 256], sizes = [8, 128], strides = [1, 1]} : vector<8x512xf32> to vector<8x128xf32>
    %185 = vector.extract_strided_slice %181 {offsets = [0, 384], sizes = [8, 128], strides = [1, 1]} : vector<8x512xf32> to vector<8x128xf32>
    %186 = arith.index_cast %c3_i32 : i32 to index
    %c0_52 = arith.constant 0 : index
    %c0_53 = arith.constant 0 : index
    %187 = vector.load %arg3[%186, %c0_52, %c0_53] : memref<8x8x1xf32, #tpu.memory_space<vmem>>, vector<1x8x1xf32>
    %188 = vector.shape_cast %187 : vector<1x8x1xf32> to vector<8x1xf32>
    %189 = arith.index_cast %c3_i32 : i32 to index
    %c0_54 = arith.constant 0 : index
    %c0_55 = arith.constant 0 : index
    %190 = vector.load %arg2[%189, %c0_54, %c0_55] : memref<8x8x896xf32, #tpu.memory_space<vmem>>, vector<1x8x896xf32>
    %191 = vector.shape_cast %190 : vector<1x8x896xf32> to vector<8x896xf32>
    %192 = arith.subf %182, %183 : vector<8x128xf32>
    %cst_56 = arith.constant 0.000000e+00 : f32
    %193 = vector.broadcast %cst_56 : f32 to vector<8x128xf32>
    %194 = arith.subf %193, %184 : vector<8x128xf32>
    %195 = vector.broadcast %188 : vector<8x1xf32> to vector<8x128xf32>
    %196 = arith.mulf %194, %195 : vector<8x128xf32>
    %197 = math.exp %196 : vector<8x128xf32>
    %198 = arith.mulf %192, %197 : vector<8x128xf32>
    %199 = arith.addf %183, %198 : vector<8x128xf32>
    %200 = math.tanh %199 : vector<8x128xf32>
    %201 = arith.mulf %185, %200 : vector<8x128xf32>
    %cst_57 = arith.constant dense<0.000000e+00> : vector<8x896xf32>
    %202 = tpu.matmul %201, %3, %cst_57 {dimension_numbers = #tpu.dot_dimension_numbers<[1], [0], [0], [1], [0, 0, 1, 1], [], []>} : vector<8x128xf32>, vector<128x896xf32>, vector<8x896xf32> -> vector<8x896xf32>
    %203 = arith.addf %191, %202 : vector<8x896xf32>
    %204 = vector.extract_strided_slice %203 {offsets = [0, 0], sizes = [8, 640], strides = [1, 1]} : vector<8x896xf32> to vector<8x640xf32>
    %205 = arith.negf %204 : vector<8x640xf32>
    %206 = math.exp %205 : vector<8x640xf32>
    %cst_58 = arith.constant 1.000000e+00 : f32
    %207 = vector.broadcast %cst_58 : f32 to vector<8x640xf32>
    %208 = arith.addf %207, %206 : vector<8x640xf32>
    %209 = arith.divf %207, %208 : vector<8x640xf32>
    %210 = vector.extract_strided_slice %203 {offsets = [0, 640], sizes = [8, 128], strides = [1, 1]} : vector<8x896xf32> to vector<8x128xf32>
    %211 = math.tanh %210 : vector<8x128xf32>
    %212 = vector.extract_strided_slice %203 {offsets = [0, 768], sizes = [8, 128], strides = [1, 1]} : vector<8x896xf32> to vector<8x128xf32>
    %cst_59 = arith.constant 0.000000e+00 : f32
    %213 = vector.broadcast %cst_59 : f32 to vector<8x128xf32>
    %214 = arith.maximumf %212, %213 : vector<8x128xf32>
    %215 = math.absf %212 : vector<8x128xf32>
    %cst_60 = arith.constant 0.000000e+00 : f32
    %216 = vector.broadcast %cst_60 : f32 to vector<8x128xf32>
    %217 = arith.subf %216, %215 : vector<8x128xf32>
    %218 = math.exp %217 : vector<8x128xf32>
    %cst_61 = arith.constant 1.000000e+00 : f32
    %219 = vector.broadcast %cst_61 : f32 to vector<8x128xf32>
    %220 = arith.addf %219, %218 : vector<8x128xf32>
    %221 = math.log %220 : vector<8x128xf32>
    %222 = arith.addf %214, %221 : vector<8x128xf32>
    %223 = vector.extract_strided_slice %209 {offsets = [0, 0], sizes = [8, 128], strides = [1, 1]} : vector<8x640xf32> to vector<8x128xf32>
    %224 = vector.extract_strided_slice %209 {offsets = [0, 128], sizes = [8, 128], strides = [1, 1]} : vector<8x640xf32> to vector<8x128xf32>
    %225 = vector.extract_strided_slice %209 {offsets = [0, 256], sizes = [8, 128], strides = [1, 1]} : vector<8x640xf32> to vector<8x128xf32>
    %226 = vector.extract_strided_slice %209 {offsets = [0, 384], sizes = [8, 128], strides = [1, 1]} : vector<8x640xf32> to vector<8x128xf32>
    %227 = vector.extract_strided_slice %209 {offsets = [0, 512], sizes = [8, 128], strides = [1, 1]} : vector<8x640xf32> to vector<8x128xf32>
    %228 = arith.mulf %224, %199 : vector<8x128xf32>
    %229 = arith.mulf %223, %211 : vector<8x128xf32>
    %230 = arith.addf %228, %229 : vector<8x128xf32>
    %231 = arith.mulf %227, %183 : vector<8x128xf32>
    %232 = arith.mulf %226, %211 : vector<8x128xf32>
    %233 = arith.addf %231, %232 : vector<8x128xf32>
    %234 = tpu.concatenate %230, %233, %222, %225 in 1 : vector<8x128xf32>, vector<8x128xf32>, vector<8x128xf32>, vector<8x128xf32> -> vector<8x512xf32>
    %c0_62 = arith.constant 0 : index
    %c0_63 = arith.constant 0 : index
    %235 = vector.load %arg6[%c0_62, %c0_63] : memref<8x512xf32, #tpu.memory_space<vmem>>, vector<8x512xf32>
    tpu.vector_store %arg6[%c0_62, %c0_63], %234 {strides = array<i32>} : memref<8x512xf32, #tpu.memory_space<vmem>>, vector<8x512xf32>,
    %236 = arith.index_cast %c3_i32 : i32 to index
    %c0_64 = arith.constant 0 : index
    %c0_65 = arith.constant 0 : index
    %237 = vector.load %arg5[%236, %c0_64, %c0_65] : memref<8x8x512xf32, #tpu.memory_space<vmem>>, vector<1x8x512xf32>
    %238 = vector.shape_cast %237 : vector<1x8x512xf32> to vector<8x512xf32>
    %239 = vector.shape_cast %234 : vector<8x512xf32> to vector<1x8x512xf32>
    tpu.vector_store %arg5[%236, %c0_64, %c0_65], %239 {strides = array<i32>} : memref<8x8x512xf32, #tpu.memory_space<vmem>>, vector<1x8x512xf32>,
    %c4_i32 = arith.constant 4 : i32
    %c0_66 = arith.constant 0 : index
    %c0_67 = arith.constant 0 : index
    %240 = vector.load %arg6[%c0_66, %c0_67] : memref<8x512xf32, #tpu.memory_space<vmem>>, vector<8x512xf32>
    %241 = vector.extract_strided_slice %240 {offsets = [0, 0], sizes = [8, 128], strides = [1, 1]} : vector<8x512xf32> to vector<8x128xf32>
    %242 = vector.extract_strided_slice %240 {offsets = [0, 128], sizes = [8, 128], strides = [1, 1]} : vector<8x512xf32> to vector<8x128xf32>
    %243 = vector.extract_strided_slice %240 {offsets = [0, 256], sizes = [8, 128], strides = [1, 1]} : vector<8x512xf32> to vector<8x128xf32>
    %244 = vector.extract_strided_slice %240 {offsets = [0, 384], sizes = [8, 128], strides = [1, 1]} : vector<8x512xf32> to vector<8x128xf32>
    %245 = arith.index_cast %c4_i32 : i32 to index
    %c0_68 = arith.constant 0 : index
    %c0_69 = arith.constant 0 : index
    %246 = vector.load %arg3[%245, %c0_68, %c0_69] : memref<8x8x1xf32, #tpu.memory_space<vmem>>, vector<1x8x1xf32>
    %247 = vector.shape_cast %246 : vector<1x8x1xf32> to vector<8x1xf32>
    %248 = arith.index_cast %c4_i32 : i32 to index
    %c0_70 = arith.constant 0 : index
    %c0_71 = arith.constant 0 : index
    %249 = vector.load %arg2[%248, %c0_70, %c0_71] : memref<8x8x896xf32, #tpu.memory_space<vmem>>, vector<1x8x896xf32>
    %250 = vector.shape_cast %249 : vector<1x8x896xf32> to vector<8x896xf32>
    %251 = arith.subf %241, %242 : vector<8x128xf32>
    %cst_72 = arith.constant 0.000000e+00 : f32
    %252 = vector.broadcast %cst_72 : f32 to vector<8x128xf32>
    %253 = arith.subf %252, %243 : vector<8x128xf32>
    %254 = vector.broadcast %247 : vector<8x1xf32> to vector<8x128xf32>
    %255 = arith.mulf %253, %254 : vector<8x128xf32>
    %256 = math.exp %255 : vector<8x128xf32>
    %257 = arith.mulf %251, %256 : vector<8x128xf32>
    %258 = arith.addf %242, %257 : vector<8x128xf32>
    %259 = math.tanh %258 : vector<8x128xf32>
    %260 = arith.mulf %244, %259 : vector<8x128xf32>
    %cst_73 = arith.constant dense<0.000000e+00> : vector<8x896xf32>
    %261 = tpu.matmul %260, %3, %cst_73 {dimension_numbers = #tpu.dot_dimension_numbers<[1], [0], [0], [1], [0, 0, 1, 1], [], []>} : vector<8x128xf32>, vector<128x896xf32>, vector<8x896xf32> -> vector<8x896xf32>
    %262 = arith.addf %250, %261 : vector<8x896xf32>
    %263 = vector.extract_strided_slice %262 {offsets = [0, 0], sizes = [8, 640], strides = [1, 1]} : vector<8x896xf32> to vector<8x640xf32>
    %264 = arith.negf %263 : vector<8x640xf32>
    %265 = math.exp %264 : vector<8x640xf32>
    %cst_74 = arith.constant 1.000000e+00 : f32
    %266 = vector.broadcast %cst_74 : f32 to vector<8x640xf32>
    %267 = arith.addf %266, %265 : vector<8x640xf32>
    %268 = arith.divf %266, %267 : vector<8x640xf32>
    %269 = vector.extract_strided_slice %262 {offsets = [0, 640], sizes = [8, 128], strides = [1, 1]} : vector<8x896xf32> to vector<8x128xf32>
    %270 = math.tanh %269 : vector<8x128xf32>
    %271 = vector.extract_strided_slice %262 {offsets = [0, 768], sizes = [8, 128], strides = [1, 1]} : vector<8x896xf32> to vector<8x128xf32>
    %cst_75 = arith.constant 0.000000e+00 : f32
    %272 = vector.broadcast %cst_75 : f32 to vector<8x128xf32>
    %273 = arith.maximumf %271, %272 : vector<8x128xf32>
    %274 = math.absf %271 : vector<8x128xf32>
    %cst_76 = arith.constant 0.000000e+00 : f32
    %275 = vector.broadcast %cst_76 : f32 to vector<8x128xf32>
    %276 = arith.subf %275, %274 : vector<8x128xf32>
    %277 = math.exp %276 : vector<8x128xf32>
    %cst_77 = arith.constant 1.000000e+00 : f32
    %278 = vector.broadcast %cst_77 : f32 to vector<8x128xf32>
    %279 = arith.addf %278, %277 : vector<8x128xf32>
    %280 = math.log %279 : vector<8x128xf32>
    %281 = arith.addf %273, %280 : vector<8x128xf32>
    %282 = vector.extract_strided_slice %268 {offsets = [0, 0], sizes = [8, 128], strides = [1, 1]} : vector<8x640xf32> to vector<8x128xf32>
    %283 = vector.extract_strided_slice %268 {offsets = [0, 128], sizes = [8, 128], strides = [1, 1]} : vector<8x640xf32> to vector<8x128xf32>
    %284 = vector.extract_strided_slice %268 {offsets = [0, 256], sizes = [8, 128], strides = [1, 1]} : vector<8x640xf32> to vector<8x128xf32>
    %285 = vector.extract_strided_slice %268 {offsets = [0, 384], sizes = [8, 128], strides = [1, 1]} : vector<8x640xf32> to vector<8x128xf32>
    %286 = vector.extract_strided_slice %268 {offsets = [0, 512], sizes = [8, 128], strides = [1, 1]} : vector<8x640xf32> to vector<8x128xf32>
    %287 = arith.mulf %283, %258 : vector<8x128xf32>
    %288 = arith.mulf %282, %270 : vector<8x128xf32>
    %289 = arith.addf %287, %288 : vector<8x128xf32>
    %290 = arith.mulf %286, %242 : vector<8x128xf32>
    %291 = arith.mulf %285, %270 : vector<8x128xf32>
    %292 = arith.addf %290, %291 : vector<8x128xf32>
    %293 = tpu.concatenate %289, %292, %281, %284 in 1 : vector<8x128xf32>, vector<8x128xf32>, vector<8x128xf32>, vector<8x128xf32> -> vector<8x512xf32>
    %c0_78 = arith.constant 0 : index
    %c0_79 = arith.constant 0 : index
    %294 = vector.load %arg6[%c0_78, %c0_79] : memref<8x512xf32, #tpu.memory_space<vmem>>, vector<8x512xf32>
    tpu.vector_store %arg6[%c0_78, %c0_79], %293 {strides = array<i32>} : memref<8x512xf32, #tpu.memory_space<vmem>>, vector<8x512xf32>,
    %295 = arith.index_cast %c4_i32 : i32 to index
    %c0_80 = arith.constant 0 : index
    %c0_81 = arith.constant 0 : index
    %296 = vector.load %arg5[%295, %c0_80, %c0_81] : memref<8x8x512xf32, #tpu.memory_space<vmem>>, vector<1x8x512xf32>
    %297 = vector.shape_cast %296 : vector<1x8x512xf32> to vector<8x512xf32>
    %298 = vector.shape_cast %293 : vector<8x512xf32> to vector<1x8x512xf32>
    tpu.vector_store %arg5[%295, %c0_80, %c0_81], %298 {strides = array<i32>} : memref<8x8x512xf32, #tpu.memory_space<vmem>>, vector<1x8x512xf32>,
    %c5_i32 = arith.constant 5 : i32
    %c0_82 = arith.constant 0 : index
    %c0_83 = arith.constant 0 : index
    %299 = vector.load %arg6[%c0_82, %c0_83] : memref<8x512xf32, #tpu.memory_space<vmem>>, vector<8x512xf32>
    %300 = vector.extract_strided_slice %299 {offsets = [0, 0], sizes = [8, 128], strides = [1, 1]} : vector<8x512xf32> to vector<8x128xf32>
    %301 = vector.extract_strided_slice %299 {offsets = [0, 128], sizes = [8, 128], strides = [1, 1]} : vector<8x512xf32> to vector<8x128xf32>
    %302 = vector.extract_strided_slice %299 {offsets = [0, 256], sizes = [8, 128], strides = [1, 1]} : vector<8x512xf32> to vector<8x128xf32>
    %303 = vector.extract_strided_slice %299 {offsets = [0, 384], sizes = [8, 128], strides = [1, 1]} : vector<8x512xf32> to vector<8x128xf32>
    %304 = arith.index_cast %c5_i32 : i32 to index
    %c0_84 = arith.constant 0 : index
    %c0_85 = arith.constant 0 : index
    %305 = vector.load %arg3[%304, %c0_84, %c0_85] : memref<8x8x1xf32, #tpu.memory_space<vmem>>, vector<1x8x1xf32>
    %306 = vector.shape_cast %305 : vector<1x8x1xf32> to vector<8x1xf32>
    %307 = arith.index_cast %c5_i32 : i32 to index
    %c0_86 = arith.constant 0 : index
    %c0_87 = arith.constant 0 : index
    %308 = vector.load %arg2[%307, %c0_86, %c0_87] : memref<8x8x896xf32, #tpu.memory_space<vmem>>, vector<1x8x896xf32>
    %309 = vector.shape_cast %308 : vector<1x8x896xf32> to vector<8x896xf32>
    %310 = arith.subf %300, %301 : vector<8x128xf32>
    %cst_88 = arith.constant 0.000000e+00 : f32
    %311 = vector.broadcast %cst_88 : f32 to vector<8x128xf32>
    %312 = arith.subf %311, %302 : vector<8x128xf32>
    %313 = vector.broadcast %306 : vector<8x1xf32> to vector<8x128xf32>
    %314 = arith.mulf %312, %313 : vector<8x128xf32>
    %315 = math.exp %314 : vector<8x128xf32>
    %316 = arith.mulf %310, %315 : vector<8x128xf32>
    %317 = arith.addf %301, %316 : vector<8x128xf32>
    %318 = math.tanh %317 : vector<8x128xf32>
    %319 = arith.mulf %303, %318 : vector<8x128xf32>
    %cst_89 = arith.constant dense<0.000000e+00> : vector<8x896xf32>
    %320 = tpu.matmul %319, %3, %cst_89 {dimension_numbers = #tpu.dot_dimension_numbers<[1], [0], [0], [1], [0, 0, 1, 1], [], []>} : vector<8x128xf32>, vector<128x896xf32>, vector<8x896xf32> -> vector<8x896xf32>
    %321 = arith.addf %309, %320 : vector<8x896xf32>
    %322 = vector.extract_strided_slice %321 {offsets = [0, 0], sizes = [8, 640], strides = [1, 1]} : vector<8x896xf32> to vector<8x640xf32>
    %323 = arith.negf %322 : vector<8x640xf32>
    %324 = math.exp %323 : vector<8x640xf32>
    %cst_90 = arith.constant 1.000000e+00 : f32
    %325 = vector.broadcast %cst_90 : f32 to vector<8x640xf32>
    %326 = arith.addf %325, %324 : vector<8x640xf32>
    %327 = arith.divf %325, %326 : vector<8x640xf32>
    %328 = vector.extract_strided_slice %321 {offsets = [0, 640], sizes = [8, 128], strides = [1, 1]} : vector<8x896xf32> to vector<8x128xf32>
    %329 = math.tanh %328 : vector<8x128xf32>
    %330 = vector.extract_strided_slice %321 {offsets = [0, 768], sizes = [8, 128], strides = [1, 1]} : vector<8x896xf32> to vector<8x128xf32>
    %cst_91 = arith.constant 0.000000e+00 : f32
    %331 = vector.broadcast %cst_91 : f32 to vector<8x128xf32>
    %332 = arith.maximumf %330, %331 : vector<8x128xf32>
    %333 = math.absf %330 : vector<8x128xf32>
    %cst_92 = arith.constant 0.000000e+00 : f32
    %334 = vector.broadcast %cst_92 : f32 to vector<8x128xf32>
    %335 = arith.subf %334, %333 : vector<8x128xf32>
    %336 = math.exp %335 : vector<8x128xf32>
    %cst_93 = arith.constant 1.000000e+00 : f32
    %337 = vector.broadcast %cst_93 : f32 to vector<8x128xf32>
    %338 = arith.addf %337, %336 : vector<8x128xf32>
    %339 = math.log %338 : vector<8x128xf32>
    %340 = arith.addf %332, %339 : vector<8x128xf32>
    %341 = vector.extract_strided_slice %327 {offsets = [0, 0], sizes = [8, 128], strides = [1, 1]} : vector<8x640xf32> to vector<8x128xf32>
    %342 = vector.extract_strided_slice %327 {offsets = [0, 128], sizes = [8, 128], strides = [1, 1]} : vector<8x640xf32> to vector<8x128xf32>
    %343 = vector.extract_strided_slice %327 {offsets = [0, 256], sizes = [8, 128], strides = [1, 1]} : vector<8x640xf32> to vector<8x128xf32>
    %344 = vector.extract_strided_slice %327 {offsets = [0, 384], sizes = [8, 128], strides = [1, 1]} : vector<8x640xf32> to vector<8x128xf32>
    %345 = vector.extract_strided_slice %327 {offsets = [0, 512], sizes = [8, 128], strides = [1, 1]} : vector<8x640xf32> to vector<8x128xf32>
    %346 = arith.mulf %342, %317 : vector<8x128xf32>
    %347 = arith.mulf %341, %329 : vector<8x128xf32>
    %348 = arith.addf %346, %347 : vector<8x128xf32>
    %349 = arith.mulf %345, %301 : vector<8x128xf32>
    %350 = arith.mulf %344, %329 : vector<8x128xf32>
    %351 = arith.addf %349, %350 : vector<8x128xf32>
    %352 = tpu.concatenate %348, %351, %340, %343 in 1 : vector<8x128xf32>, vector<8x128xf32>, vector<8x128xf32>, vector<8x128xf32> -> vector<8x512xf32>
    %c0_94 = arith.constant 0 : index
    %c0_95 = arith.constant 0 : index
    %353 = vector.load %arg6[%c0_94, %c0_95] : memref<8x512xf32, #tpu.memory_space<vmem>>, vector<8x512xf32>
    tpu.vector_store %arg6[%c0_94, %c0_95], %352 {strides = array<i32>} : memref<8x512xf32, #tpu.memory_space<vmem>>, vector<8x512xf32>,
    %354 = arith.index_cast %c5_i32 : i32 to index
    %c0_96 = arith.constant 0 : index
    %c0_97 = arith.constant 0 : index
    %355 = vector.load %arg5[%354, %c0_96, %c0_97] : memref<8x8x512xf32, #tpu.memory_space<vmem>>, vector<1x8x512xf32>
    %356 = vector.shape_cast %355 : vector<1x8x512xf32> to vector<8x512xf32>
    %357 = vector.shape_cast %352 : vector<8x512xf32> to vector<1x8x512xf32>
    tpu.vector_store %arg5[%354, %c0_96, %c0_97], %357 {strides = array<i32>} : memref<8x8x512xf32, #tpu.memory_space<vmem>>, vector<1x8x512xf32>,
    %c6_i32 = arith.constant 6 : i32
    %c0_98 = arith.constant 0 : index
    %c0_99 = arith.constant 0 : index
    %358 = vector.load %arg6[%c0_98, %c0_99] : memref<8x512xf32, #tpu.memory_space<vmem>>, vector<8x512xf32>
    %359 = vector.extract_strided_slice %358 {offsets = [0, 0], sizes = [8, 128], strides = [1, 1]} : vector<8x512xf32> to vector<8x128xf32>
    %360 = vector.extract_strided_slice %358 {offsets = [0, 128], sizes = [8, 128], strides = [1, 1]} : vector<8x512xf32> to vector<8x128xf32>
    %361 = vector.extract_strided_slice %358 {offsets = [0, 256], sizes = [8, 128], strides = [1, 1]} : vector<8x512xf32> to vector<8x128xf32>
    %362 = vector.extract_strided_slice %358 {offsets = [0, 384], sizes = [8, 128], strides = [1, 1]} : vector<8x512xf32> to vector<8x128xf32>
    %363 = arith.index_cast %c6_i32 : i32 to index
    %c0_100 = arith.constant 0 : index
    %c0_101 = arith.constant 0 : index
    %364 = vector.load %arg3[%363, %c0_100, %c0_101] : memref<8x8x1xf32, #tpu.memory_space<vmem>>, vector<1x8x1xf32>
    %365 = vector.shape_cast %364 : vector<1x8x1xf32> to vector<8x1xf32>
    %366 = arith.index_cast %c6_i32 : i32 to index
    %c0_102 = arith.constant 0 : index
    %c0_103 = arith.constant 0 : index
    %367 = vector.load %arg2[%366, %c0_102, %c0_103] : memref<8x8x896xf32, #tpu.memory_space<vmem>>, vector<1x8x896xf32>
    %368 = vector.shape_cast %367 : vector<1x8x896xf32> to vector<8x896xf32>
    %369 = arith.subf %359, %360 : vector<8x128xf32>
    %cst_104 = arith.constant 0.000000e+00 : f32
    %370 = vector.broadcast %cst_104 : f32 to vector<8x128xf32>
    %371 = arith.subf %370, %361 : vector<8x128xf32>
    %372 = vector.broadcast %365 : vector<8x1xf32> to vector<8x128xf32>
    %373 = arith.mulf %371, %372 : vector<8x128xf32>
    %374 = math.exp %373 : vector<8x128xf32>
    %375 = arith.mulf %369, %374 : vector<8x128xf32>
    %376 = arith.addf %360, %375 : vector<8x128xf32>
    %377 = math.tanh %376 : vector<8x128xf32>
    %378 = arith.mulf %362, %377 : vector<8x128xf32>
    %cst_105 = arith.constant dense<0.000000e+00> : vector<8x896xf32>
    %379 = tpu.matmul %378, %3, %cst_105 {dimension_numbers = #tpu.dot_dimension_numbers<[1], [0], [0], [1], [0, 0, 1, 1], [], []>} : vector<8x128xf32>, vector<128x896xf32>, vector<8x896xf32> -> vector<8x896xf32>
    %380 = arith.addf %368, %379 : vector<8x896xf32>
    %381 = vector.extract_strided_slice %380 {offsets = [0, 0], sizes = [8, 640], strides = [1, 1]} : vector<8x896xf32> to vector<8x640xf32>
    %382 = arith.negf %381 : vector<8x640xf32>
    %383 = math.exp %382 : vector<8x640xf32>
    %cst_106 = arith.constant 1.000000e+00 : f32
    %384 = vector.broadcast %cst_106 : f32 to vector<8x640xf32>
    %385 = arith.addf %384, %383 : vector<8x640xf32>
    %386 = arith.divf %384, %385 : vector<8x640xf32>
    %387 = vector.extract_strided_slice %380 {offsets = [0, 640], sizes = [8, 128], strides = [1, 1]} : vector<8x896xf32> to vector<8x128xf32>
    %388 = math.tanh %387 : vector<8x128xf32>
    %389 = vector.extract_strided_slice %380 {offsets = [0, 768], sizes = [8, 128], strides = [1, 1]} : vector<8x896xf32> to vector<8x128xf32>
    %cst_107 = arith.constant 0.000000e+00 : f32
    %390 = vector.broadcast %cst_107 : f32 to vector<8x128xf32>
    %391 = arith.maximumf %389, %390 : vector<8x128xf32>
    %392 = math.absf %389 : vector<8x128xf32>
    %cst_108 = arith.constant 0.000000e+00 : f32
    %393 = vector.broadcast %cst_108 : f32 to vector<8x128xf32>
    %394 = arith.subf %393, %392 : vector<8x128xf32>
    %395 = math.exp %394 : vector<8x128xf32>
    %cst_109 = arith.constant 1.000000e+00 : f32
    %396 = vector.broadcast %cst_109 : f32 to vector<8x128xf32>
    %397 = arith.addf %396, %395 : vector<8x128xf32>
    %398 = math.log %397 : vector<8x128xf32>
    %399 = arith.addf %391, %398 : vector<8x128xf32>
    %400 = vector.extract_strided_slice %386 {offsets = [0, 0], sizes = [8, 128], strides = [1, 1]} : vector<8x640xf32> to vector<8x128xf32>
    %401 = vector.extract_strided_slice %386 {offsets = [0, 128], sizes = [8, 128], strides = [1, 1]} : vector<8x640xf32> to vector<8x128xf32>
    %402 = vector.extract_strided_slice %386 {offsets = [0, 256], sizes = [8, 128], strides = [1, 1]} : vector<8x640xf32> to vector<8x128xf32>
    %403 = vector.extract_strided_slice %386 {offsets = [0, 384], sizes = [8, 128], strides = [1, 1]} : vector<8x640xf32> to vector<8x128xf32>
    %404 = vector.extract_strided_slice %386 {offsets = [0, 512], sizes = [8, 128], strides = [1, 1]} : vector<8x640xf32> to vector<8x128xf32>
    %405 = arith.mulf %401, %376 : vector<8x128xf32>
    %406 = arith.mulf %400, %388 : vector<8x128xf32>
    %407 = arith.addf %405, %406 : vector<8x128xf32>
    %408 = arith.mulf %404, %360 : vector<8x128xf32>
    %409 = arith.mulf %403, %388 : vector<8x128xf32>
    %410 = arith.addf %408, %409 : vector<8x128xf32>
    %411 = tpu.concatenate %407, %410, %399, %402 in 1 : vector<8x128xf32>, vector<8x128xf32>, vector<8x128xf32>, vector<8x128xf32> -> vector<8x512xf32>
    %c0_110 = arith.constant 0 : index
    %c0_111 = arith.constant 0 : index
    %412 = vector.load %arg6[%c0_110, %c0_111] : memref<8x512xf32, #tpu.memory_space<vmem>>, vector<8x512xf32>
    tpu.vector_store %arg6[%c0_110, %c0_111], %411 {strides = array<i32>} : memref<8x512xf32, #tpu.memory_space<vmem>>, vector<8x512xf32>,
    %413 = arith.index_cast %c6_i32 : i32 to index
    %c0_112 = arith.constant 0 : index
    %c0_113 = arith.constant 0 : index
    %414 = vector.load %arg5[%413, %c0_112, %c0_113] : memref<8x8x512xf32, #tpu.memory_space<vmem>>, vector<1x8x512xf32>
    %415 = vector.shape_cast %414 : vector<1x8x512xf32> to vector<8x512xf32>
    %416 = vector.shape_cast %411 : vector<8x512xf32> to vector<1x8x512xf32>
    tpu.vector_store %arg5[%413, %c0_112, %c0_113], %416 {strides = array<i32>} : memref<8x8x512xf32, #tpu.memory_space<vmem>>, vector<1x8x512xf32>,
    %c7_i32 = arith.constant 7 : i32
    %c0_114 = arith.constant 0 : index
    %c0_115 = arith.constant 0 : index
    %417 = vector.load %arg6[%c0_114, %c0_115] : memref<8x512xf32, #tpu.memory_space<vmem>>, vector<8x512xf32>
    %418 = vector.extract_strided_slice %417 {offsets = [0, 0], sizes = [8, 128], strides = [1, 1]} : vector<8x512xf32> to vector<8x128xf32>
    %419 = vector.extract_strided_slice %417 {offsets = [0, 128], sizes = [8, 128], strides = [1, 1]} : vector<8x512xf32> to vector<8x128xf32>
    %420 = vector.extract_strided_slice %417 {offsets = [0, 256], sizes = [8, 128], strides = [1, 1]} : vector<8x512xf32> to vector<8x128xf32>
    %421 = vector.extract_strided_slice %417 {offsets = [0, 384], sizes = [8, 128], strides = [1, 1]} : vector<8x512xf32> to vector<8x128xf32>
    %422 = arith.index_cast %c7_i32 : i32 to index
    %c0_116 = arith.constant 0 : index
    %c0_117 = arith.constant 0 : index
    %423 = vector.load %arg3[%422, %c0_116, %c0_117] : memref<8x8x1xf32, #tpu.memory_space<vmem>>, vector<1x8x1xf32>
    %424 = vector.shape_cast %423 : vector<1x8x1xf32> to vector<8x1xf32>
    %425 = arith.index_cast %c7_i32 : i32 to index
    %c0_118 = arith.constant 0 : index
    %c0_119 = arith.constant 0 : index
    %426 = vector.load %arg2[%425, %c0_118, %c0_119] : memref<8x8x896xf32, #tpu.memory_space<vmem>>, vector<1x8x896xf32>
    %427 = vector.shape_cast %426 : vector<1x8x896xf32> to vector<8x896xf32>
    %428 = arith.subf %418, %419 : vector<8x128xf32>
    %cst_120 = arith.constant 0.000000e+00 : f32
    %429 = vector.broadcast %cst_120 : f32 to vector<8x128xf32>
    %430 = arith.subf %429, %420 : vector<8x128xf32>
    %431 = vector.broadcast %424 : vector<8x1xf32> to vector<8x128xf32>
    %432 = arith.mulf %430, %431 : vector<8x128xf32>
    %433 = math.exp %432 : vector<8x128xf32>
    %434 = arith.mulf %428, %433 : vector<8x128xf32>
    %435 = arith.addf %419, %434 : vector<8x128xf32>
    %436 = math.tanh %435 : vector<8x128xf32>
    %437 = arith.mulf %421, %436 : vector<8x128xf32>
    %cst_121 = arith.constant dense<0.000000e+00> : vector<8x896xf32>
    %438 = tpu.matmul %437, %3, %cst_121 {dimension_numbers = #tpu.dot_dimension_numbers<[1], [0], [0], [1], [0, 0, 1, 1], [], []>} : vector<8x128xf32>, vector<128x896xf32>, vector<8x896xf32> -> vector<8x896xf32>
    %439 = arith.addf %427, %438 : vector<8x896xf32>
    %440 = vector.extract_strided_slice %439 {offsets = [0, 0], sizes = [8, 640], strides = [1, 1]} : vector<8x896xf32> to vector<8x640xf32>
    %441 = arith.negf %440 : vector<8x640xf32>
    %442 = math.exp %441 : vector<8x640xf32>
    %cst_122 = arith.constant 1.000000e+00 : f32
    %443 = vector.broadcast %cst_122 : f32 to vector<8x640xf32>
    %444 = arith.addf %443, %442 : vector<8x640xf32>
    %445 = arith.divf %443, %444 : vector<8x640xf32>
    %446 = vector.extract_strided_slice %439 {offsets = [0, 640], sizes = [8, 128], strides = [1, 1]} : vector<8x896xf32> to vector<8x128xf32>
    %447 = math.tanh %446 : vector<8x128xf32>
    %448 = vector.extract_strided_slice %439 {offsets = [0, 768], sizes = [8, 128], strides = [1, 1]} : vector<8x896xf32> to vector<8x128xf32>
    %cst_123 = arith.constant 0.000000e+00 : f32
    %449 = vector.broadcast %cst_123 : f32 to vector<8x128xf32>
    %450 = arith.maximumf %448, %449 : vector<8x128xf32>
    %451 = math.absf %448 : vector<8x128xf32>
    %cst_124 = arith.constant 0.000000e+00 : f32
    %452 = vector.broadcast %cst_124 : f32 to vector<8x128xf32>
    %453 = arith.subf %452, %451 : vector<8x128xf32>
    %454 = math.exp %453 : vector<8x128xf32>
    %cst_125 = arith.constant 1.000000e+00 : f32
    %455 = vector.broadcast %cst_125 : f32 to vector<8x128xf32>
    %456 = arith.addf %455, %454 : vector<8x128xf32>
    %457 = math.log %456 : vector<8x128xf32>
    %458 = arith.addf %450, %457 : vector<8x128xf32>
    %459 = vector.extract_strided_slice %445 {offsets = [0, 0], sizes = [8, 128], strides = [1, 1]} : vector<8x640xf32> to vector<8x128xf32>
    %460 = vector.extract_strided_slice %445 {offsets = [0, 128], sizes = [8, 128], strides = [1, 1]} : vector<8x640xf32> to vector<8x128xf32>
    %461 = vector.extract_strided_slice %445 {offsets = [0, 256], sizes = [8, 128], strides = [1, 1]} : vector<8x640xf32> to vector<8x128xf32>
    %462 = vector.extract_strided_slice %445 {offsets = [0, 384], sizes = [8, 128], strides = [1, 1]} : vector<8x640xf32> to vector<8x128xf32>
    %463 = vector.extract_strided_slice %445 {offsets = [0, 512], sizes = [8, 128], strides = [1, 1]} : vector<8x640xf32> to vector<8x128xf32>
    %464 = arith.mulf %460, %435 : vector<8x128xf32>
    %465 = arith.mulf %459, %447 : vector<8x128xf32>
    %466 = arith.addf %464, %465 : vector<8x128xf32>
    %467 = arith.mulf %463, %419 : vector<8x128xf32>
    %468 = arith.mulf %462, %447 : vector<8x128xf32>
    %469 = arith.addf %467, %468 : vector<8x128xf32>
    %470 = tpu.concatenate %466, %469, %458, %461 in 1 : vector<8x128xf32>, vector<8x128xf32>, vector<8x128xf32>, vector<8x128xf32> -> vector<8x512xf32>
    %c0_126 = arith.constant 0 : index
    %c0_127 = arith.constant 0 : index
    %471 = vector.load %arg6[%c0_126, %c0_127] : memref<8x512xf32, #tpu.memory_space<vmem>>, vector<8x512xf32>
    tpu.vector_store %arg6[%c0_126, %c0_127], %470 {strides = array<i32>} : memref<8x512xf32, #tpu.memory_space<vmem>>, vector<8x512xf32>,
    %472 = arith.index_cast %c7_i32 : i32 to index
    %c0_128 = arith.constant 0 : index
    %c0_129 = arith.constant 0 : index
    %473 = vector.load %arg5[%472, %c0_128, %c0_129] : memref<8x8x512xf32, #tpu.memory_space<vmem>>, vector<1x8x512xf32>
    %474 = vector.shape_cast %473 : vector<1x8x512xf32> to vector<8x512xf32>
    %475 = vector.shape_cast %470 : vector<8x512xf32> to vector<1x8x512xf32>
    tpu.vector_store %arg5[%472, %c0_128, %c0_129], %475 {strides = array<i32>} : memref<8x8x512xf32, #tpu.memory_space<vmem>>, vector<1x8x512xf32>,
    %c8_i32 = arith.constant 8 : i32
    return
  }
  func.func @transform_0(%arg0: i32, %arg1: i32) -> (i32, i32, i32) {
    %c0_i32 = arith.constant 0 : i32
    %c0_i32_0 = arith.constant 0 : i32
    return %arg1, %arg0, %c0_i32 : i32, i32, i32
  }
  func.func @transform_1(%arg0: i32, %arg1: i32) -> (i32, i32, i32) {
    %c0_i32 = arith.constant 0 : i32
    %c0_i32_0 = arith.constant 0 : i32
    return %arg1, %arg0, %c0_i32 : i32, i32, i32
  }
  func.func @transform_2(%arg0: i32, %arg1: i32) -> (i32, i32) {
    %c0_i32 = arith.constant 0 : i32
    %c0_i32_0 = arith.constant 0 : i32
    %c0_i32_1 = arith.constant 0 : i32
    return %c0_i32, %c0_i32_0 : i32, i32
  }
  func.func @transform_3(%arg0: i32, %arg1: i32) -> (i32, i32, i32) {
    %c0_i32 = arith.constant 0 : i32
    %c0_i32_0 = arith.constant 0 : i32
    return %arg1, %arg0, %c0_i32 : i32, i32, i32
  }
}

</mosaic_0001>

<bundles_post_ra>
// kernel: tpu_custom_call.1
= control target key start
LH: loop header
LB: loop body
LE: loop exit
PB: predicated region body
PF: predicated region fallthrough
CT: control target
= control target key end

     0   :  { %8 = vsyncpa [#allocation4], 0  ;;  %s6088_s0 = inlined_call_operand.hbm [shape: f32[8,8,896], index: 0, kind: input, shape index: {}]   ;;  %s6089_s1 = inlined_call_operand.vmem [shape: f32[8,8,1], index: 1, kind: input, shape index: {}]   ;;  %s6090_s2 = inlined_call_operand.hbm [shape: f32[128,896], index: 2, kind: input, shape index: {}]   ;;  %s6091_s3 = inlined_call_operand.hbm [shape: f32[8,8,512], index: 3, kind: output, shape index: {}]  }
   0x1   :  { %9 = vsyncpa [#allocation7], 0 }
   0x2   :  { %10 = vsyncpa [#allocation5], 0  ;;  %s4167_s12 = smov [#allocation3]  }
   0x3   :  { %s16_s13 = sshll.u32 %s4167_s12, 4  ;;  %s17_s13 = int_to_ptr.vmem [resolvable:$true] %s16_s13 }
   0x4   :  { %s4109_s14 = scalar_lea.vmem %s17_s13, 7168  ;;  %p4114_p1 = scmp.lt.s32.totalorder %s17_s13, %s17_s13 }
   0x5   :  { %p4110_p0 = scmp.ne.s32.totalorder %s17_s13, %s4109_s14  ;;  %p4115_p2 = scmp.lt.s32.totalorder %s4109_s14, %s4109_s14 }
   0x7   :  { %p4116_p3 = por %p4115_p2, %p4114_p1 }
   0x9   :  { %p4117_p4 = pnand %p4116_p3, %p4110_p0 }
   0xb   :  { %4120 = shalt.err (!%p4117_p4)
}
   0xc   :  { %s4168_s15 = smov 896   ;;  %s4169_s16 = smov 56  }
   0xd   :  { %22 = dma.hbm_to_vmem [thread:$0]  %s6088_s0, 7168, %s17_s13, [#allocation4], %s4168_s15, %s4168_s15, %s4169_s16  }
   0xe   :  { %s4170_s19 = smov [#allocation6]  }
   0xf   :  { %s30_s20 = sshll.u32 %s4170_s19, 4  ;;  %s31_s20 = int_to_ptr.vmem [resolvable:$true] %s30_s20 }
  0x10   :  { %s4129_s21 = scalar_lea.vmem %s31_s20, 14336  ;;  %p4134_p6 = scmp.lt.s32.totalorder %s31_s20, %s31_s20 }
  0x11   :  { %p4130_p5 = scmp.ne.s32.totalorder %s31_s20, %s4129_s21  ;;  %p4135_p7 = scmp.lt.s32.totalorder %s4129_s21, %s4129_s21 }
  0x13   :  { %p4136_p8 = por %p4135_p7, %p4134_p6 }
  0x15   :  { %p4137_p9 = pnand %p4136_p8, %p4130_p5 }
  0x17   :  { %4140 = shalt.err (!%p4137_p9)
}
  0x18   :  { %36 = dma.hbm_to_vmem [thread:$0]  %s6090_s2, 14336, %s31_s20, [#allocation7], %s4168_s15, %s4168_s15, %s4169_s16  }
  0x19   :  { %4161 = dma.done.wait [#allocation4], 7168  }
  0x1a   :  { %4162 = vsyncadd [#allocation4], 4294960128 }
  0x1b   :  { %4163 = dma.done.wait [#allocation7], 14336  }
  0x1c   :  { %4164 = vsyncadd [#allocation7], 4294952960  ;;  %v4171_v0 = vmov 0   ;;  %v167_v1 = vld [vmem:[%s6089_s1] sm:$0xff]  ;;  %v3167_v2 = vld [vmem:[%s6089_s1 + $0x8] sm:$0xff]  ;;  %vm4173_vm0 = vmmov 0  }
  0x1d   :  { %3635 = vset.pattern.permute.xlu0 %v4171_v0  ;;  %3636 = vset.pattern.permute.xlu1 %v4171_v0  ;;  %v4209_v3 = vld [vmem:[#allocation6 + $0x350] sm:$0xff]  ;;  %v4211_v4 = vld [vmem:[#allocation6 + $0x360] sm:$0xff]  ;;  %v4215_v5 = vld [vmem:[#allocation6 + $0x348] sm:$0xff] }
  0x1e   :  { %179 = vperm.xlu0 %3635, %v167_v1   ;;  %189 = vmatprep.subr.mxu0 %v4209_v3  ;;  %v4217_v6 = vld [vmem:[#allocation6 + $0x358] sm:$0xff]  ;;  %v4223_v8 = vld [vmem:[#allocation6 + $0x328] sm:$0xff]  ;;  %v4225_v9 = vld [vmem:[#allocation6 + $0x310] sm:$0xff] }
  0x1f   :  { %260 = vmatprep.subr.mxu1 %v4211_v4  ;;  %v4219_v7 = vld [vmem:[#allocation6 + $0x318] sm:$0xff]  ;;  %190 = vmatpush1.msra.mxu0 %v4215_v5  ;;  %v4227_v10 = vld [vmem:[#allocation6 + $0x320] sm:$0xff]  ;;  %v4233_v12 = vld [vmem:[#allocation6 + $0x2f0] sm:$0xff] }
  0x20   :  { %261 = vmatpush1.msra.mxu1 %v4217_v6  ;;  %191 = vmatprep.subr.mxu0 %v4219_v7  ;;  %v4231_v11 = vld [vmem:[#allocation6 + $0x2e0] sm:$0xff]  ;;  %v4235_v13 = vld [vmem:[#allocation6 + $0x2d8] sm:$0xff]  ;;  %v4238_v14 = vld [vmem:[#allocation6 + $0x2e8] sm:$0xff] }
  0x21   :  { %262 = vmatprep.subr.mxu1 %v4223_v8  ;;  %192 = vmatpush1.msra.mxu0 %v4225_v9  ;;  %v4240_v15 = vld [vmem:[#allocation6 + $0x2a8] sm:$0xff]  ;;  %v3185_v16 = vld [vmem:[%s6089_s1 + $0x20] sm:$0xff]  ;;  %v4247_v17 = vld [vmem:[#allocation6 + $0x2b8] sm:$0xff] }
  0x22   :  { %551 = vperm.xlu0 %3635, %v3167_v2   ;;  %263 = vmatpush1.msra.mxu1 %v4227_v10  ;;  %v4251_v18 = vld [vmem:[#allocation6 + $0x2a0] sm:$0xff]  ;;  %v4253_v19 = vld [vmem:[#allocation6 + $0x2b0] sm:$0xff]  ;;  %v4262_v22 = vld [vmem:[#allocation6 + $0x268] sm:$0xff] }
  0x23   :  { %193 = vmatprep.subr.mxu0 %v4231_v11  ;;  %264 = vmatprep.subr.mxu1 %v4233_v12  ;;  %v4257_v20 = vld [vmem:[#allocation6 + $0x270] sm:$0xff]  ;;  %v4259_v21 = vld [vmem:[#allocation6 + $0x280] sm:$0xff]  ;;  %v4264_v23 = vld [vmem:[#allocation6 + $0x278] sm:$0xff] }
  0x24   :  { %194 = vmatpush1.msra.mxu0 %v4235_v13  ;;  %265 = vmatpush1.msra.mxu1 %v4238_v14  ;;  %v3197_v24 = vld [vmem:[%s6089_s1 + $0x30] sm:$0xff]  ;;  %v4271_v25 = vld [vmem:[#allocation6 + $0x238] sm:$0xff]  ;;  %v4275_v26 = vld [vmem:[#allocation6 + $0x248] sm:$0xff] }
  0x25   :  { %195 = vmatprep.subr.mxu0 %v4240_v15  ;;  %266 = vmatprep.subr.mxu1 %v4247_v17  ;;  %v4277_v27 = vld [vmem:[#allocation6 + $0x230] sm:$0xff]  ;;  %v4281_v28 = vld [vmem:[#allocation6 + $0x240] sm:$0xff]  ;;  %v4288_v31 = vld [vmem:[#allocation6 + $0x1f8] sm:$0xff] }
  0x26   :  { %1670 = vperm.xlu0 %3635, %v3185_v16   ;;  %196 = vmatpush1.msra.mxu0 %v4251_v18  ;;  %v4283_v29 = vld [vmem:[#allocation6 + $0x200] sm:$0xff]  ;;  %v4286_v30 = vld [vmem:[#allocation6 + $0x210] sm:$0xff]  ;;  %v4292_v32 = vld [vmem:[#allocation6 + $0x208] sm:$0xff] }
  0x27   :  { %267 = vmatpush1.msra.mxu1 %v4253_v19  ;;  %197 = vmatprep.subr.mxu0 %v4257_v20  ;;  %v4294_v33 = vld [vmem:[#allocation6 + $0x1c8] sm:$0xff]  ;;  %v4298_v34 = vld [vmem:[#allocation6 + $0x1d8] sm:$0xff]  ;;  %v4300_v35 = vld [vmem:[#allocation6 + $0x1c0] sm:$0xff] }
  0x28   :  { %268 = vmatprep.subr.mxu1 %v4259_v21  ;;  %198 = vmatpush1.msra.mxu0 %v4262_v22  ;;  %v4304_v36 = vld [vmem:[#allocation6 + $0x1d0] sm:$0xff]  ;;  %v4310_v38 = vld [vmem:[#allocation6 + $0x1a0] sm:$0xff]  ;;  %v4312_v39 = vld [vmem:[#allocation6 + $0x188] sm:$0xff] }
  0x29   :  { %269 = vmatpush1.msra.mxu1 %v4264_v23  ;;  %199 = vmatprep.subr.mxu0 %v4271_v25  ;;  %v4306_v37 = vld [vmem:[#allocation6 + $0x190] sm:$0xff]  ;;  %6393 = vst [vmem:[#allocation13_spill] sm:$0xff] %v4310_v38  ;;  %6394 = vst [vmem:[#allocation14_spill] sm:$0xff] %v4312_v39  ;;  %v4316_v40 = vld [vmem:[#allocation6 + $0x198] sm:$0xff] }
  0x2a   :  { %2416 = vperm.xlu0 %3635, %v3197_v24   ;;  %270 = vmatprep.subr.mxu1 %v4275_v26  ;;  %6392 = vst [vmem:[#allocation12_spill] sm:$0xff] %v4306_v37  ;;  %6395 = vst [vmem:[#allocation15_spill] sm:$0xff] %v4316_v40  ;;  %v4318_v41 = vld [vmem:[#allocation6 + $0x158] sm:$0xff]  ;;  %v4322_v42 = vld [vmem:[#allocation6 + $0x168] sm:$0xff] }
  0x2b   :  { %200 = vmatpush1.msra.mxu0 %v4277_v27  ;;  %271 = vmatpush1.msra.mxu1 %v4281_v28  ;;  %6396 = vst [vmem:[#allocation16_spill] sm:$0xff] %v4318_v41  ;;  %6397 = vst [vmem:[#allocation17_spill] sm:$0xff] %v4322_v42  ;;  %v4324_v43 = vld [vmem:[#allocation6 + $0x150] sm:$0xff]  ;;  %v4328_v44 = vld [vmem:[#allocation6 + $0x160] sm:$0xff] }
  0x2c   :  { %201 = vmatprep.subr.mxu0 %v4283_v29  ;;  %272 = vmatprep.subr.mxu1 %v4286_v30  ;;  %6398 = vst [vmem:[#allocation18_spill] sm:$0xff] %v4324_v43  ;;  %6399 = vst [vmem:[#allocation19_spill] sm:$0xff] %v4328_v44  ;;  %v4330_v45 = vld [vmem:[#allocation6 + $0x120] sm:$0xff]  ;;  %v4334_v46 = vld [vmem:[#allocation6 + $0x130] sm:$0xff] }
  0x2d   :  { %202 = vmatpush1.msra.mxu0 %v4288_v31  ;;  %273 = vmatpush1.msra.mxu1 %v4292_v32  ;;  %6400 = vst [vmem:[#allocation20_spill] sm:$0xff] %v4330_v45  ;;  %6401 = vst [vmem:[#allocation21_spill] sm:$0xff] %v4334_v46  ;;  %v4336_v47 = vld [vmem:[#allocation6 + $0x118] sm:$0xff]  ;;  %v4340_v48 = vld [vmem:[#allocation6 + $0x128] sm:$0xff] }
  0x2e   :  { %203 = vmatprep.subr.mxu0 %v4294_v33  ;;  %274 = vmatprep.subr.mxu1 %v4298_v34  ;;  %6402 = vst [vmem:[#allocation22_spill] sm:$0xff] %v4336_v47  ;;  %6403 = vst [vmem:[#allocation23_spill] sm:$0xff] %v4340_v48  ;;  %v4342_v49 = vld [vmem:[#allocation6 + $0xe8] sm:$0xff]  ;;  %v4346_v50 = vld [vmem:[#allocation6 + $0xf8] sm:$0xff] }
  0x2f   :  { %204 = vmatpush1.msra.mxu0 %v4300_v35  ;;  %275 = vmatpush1.msra.mxu1 %v4304_v36  ;;  %6404 = vst [vmem:[#allocation24_spill] sm:$0xff] %v4342_v49  ;;  %6405 = vst [vmem:[#allocation25_spill] sm:$0xff] %v4346_v50  ;;  %v4348_v51 = vld [vmem:[#allocation6 + $0xe0] sm:$0xff]  ;;  %v4352_v52 = vld [vmem:[#allocation6 + $0xf0] sm:$0xff] }
  0x30   :  { %205 = vmatprep.subr.mxu0 %v4306_v37  ;;  %276 = vmatprep.subr.mxu1 %v4310_v38  ;;  %6406 = vst [vmem:[#allocation26_spill] sm:$0xff] %v4348_v51  ;;  %6407 = vst [vmem:[#allocation27_spill] sm:$0xff] %v4352_v52  ;;  %v4354_v53 = vld [vmem:[#allocation6 + $0xb0] sm:$0xff]  ;;  %v4358_v54 = vld [vmem:[#allocation6 + $0xc0] sm:$0xff] }
  0x31   :  { %206 = vmatpush1.msra.mxu0 %v4312_v39  ;;  %277 = vmatpush1.msra.mxu1 %v4316_v40  ;;  %6408 = vst [vmem:[#allocation28_spill] sm:$0xff] %v4354_v53  ;;  %6409 = vst [vmem:[#allocation29_spill] sm:$0xff] %v4358_v54  ;;  %v4360_v55 = vld [vmem:[#allocation6 + $0xa8] sm:$0xff]  ;;  %v4364_v56 = vld [vmem:[#allocation6 + $0xb8] sm:$0xff] }
  0x32   :  { %207 = vmatprep.subr.mxu0 %v4318_v41  ;;  %278 = vmatprep.subr.mxu1 %v4322_v42  ;;  %6410 = vst [vmem:[#allocation30_spill] sm:$0xff] %v4360_v55  ;;  %6411 = vst [vmem:[#allocation31_spill] sm:$0xff] %v4364_v56  ;;  %v4366_v57 = vld [vmem:[#allocation6 + $0x78] sm:$0xff]  ;;  %v4370_v58 = vld [vmem:[#allocation6 + $0x88] sm:$0xff] }
  0x33   :  { %208 = vmatpush1.msra.mxu0 %v4324_v43  ;;  %279 = vmatpush1.msra.mxu1 %v4328_v44  ;;  %6412 = vst [vmem:[#allocation32_spill] sm:$0xff] %v4366_v57  ;;  %6413 = vst [vmem:[#allocation33_spill] sm:$0xff] %v4370_v58  ;;  %v4372_v59 = vld [vmem:[#allocation6 + $0x70] sm:$0xff]  ;;  %v4376_v60 = vld [vmem:[#allocation6 + $0x80] sm:$0xff] }
  0x34   :  { %209 = vmatprep.subr.mxu0 %v4330_v45  ;;  %280 = vmatprep.subr.mxu1 %v4334_v46  ;;  %6414 = vst [vmem:[#allocation34_spill] sm:$0xff] %v4372_v59  ;;  %6415 = vst [vmem:[#allocation35_spill] sm:$0xff] %v4376_v60  ;;  %v4378_v61 = vld [vmem:[#allocation6 + $0x40] sm:$0xff]  ;;  %v4382_v62 = vld [vmem:[#allocation6 + $0x50] sm:$0xff] }
  0x35   :  { %210 = vmatpush1.msra.mxu0 %v4336_v47  ;;  %281 = vmatpush1.msra.mxu1 %v4340_v48  ;;  %6416 = vst [vmem:[#allocation36_spill] sm:$0xff] %v4378_v61  ;;  %6417 = vst [vmem:[#allocation37_spill] sm:$0xff] %v4382_v62  ;;  %v4384_v63 = vld [vmem:[#allocation6 + $0x38] sm:$0xff]  ;;  %v4388_v0 = vld [vmem:[#allocation6 + $0x48] sm:$0xff] }
  0x36   :  { %211 = vmatprep.subr.mxu0 %v4342_v49  ;;  %282 = vmatprep.subr.mxu1 %v4346_v50  ;;  %6418 = vst [vmem:[#allocation38_spill] sm:$0xff] %v4384_v63  ;;  %6419 = vst [vmem:[#allocation39_spill] sm:$0xff] %v4388_v0  ;;  %v4390_v1 = vld [vmem:[#allocation6 + $0x8] sm:$0xff]  ;;  %v4394_v2 = vld [vmem:[#allocation6 + $0x18] sm:$0xff] }
  0x37   :  { %212 = vmatpush1.msra.mxu0 %v4348_v51  ;;  %283 = vmatpush1.msra.mxu1 %v4352_v52  ;;  %6420 = vst [vmem:[#allocation40_spill] sm:$0xff] %v4390_v1  ;;  %6421 = vst [vmem:[#allocation41_spill] sm:$0xff] %v4394_v2  ;;  %v4396_v16 = vld [vmem:[#allocation6] sm:$0xff]  ;;  %v4400_v24 = vld [vmem:[#allocation6 + $0x10] sm:$0xff] }
  0x38   :  { %213 = vmatprep.subr.mxu0 %v4354_v53  ;;  %284 = vmatprep.subr.mxu1 %v4358_v54  ;;  %6422 = vst [vmem:[#allocation42_spill] sm:$0xff] %v4396_v16  ;;  %6423 = vst [vmem:[#allocation43_spill] sm:$0xff] %v4400_v24 }
  0x39   :  { %214 = vmatpush1.msra.mxu0 %v4360_v55  ;;  %285 = vmatpush1.msra.mxu1 %v4364_v56 }
  0x3a   :  { %215 = vmatprep.subr.mxu0 %v4366_v57  ;;  %286 = vmatprep.subr.mxu1 %v4370_v58  ;;  %v4420_v58 = vld [vmem:[#allocation6 + $0x378] sm:$0xff] }
  0x3b   :  { %216 = vmatpush1.msra.mxu0 %v4372_v59  ;;  %287 = vmatpush1.msra.mxu1 %v4376_v60  ;;  %v4404_v59 = vld [vmem:[#allocation6 + $0x370] sm:$0xff]  ;;  %6427 = vst [vmem:[#allocation47_spill] sm:$0xff] %v4420_v58  ;;  %v4422_v57 = vld [vmem:[#allocation6 + $0x338] sm:$0xff] }
  0x3c   :  { %217 = vmatprep.subr.mxu0 %v4378_v61  ;;  %288 = vmatprep.subr.mxu1 %v4382_v62  ;;  %6424 = vst [vmem:[#allocation44_spill] sm:$0xff] %v4404_v59  ;;  %v6193_v61 = vmov 0.0   ;;  %6428 = vst [vmem:[#allocation48_spill] sm:$0xff] %v4422_v57 }
  0x3d   :  { %218 = vmatpush1.msra.mxu0 %v4384_v63  ;;  %289 = vmatpush1.msra.mxu1 %v4388_v0 }
  0x3e   :  { %219 = vmatprep.subr.mxu0 %v4390_v1  ;;  %290 = vmatprep.subr.mxu1 %v4394_v2  ;;  %v4418_v2 = vld [vmem:[#allocation6 + $0x368] sm:$0xff] }
  0x3f   :  { %220 = vmatpush1.msra.mxu0 %v4396_v16  ;;  %291 = vmatpush1.msra.mxu1 %v4400_v24  ;;  %6426 = vst [vmem:[#allocation46_spill] sm:$0xff] %v4418_v2 }
  0x40   :  { %253 = vmatprep.mubr.f32.mxu0 %v6193_v61  ;;  %324 = vmatprep.mubr.f32.mxu1 %v6193_v61 }
  0x41   :  { %331 = vmatprep.subr.mxu0 %v4404_v59  ;;  %3345 = vmatprep.subr.mxu1 %v6193_v61 }
  0x99   :  { %v180_v0 = vpop.permute.xlu0 %179 }
  0x9a   :  { %v182_v63 = vmul.f32 0.0, %v180_v0  ;;  %v4428_v0 = vld [vmem:[#allocation6 + $0x340] sm:$0xff] }
  0x9b   :  { %6430 = vst [vmem:[#allocation50_spill] sm:$0xff] %v4428_v0 }
  0x9c   :  { %v183_v1 = vmul.f32 1.442695, %v182_v63  ;;  %v4426_v63 = vld [vmem:[#allocation6 + $0x330] sm:$0xff] }
  0x9d   :  { %6429 = vst [vmem:[#allocation49_spill] sm:$0xff] %v4426_v63 }
  0x9e   :  { %3637 = vpow2.f32 %v183_v1  ;;  %v4436_v1 = vld [vmem:[#allocation6 + $0x2f8] sm:$0xff] }
  0x9f   :  { %6432 = vst [vmem:[#allocation52_spill] sm:$0xff] %v4436_v1 }
  0xab   :  { %v3638_v62 = vpop.eup %3637 }
  0xac   :  { %v4413_v60 = vmul.f32 0.0, %v3638_v62  ;;  %v4432_v62 = vld [vmem:[#allocation6 + $0x300] sm:$0xff] }
  0xad   :  { %6431 = vst [vmem:[#allocation51_spill] sm:$0xff] %v4432_v62 }
  0xae   :  { %6425 = vst [vmem:[#allocation45_spill] sm:$0xff] %v4413_v60  ;;  %3639 = vtanh.f32 %v4413_v60  ;;  %v4442_v60 = vld [vmem:[#allocation6 + $0x2c8] sm:$0xff] }
  0xaf   :  { %6434 = vst [vmem:[#allocation54_spill] sm:$0xff] %v4442_v60 }
  0xbb   :  { %v3640_v16 = vpop.eup %3639 }
  0xbc   :  { %v4416_v24 = vmul.f32 0.0, %v3640_v16  ;;  %v4438_v16 = vld [vmem:[#allocation6 + $0x308] sm:$0xff] }
  0xbd   :  { %6433 = vst [vmem:[#allocation53_spill] sm:$0xff] %v4438_v16 }
  0xbe   :  { %254 = vmatmul.mubr.f32.vlgmr.msra.gmra.mxu0 %v4416_v24  ;;  %325 = vmatmul.mubr.f32.vlgmr.msra.gmra.mxu1 %v4416_v24 }
  0xbf   :  { %332 = vmatpush1.msra.mxu0 %v4418_v2  ;;  %3346 = vmatpush3.msra.mxu1 %v4420_v58  ;;  %v4446_v58 = vld [vmem:[#allocation6 + $0x2c0] sm:$0xff]  ;;  %v4448_v2 = vld [vmem:[#allocation6 + $0x2d0] sm:$0xff] }
  0xc0   :  { %333 = vmatprep.subr.mxu0 %v4422_v57  ;;  %3347 = vmatprep.subr.mxu1 %v6193_v61  ;;  %6435 = vst [vmem:[#allocation55_spill] sm:$0xff] %v4446_v58  ;;  %6436 = vst [vmem:[#allocation56_spill] sm:$0xff] %v4448_v2  ;;  %v4452_v57 = vld [vmem:[#allocation6 + $0x290] sm:$0xff] }
  0xc1   :  { %334 = vmatpush1.msra.mxu0 %v4426_v63  ;;  %3348 = vmatpush3.msra.mxu1 %v4428_v0  ;;  %6437 = vst [vmem:[#allocation57_spill] sm:$0xff] %v4452_v57  ;;  %v4456_v0 = vld [vmem:[#allocation6 + $0x288] sm:$0xff]  ;;  %v4458_v63 = vld [vmem:[#allocation6 + $0x298] sm:$0xff] }
  0xc2   :  { %335 = vmatprep.subr.mxu0 %v4432_v62  ;;  %3349 = vmatprep.subr.mxu1 %v6193_v61  ;;  %6438 = vst [vmem:[#allocation58_spill] sm:$0xff] %v4456_v0  ;;  %6439 = vst [vmem:[#allocation59_spill] sm:$0xff] %v4458_v63  ;;  %v4462_v62 = vld [vmem:[#allocation6 + $0x258] sm:$0xff] }
  0xc3   :  { %336 = vmatpush1.msra.mxu0 %v4436_v1  ;;  %3350 = vmatpush3.msra.mxu1 %v4438_v16  ;;  %6440 = vst [vmem:[#allocation60_spill] sm:$0xff] %v4462_v62  ;;  %v4466_v16 = vld [vmem:[#allocation6 + $0x250] sm:$0xff]  ;;  %v4468_v1 = vld [vmem:[#allocation6 + $0x260] sm:$0xff] }
  0xc4   :  { %337 = vmatprep.subr.mxu0 %v4442_v60  ;;  %3351 = vmatprep.subr.mxu1 %v6193_v61  ;;  %6441 = vst [vmem:[#allocation61_spill] sm:$0xff] %v4466_v16  ;;  %6442 = vst [vmem:[#allocation62_spill] sm:$0xff] %v4468_v1  ;;  %v4472_v60 = vld [vmem:[#allocation6 + $0x220] sm:$0xff] }
  0xc5   :  { %338 = vmatpush1.msra.mxu0 %v4446_v58  ;;  %3352 = vmatpush3.msra.mxu1 %v4448_v2  ;;  %6443 = vst [vmem:[#allocation63_spill] sm:$0xff] %v4472_v60  ;;  %v4476_v2 = vld [vmem:[#allocation6 + $0x218] sm:$0xff]  ;;  %v4478_v58 = vld [vmem:[#allocation6 + $0x228] sm:$0xff] }
  0xc6   :  { %339 = vmatprep.subr.mxu0 %v4452_v57  ;;  %3353 = vmatprep.subr.mxu1 %v6193_v61  ;;  %6444 = vst [vmem:[#allocation64_spill] sm:$0xff] %v4476_v2  ;;  %6445 = vst [vmem:[#allocation65_spill] sm:$0xff] %v4478_v58  ;;  %v4482_v57 = vld [vmem:[#allocation6 + $0x1e8] sm:$0xff] }
  0xc7   :  { %340 = vmatpush1.msra.mxu0 %v4456_v0  ;;  %3354 = vmatpush3.msra.mxu1 %v4458_v63  ;;  %6446 = vst [vmem:[#allocation66_spill] sm:$0xff] %v4482_v57  ;;  %v4486_v63 = vld [vmem:[#allocation6 + $0x1e0] sm:$0xff]  ;;  %v4488_v0 = vld [vmem:[#allocation6 + $0x1f0] sm:$0xff] }
  0xc8   :  { %341 = vmatprep.subr.mxu0 %v4462_v62  ;;  %3355 = vmatprep.subr.mxu1 %v6193_v61  ;;  %6447 = vst [vmem:[#allocation67_spill] sm:$0xff] %v4486_v63  ;;  %6448 = vst [vmem:[#allocation68_spill] sm:$0xff] %v4488_v0  ;;  %v4492_v62 = vld [vmem:[#allocation6 + $0x1b0] sm:$0xff] }
  0xc9   :  { %342 = vmatpush1.msra.mxu0 %v4466_v16  ;;  %3356 = vmatpush3.msra.mxu1 %v4468_v1  ;;  %6449 = vst [vmem:[#allocation69_spill] sm:$0xff] %v4492_v62  ;;  %v4496_v1 = vld [vmem:[#allocation6 + $0x1a8] sm:$0xff]  ;;  %v4498_v16 = vld [vmem:[#allocation6 + $0x1b8] sm:$0xff] }
  0xca   :  { %343 = vmatprep.subr.mxu0 %v4472_v60  ;;  %3357 = vmatprep.subr.mxu1 %v6193_v61  ;;  %6450 = vst [vmem:[#allocation70_spill] sm:$0xff] %v4496_v1  ;;  %6451 = vst [vmem:[#allocation71_spill] sm:$0xff] %v4498_v16  ;;  %v4502_v60 = vld [vmem:[#allocation6 + $0x178] sm:$0xff] }
  0xcb   :  { %344 = vmatpush1.msra.mxu0 %v4476_v2  ;;  %3358 = vmatpush3.msra.mxu1 %v4478_v58  ;;  %6452 = vst [vmem:[#allocation72_spill] sm:$0xff] %v4502_v60  ;;  %v4506_v58 = vld [vmem:[#allocation6 + $0x170] sm:$0xff]  ;;  %v4508_v2 = vld [vmem:[#allocation6 + $0x180] sm:$0xff] }
  0xcc   :  { %345 = vmatprep.subr.mxu0 %v4482_v57  ;;  %3359 = vmatprep.subr.mxu1 %v6193_v61  ;;  %6453 = vst [vmem:[#allocation73_spill] sm:$0xff] %v4506_v58  ;;  %6454 = vst [vmem:[#allocation74_spill] sm:$0xff] %v4508_v2  ;;  %v4512_v57 = vld [vmem:[#allocation6 + $0x140] sm:$0xff] }
  0xcd   :  { %346 = vmatpush1.msra.mxu0 %v4486_v63  ;;  %3360 = vmatpush3.msra.mxu1 %v4488_v0  ;;  %6455 = vst [vmem:[#allocation75_spill] sm:$0xff] %v4512_v57  ;;  %v4516_v0 = vld [vmem:[#allocation6 + $0x138] sm:$0xff]  ;;  %v4518_v63 = vld [vmem:[#allocation6 + $0x148] sm:$0xff] }
  0xce   :  { %347 = vmatprep.subr.mxu0 %v4492_v62  ;;  %3361 = vmatprep.subr.mxu1 %v6193_v61  ;;  %6456 = vst [vmem:[#allocation76_spill] sm:$0xff] %v4516_v0  ;;  %6457 = vst [vmem:[#allocation77_spill] sm:$0xff] %v4518_v63  ;;  %v4522_v62 = vld [vmem:[#allocation6 + $0x108] sm:$0xff] }
  0xcf   :  { %348 = vmatpush1.msra.mxu0 %v4496_v1  ;;  %3362 = vmatpush3.msra.mxu1 %v4498_v16  ;;  %6458 = vst [vmem:[#allocation78_spill] sm:$0xff] %v4522_v62  ;;  %v4526_v16 = vld [vmem:[#allocation6 + $0x100] sm:$0xff]  ;;  %v4528_v1 = vld [vmem:[#allocation6 + $0x110] sm:$0xff] }
  0xd0   :  { %349 = vmatprep.subr.mxu0 %v4502_v60  ;;  %3363 = vmatprep.subr.mxu1 %v6193_v61  ;;  %6459 = vst [vmem:[#allocation79_spill] sm:$0xff] %v4526_v16  ;;  %6460 = vst [vmem:[#allocation80_spill] sm:$0xff] %v4528_v1  ;;  %v4532_v60 = vld [vmem:[#allocation6 + $0xd0] sm:$0xff] }
  0xd1   :  { %350 = vmatpush1.msra.mxu0 %v4506_v58  ;;  %3364 = vmatpush3.msra.mxu1 %v4508_v2  ;;  %6461 = vst [vmem:[#allocation81_spill] sm:$0xff] %v4532_v60  ;;  %v4536_v2 = vld [vmem:[#allocation6 + $0xc8] sm:$0xff]  ;;  %v4538_v58 = vld [vmem:[#allocation6 + $0xd8] sm:$0xff] }
  0xd2   :  { %351 = vmatprep.subr.mxu0 %v4512_v57  ;;  %3365 = vmatprep.subr.mxu1 %v6193_v61  ;;  %6462 = vst [vmem:[#allocation82_spill] sm:$0xff] %v4538_v58  ;;  %v4542_v57 = vld [vmem:[#allocation6 + $0x98] sm:$0xff] }
  0xd3   :  { %352 = vmatpush1.msra.mxu0 %v4516_v0  ;;  %3366 = vmatpush3.msra.mxu1 %v4518_v63  ;;  %6463 = vst [vmem:[#allocation83_spill] sm:$0xff] %v4542_v57  ;;  %v4546_v63 = vld [vmem:[#allocation6 + $0x90] sm:$0xff]  ;;  %v4548_v0 = vld [vmem:[#allocation6 + $0xa0] sm:$0xff] }
  0xd4   :  { %353 = vmatprep.subr.mxu0 %v4522_v62  ;;  %3367 = vmatprep.subr.mxu1 %v6193_v61  ;;  %v4552_v62 = vld [vmem:[#allocation6 + $0x60] sm:$0xff] }
  0xd5   :  { %354 = vmatpush1.msra.mxu0 %v4526_v16  ;;  %3368 = vmatpush3.msra.mxu1 %v4528_v1  ;;  %v4556_v1 = vld [vmem:[#allocation6 + $0x58] sm:$0xff]  ;;  %v4558_v16 = vld [vmem:[#allocation6 + $0x68] sm:$0xff] }
  0xd6   :  { %355 = vmatprep.subr.mxu0 %v4532_v60  ;;  %3369 = vmatprep.subr.mxu1 %v6193_v61  ;;  %v4562_v60 = vld [vmem:[#allocation6 + $0x28] sm:$0xff] }
  0xd7   :  { %356 = vmatpush1.msra.mxu0 %v4536_v2  ;;  %3370 = vmatpush3.msra.mxu1 %v4538_v58  ;;  %v4566_v58 = vld [vmem:[#allocation6 + $0x20] sm:$0xff] }
  0xd8   :  { %357 = vmatprep.subr.mxu0 %v4542_v57  ;;  %3371 = vmatprep.subr.mxu1 %v6193_v61  ;;  %v4570_v57 = vld [vmem:[#allocation6 + $0x30] sm:$0xff] }
  0xd9   :  { %358 = vmatpush1.msra.mxu0 %v4546_v63  ;;  %3372 = vmatpush3.msra.mxu1 %v4548_v0 }
  0xda   :  { %359 = vmatprep.subr.mxu0 %v4552_v62  ;;  %3373 = vmatprep.subr.mxu1 %v6193_v61 }
  0xdb   :  { %360 = vmatpush1.msra.mxu0 %v4556_v1  ;;  %3374 = vmatpush3.msra.mxu1 %v4558_v16 }
  0xdc   :  { %361 = vmatprep.subr.mxu0 %v4562_v60  ;;  %3375 = vmatprep.subr.mxu1 %v6193_v61 }
  0xdd   :  { %362 = vmatpush1.msra.mxu0 %v4566_v58  ;;  %395 = vmatprep.mubr.f32.mxu0 %v6193_v61 }
  0xde   :  { %3376 = vmatpush3.msra.mxu1 %v4570_v57  ;;  %3377 = vmatprep.mubr.msk.f32.mxu1 %vm4173_vm0, %v6193_v61  ;;  %v6465_v61 = vld [vmem:[#allocation33_spill] sm:$0xff] }
  0xdf   :  { %396 = vmatmul.mubr.f32.vlgmr.msra.gmra.mxu0 %v4416_v24  ;;  %3378 = vmatmul.mubr.f32.vlgmr.msra.gmra.mxu1 %v4416_v24  ;;  %v6464_v24 = vld [vmem:[#allocation32_spill] sm:$0xff] }
  0xe0   :  { %561 = vmatprep.subr.mxu0 %v4209_v3  ;;  %632 = vmatprep.subr.mxu1 %v4211_v4 }
  0xe1   :  { %562 = vmatpush1.msra.mxu0 %v4215_v5  ;;  %633 = vmatpush1.msra.mxu1 %v4217_v6 }
  0xe2   :  { %563 = vmatprep.subr.mxu0 %v4219_v7  ;;  %634 = vmatprep.subr.mxu1 %v4223_v8 }
  0xe3   :  { %564 = vmatpush1.msra.mxu0 %v4225_v9  ;;  %635 = vmatpush1.msra.mxu1 %v4227_v10 }
  0xe4   :  { %565 = vmatprep.subr.mxu0 %v4231_v11  ;;  %636 = vmatprep.subr.mxu1 %v4233_v12 }
  0xe5   :  { %566 = vmatpush1.msra.mxu0 %v4235_v13  ;;  %637 = vmatpush1.msra.mxu1 %v4238_v14 }
  0xe6   :  { %567 = vmatprep.subr.mxu0 %v4240_v15  ;;  %638 = vmatprep.subr.mxu1 %v4247_v17 }
  0xe7   :  { %568 = vmatpush1.msra.mxu0 %v4251_v18  ;;  %639 = vmatpush1.msra.mxu1 %v4253_v19 }
  0xe8   :  { %569 = vmatprep.subr.mxu0 %v4257_v20  ;;  %640 = vmatprep.subr.mxu1 %v4259_v21 }
  0xe9   :  { %570 = vmatpush1.msra.mxu0 %v4262_v22  ;;  %641 = vmatpush1.msra.mxu1 %v4264_v23 }
  0xea   :  { %571 = vmatprep.subr.mxu0 %v4271_v25  ;;  %642 = vmatprep.subr.mxu1 %v4275_v26 }
  0xeb   :  { %572 = vmatpush1.msra.mxu0 %v4277_v27  ;;  %643 = vmatpush1.msra.mxu1 %v4281_v28 }
  0xec   :  { %573 = vmatprep.subr.mxu0 %v4283_v29  ;;  %644 = vmatprep.subr.mxu1 %v4286_v30 }
  0xed   :  { %574 = vmatpush1.msra.mxu0 %v4288_v31  ;;  %645 = vmatpush1.msra.mxu1 %v4292_v32 }
  0xee   :  { %575 = vmatprep.subr.mxu0 %v4294_v33  ;;  %646 = vmatprep.subr.mxu1 %v4298_v34 }
  0xef   :  { %576 = vmatpush1.msra.mxu0 %v4300_v35  ;;  %647 = vmatpush1.msra.mxu1 %v4304_v36 }
  0xf0   :  { %577 = vmatprep.subr.mxu0 %v4306_v37  ;;  %648 = vmatprep.subr.mxu1 %v4310_v38 }
  0xf1   :  { %578 = vmatpush1.msra.mxu0 %v4312_v39  ;;  %649 = vmatpush1.msra.mxu1 %v4316_v40 }
  0xf2   :  { %579 = vmatprep.subr.mxu0 %v4318_v41  ;;  %650 = vmatprep.subr.mxu1 %v4322_v42 }
  0xf3   :  { %580 = vmatpush1.msra.mxu0 %v4324_v43  ;;  %651 = vmatpush1.msra.mxu1 %v4328_v44 }
  0xf4   :  { %581 = vmatprep.subr.mxu0 %v4330_v45  ;;  %652 = vmatprep.subr.mxu1 %v4334_v46 }
  0xf5   :  { %582 = vmatpush1.msra.mxu0 %v4336_v47  ;;  %653 = vmatpush1.msra.mxu1 %v4340_v48  ;;  %v6466_v48 = vld [vmem:[#allocation34_spill] sm:$0xff] }
  0xf6   :  { %583 = vmatprep.subr.mxu0 %v4342_v49  ;;  %654 = vmatprep.subr.mxu1 %v4346_v50  ;;  %v6467_v49 = vld [vmem:[#allocation35_spill] sm:$0xff]  ;;  %v6468_v50 = vld [vmem:[#allocation36_spill] sm:$0xff] }
  0xf7   :  { %584 = vmatpush1.msra.mxu0 %v4348_v51  ;;  %655 = vmatpush1.msra.mxu1 %v4352_v52  ;;  %v6469_v51 = vld [vmem:[#allocation37_spill] sm:$0xff]  ;;  %v6470_v52 = vld [vmem:[#allocation38_spill] sm:$0xff] }
  0xf8   :  { %585 = vmatprep.subr.mxu0 %v4354_v53  ;;  %656 = vmatprep.subr.mxu1 %v4358_v54  ;;  %v6471_v53 = vld [vmem:[#allocation39_spill] sm:$0xff]  ;;  %v6472_v54 = vld [vmem:[#allocation40_spill] sm:$0xff] }
  0xf9   :  { %586 = vmatpush1.msra.mxu0 %v4360_v55  ;;  %657 = vmatpush1.msra.mxu1 %v4364_v56  ;;  %v6473_v55 = vld [vmem:[#allocation41_spill] sm:$0xff]  ;;  %v6474_v56 = vld [vmem:[#allocation42_spill] sm:$0xff] }
  0xfa   :  { %587 = vmatprep.subr.mxu0 %v6464_v24  ;;  %658 = vmatprep.subr.mxu1 %v6465_v61  ;;  %v6475_v24 = vld [vmem:[#allocation43_spill] sm:$0xff]  ;;  %v6476_v61 = vmov 0.0  }
  0xfb   :  { %588 = vmatpush1.msra.mxu0 %v6466_v48  ;;  %659 = vmatpush1.msra.mxu1 %v6467_v49 }
  0xfc   :  { %589 = vmatprep.subr.mxu0 %v6468_v50  ;;  %660 = vmatprep.subr.mxu1 %v6469_v51  ;;  %v170_v51 = vld [vmem:[#allocation3 + $0x10] sm:$0xff] }
  0xfd   :  { %590 = vmatpush1.msra.mxu0 %v6470_v52  ;;  %661 = vmatpush1.msra.mxu1 %v6471_v53 }
  0xfe   :  { %591 = vmatprep.subr.mxu0 %v6472_v54  ;;  %662 = vmatprep.subr.mxu1 %v6473_v55  ;;  %v168_v54 = vld [vmem:[#allocation3] sm:$0xff]  ;;  %v169_v55 = vld [vmem:[#allocation3 + $0x8] sm:$0xff] }
  0xff   :  { %592 = vmatpush1.msra.mxu0 %v6474_v56  ;;  %663 = vmatpush1.msra.mxu1 %v6475_v24 }
 0x100   :  { %625 = vmatprep.mubr.f32.mxu0 %v6476_v61  ;;  %696 = vmatprep.mubr.f32.mxu1 %v6476_v61 }
 0x101   :  { %703 = vmatprep.subr.mxu0 %v4404_v59  ;;  %3380 = vmatprep.subr.mxu1 %v6476_v61  ;;  %v3173_v59 = vld [vmem:[%s6089_s1 + $0x10] sm:$0xff] }
 0x102   :  { %924 = vperm.xlu1 %3636, %v3173_v59  }
 0x17e   :  { %v326_v52 = vpop.f32.mrf.mxu1  ;;  %v255_v53 = vpop.f32.mrf.mxu0 }
 0x17f   :  { %v474_v50 = vadd.f32 %v326_v52, %v170_v51  ;;  %v472_v56 = vadd.f32 %v255_v53, %v168_v54  ;;  %v171_v51 = vld [vmem:[#allocation3 + $0x18] sm:$0xff]  ;;  %v172_v53 = vld [vmem:[#allocation3 + $0x20] sm:$0xff]  ;;  %v174_v54 = vld [vmem:[#allocation3 + $0x30] sm:$0xff] }
 0x180   :  { %v257_v48 = vpop.f32.mrf.mxu0  ;;  %v328_v52 = vpop.f32.mrf.mxu1 }
 0x181   :  { %v3164_v49 = vmul.f32 -1.442695, %v474_v50  ;;  %v473_v47 = vadd.f32 %v257_v48, %v169_v55  ;;  %v3162_v24 = vmul.f32 -1.442695, %v472_v56  ;;  %v475_v50 = vadd.f32 %v328_v52, %v171_v51  ;;  %v173_v51 = vld [vmem:[#allocation3 + $0x28] sm:$0xff] }
 0x183   :  { %3641 = vpow2.f32 %v3164_v49  ;;  %v3163_v46 = vmul.f32 -1.442695, %v473_v47  ;;  %v3179_v49 = vld [vmem:[%s6089_s1 + $0x18] sm:$0xff] }
 0x184   :  { %3643 = vpow2.f32 %v3162_v24  ;;  %1297 = vperm.xlu1 %3636, %v3179_v49  }
 0x185   :  { %3645 = vpow2.f32 %v3163_v46  ;;  %v3191_v46 = vld [vmem:[%s6089_s1 + $0x28] sm:$0xff] }
 0x188   :  { %2043 = vperm.xlu1 %3636, %v3191_v46  }
 0x190   :  { %v3642_v45 = vpop.eup %3641 }
 0x191   :  { %v496_v44 = vadd.f32 1.0, %v3642_v45  ;;  %v3644_v47 = vpop.eup %3643  ;;  %v3165_v45 = vmul.f32 -1.442695, %v475_v50 }
 0x192   :  { %v3646_v48 = vpop.eup %3645  ;;  %v494_v55 = vadd.f32 1.0, %v3644_v47 }
 0x193   :  { %3647 = vrcp.f32 %v496_v44  ;;  %v3203_v44 = vld [vmem:[%s6089_s1 + $0x38] sm:$0xff]  ;;  %v495_v56 = vadd.f32 1.0, %v3646_v48  ;;  %s4174_s1 = smov [#allocation8]  }
 0x194   :  { %3649 = vpow2.f32 %v3165_v45  ;;  %2789 = vperm.xlu1 %3636, %v3203_v44   ;;  %s3149_s11 = sshll.u32 %s4174_s1, 4  ;;  %s3150_s11 = int_to_ptr.vmem [resolvable:$true] %s3149_s11 }
 0x195   :  { %3651 = vrcp.f32 %v494_v55  ;;  %s4141_s12 = scalar_lea.vmem %s3150_s11, 4096  ;;  %p4146_p11 = scmp.lt.s32.totalorder %s3150_s11, %s3150_s11 }
 0x196   :  { %3653 = vrcp.f32 %v495_v56  ;;  %p4142_p10 = scmp.ne.s32.totalorder %s3150_s11, %s4141_s12  ;;  %p4147_p12 = scmp.lt.s32.totalorder %s4141_s12, %s4141_s12 }
 0x198   :  { %p4148_p13 = por %p4147_p12, %p4146_p11 }
 0x19a   :  { %p4149_p0 = pnand %p4148_p13, %p4142_p10 }
 0x19f   :  { %v397_v59 = vpop.f32.mrf.mxu0  ;;  %v468_v24 = vpop.f32.mrf.mxu1 }
 0x1a0   :  { %v476_v52 = vadd.f32 %v397_v59, %v172_v53  ;;  %v478_v49 = vadd.f32 %v468_v24, %v174_v54  ;;  %v3648_v43 = vpop.eup %3647  ;;  %v6477_v24 = vld [vmem:[#allocation45_spill] sm:$0xff] }
 0x1a1   :  { %v399_v42 = vpop.f32.mrf.mxu0  ;;  %v3379_v50 = vpop.f32.mrf.mxu1  ;;  %532 = vst [vmem:[#allocation8 + $0x18] sm:$0xff] %v3648_v43 }
 0x1a2   :  { %v3166_v46 = vmul.f32 -1.442695, %v476_v52  ;;  %v511_v41 = vand.u32 2147483647, %v478_v49  ;;  %v477_v40 = vadd.f32 %v399_v42, %v173_v51  ;;  %v3650_v45 = vpop.eup %3649 }
 0x1a3   :  { %v3652_v48 = vpop.eup %3651  ;;  %v497_v38 = vadd.f32 1.0, %v3650_v45  ;;  %v510_v45 = vmax.f32 %v478_v49, 0.0 }
 0x1a4   :  { %3655 = vpow2.f32 %v3166_v46  ;;  %v512_v39 = vsub.f32 0.0, %v511_v41  ;;  %v3654_v53 = vpop.eup %3653 }
 0x1a5   :  { %3657 = vtanh.f32 %v477_v40  ;;  %v519_v55 = vmul.f32 %v3654_v53, %v6477_v24  ;;  %v552_v53 = vpop.permute.xlu0 %551 }
 0x1a6   :  { %v513_v47 = vmul.f32 1.442695, %v512_v39 }
 0x1a8   :  { %3659 = vpow2.f32 %v513_v47 }
 0x1a9   :  { %3661 = vrcp.f32 %v497_v38 }
 0x1b1   :  { %v3656_v54 = vpop.eup %3655 }
 0x1b2   :  { %v3658_v44 = vpop.eup %3657  ;;  %v498_v59 = vadd.f32 1.0, %v3656_v54 }
 0x1b3   :  { %v520_v50 = vmul.f32 %v3658_v44, %v3652_v48 }
 0x1b4   :  { %3663 = vrcp.f32 %v498_v59 }
 0x1b5   :  { %v3660_v52 = vpop.eup %3659  ;;  %v521_v42 = vadd.f32 %v520_v50, %v519_v55 }
 0x1b6   :  { %v515_v56 = vadd.f32 1.0, %v3660_v52  ;;  %v3662_v40 = vpop.eup %3661 }
 0x1b7   :  { %529 = vst [vmem:[#allocation8] sm:$0xff] %v521_v42  ;;  %v523_v51 = vmul.f32 %v3662_v40, %v3658_v44  ;;  %v6480_v40 = vld [vmem:[#allocation48_spill] sm:$0xff] }
 0x1b8   :  { %3665 = vlog2.f32 %v515_v56  ;;  %v6479_v56 = vld [vmem:[#allocation47_spill] sm:$0xff] }
 0x1c1   :  { %v3664_v39 = vpop.eup %3663 }
 0x1c2   :  { %v522_v41 = vmul.f32 0.0, %v3664_v39  ;;  %v6482_v39 = vld [vmem:[#allocation50_spill] sm:$0xff] }
 0x1c4   :  { %v4662_v46 = vadd.f32 %v523_v51, %v522_v41  ;;  %v6483_v41 = vld [vmem:[#allocation51_spill] sm:$0xff]  ;;  %v6485_v51 = vld [vmem:[#allocation53_spill] sm:$0xff] }
 0x1c5   :  { %v3666_v47 = vpop.eup %3665 }
 0x1c6   :  { %v517_v37 = vmul.f32 0.6931472, %v3666_v47  ;;  %530 = vst [vmem:[#allocation8 + $0x8] sm:$0xff] %v4662_v46  ;;  %v547_v24 = vsub.f32 %v521_v42, %v4662_v46  ;;  %v6481_v42 = vld [vmem:[#allocation49_spill] sm:$0xff]  ;;  %v6486_v47 = vld [vmem:[#allocation54_spill] sm:$0xff] }
 0x1c8   :  { %v518_v38 = vadd.f32 %v517_v37, %v510_v45  ;;  %v6478_v37 = vld [vmem:[#allocation46_spill] sm:$0xff]  ;;  %v6487_v45 = vld [vmem:[#allocation55_spill] sm:$0xff] }
 0x1ca   :  { %531 = vst [vmem:[#allocation8 + $0x10] sm:$0xff] %v518_v38  ;;  %v548_v48 = vsub.f32 0.0, %v518_v38  ;;  %v6488_v38 = vld [vmem:[#allocation56_spill] sm:$0xff] }
 0x1cc   :  { %v554_v54 = vmul.f32 %v552_v53, %v548_v48  ;;  %v6489_v48 = vld [vmem:[#allocation57_spill] sm:$0xff]  ;;  %v6490_v53 = vld [vmem:[#allocation58_spill] sm:$0xff] }
 0x1ce   :  { %v555_v59 = vmul.f32 1.442695, %v554_v54  ;;  %v6491_v54 = vld [vmem:[#allocation59_spill] sm:$0xff] }
 0x1d0   :  { %3667 = vpow2.f32 %v555_v59  ;;  %v6492_v59 = vld [vmem:[#allocation60_spill] sm:$0xff] }
 0x1dd   :  { %v3668_v55 = vpop.eup %3667 }
 0x1de   :  { %v557_v50 = vmul.f32 %v3668_v55, %v547_v24  ;;  %v6493_v24 = vld [vmem:[#allocation61_spill] sm:$0xff]  ;;  %v6494_v55 = vld [vmem:[#allocation62_spill] sm:$0xff] }
 0x1e0   :  { %v4667_v44 = vadd.f32 %v557_v50, %v4662_v46  ;;  %v6495_v50 = vld [vmem:[#allocation63_spill] sm:$0xff] }
 0x1e2   :  { %3669 = vtanh.f32 %v4667_v44 }
 0x1ef   :  { %v3670_v49 = vpop.eup %3669 }
 0x1f0   :  { %v4670_v52 = vmul.f32 %v3670_v49, %v3648_v43  ;;  %v6484_v43 = vld [vmem:[#allocation52_spill] sm:$0xff] }
 0x1f1   :  { %v6496_v49 = vld [vmem:[#allocation64_spill] sm:$0xff] }
 0x1f2   :  { %626 = vmatmul.mubr.f32.vlgmr.msra.gmra.mxu0 %v4670_v52  ;;  %697 = vmatmul.mubr.f32.vlgmr.msra.gmra.mxu1 %v4670_v52 }
 0x1f3   :  { %704 = vmatpush1.msra.mxu0 %v6478_v37  ;;  %3381 = vmatpush3.msra.mxu1 %v6479_v56 }
 0x1f4   :  { %705 = vmatprep.subr.mxu0 %v6480_v40  ;;  %3382 = vmatprep.subr.mxu1 %v6476_v61 }
 0x1f5   :  { %706 = vmatpush1.msra.mxu0 %v6481_v42  ;;  %3383 = vmatpush3.msra.mxu1 %v6482_v39 }
 0x1f6   :  { %707 = vmatprep.subr.mxu0 %v6483_v41  ;;  %3384 = vmatprep.subr.mxu1 %v6476_v61 }
 0x1f7   :  { %708 = vmatpush1.msra.mxu0 %v6484_v43  ;;  %3385 = vmatpush3.msra.mxu1 %v6485_v51 }
 0x1f8   :  { %709 = vmatprep.subr.mxu0 %v6486_v47  ;;  %3386 = vmatprep.subr.mxu1 %v6476_v61 }
 0x1f9   :  { %710 = vmatpush1.msra.mxu0 %v6487_v45  ;;  %3387 = vmatpush3.msra.mxu1 %v6488_v38  ;;  %v6498_v38 = vld [vmem:[#allocation66_spill] sm:$0xff] }
 0x1fa   :  { %711 = vmatprep.subr.mxu0 %v6489_v48  ;;  %3388 = vmatprep.subr.mxu1 %v6476_v61  ;;  %v6497_v48 = vld [vmem:[#allocation65_spill] sm:$0xff] }
 0x1fb   :  { %712 = vmatpush1.msra.mxu0 %v6490_v53  ;;  %3389 = vmatpush3.msra.mxu1 %v6491_v54  ;;  %v6499_v54 = vld [vmem:[#allocation67_spill] sm:$0xff]  ;;  %v6501_v53 = vld [vmem:[#allocation69_spill] sm:$0xff] }
 0x1fc   :  { %713 = vmatprep.subr.mxu0 %v6492_v59  ;;  %3390 = vmatprep.subr.mxu1 %v6476_v61  ;;  %v6500_v59 = vld [vmem:[#allocation68_spill] sm:$0xff] }
 0x1fd   :  { %714 = vmatpush1.msra.mxu0 %v6493_v24  ;;  %3391 = vmatpush3.msra.mxu1 %v6494_v55  ;;  %v6502_v55 = vld [vmem:[#allocation70_spill] sm:$0xff]  ;;  %v6504_v24 = vld [vmem:[#allocation72_spill] sm:$0xff] }
 0x1fe   :  { %715 = vmatprep.subr.mxu0 %v6495_v50  ;;  %3392 = vmatprep.subr.mxu1 %v6476_v61  ;;  %v6503_v50 = vld [vmem:[#allocation71_spill] sm:$0xff] }
 0x1ff   :  { %716 = vmatpush1.msra.mxu0 %v6496_v49  ;;  %3393 = vmatpush3.msra.mxu1 %v6497_v48  ;;  %v6505_v48 = vld [vmem:[#allocation73_spill] sm:$0xff]  ;;  %v6507_v49 = vld [vmem:[#allocation75_spill] sm:$0xff] }
 0x200   :  { %717 = vmatprep.subr.mxu0 %v6498_v38  ;;  %3394 = vmatprep.subr.mxu1 %v6476_v61  ;;  %v6506_v38 = vld [vmem:[#allocation74_spill] sm:$0xff] }
 0x201   :  { %718 = vmatpush1.msra.mxu0 %v6499_v54  ;;  %3395 = vmatpush3.msra.mxu1 %v6500_v59  ;;  %v6508_v59 = vld [vmem:[#allocation76_spill] sm:$0xff]  ;;  %v6510_v54 = vld [vmem:[#allocation78_spill] sm:$0xff] }
 0x202   :  { %719 = vmatprep.subr.mxu0 %v6501_v53  ;;  %3396 = vmatprep.subr.mxu1 %v6476_v61  ;;  %v6509_v53 = vld [vmem:[#allocation77_spill] sm:$0xff] }
 0x203   :  { %720 = vmatpush1.msra.mxu0 %v6502_v55  ;;  %3397 = vmatpush3.msra.mxu1 %v6503_v50  ;;  %v6511_v50 = vld [vmem:[#allocation79_spill] sm:$0xff]  ;;  %v6513_v55 = vld [vmem:[#allocation81_spill] sm:$0xff] }
 0x204   :  { %721 = vmatprep.subr.mxu0 %v6504_v24  ;;  %3398 = vmatprep.subr.mxu1 %v6476_v61  ;;  %v6512_v24 = vld [vmem:[#allocation80_spill] sm:$0xff] }
 0x205   :  { %722 = vmatpush1.msra.mxu0 %v6505_v48  ;;  %3399 = vmatpush3.msra.mxu1 %v6506_v38  ;;  %v6515_v38 = vld [vmem:[#allocation83_spill] sm:$0xff] }
 0x206   :  { %723 = vmatprep.subr.mxu0 %v6507_v49  ;;  %3400 = vmatprep.subr.mxu1 %v6476_v61  ;;  %v6514_v49 = vld [vmem:[#allocation82_spill] sm:$0xff] }
 0x207   :  { %724 = vmatpush1.msra.mxu0 %v6508_v59  ;;  %3401 = vmatpush3.msra.mxu1 %v6509_v53 }
 0x208   :  { %725 = vmatprep.subr.mxu0 %v6510_v54  ;;  %3402 = vmatprep.subr.mxu1 %v6476_v61 }
 0x209   :  { %726 = vmatpush1.msra.mxu0 %v6511_v50  ;;  %3403 = vmatpush3.msra.mxu1 %v6512_v24 }
 0x20a   :  { %727 = vmatprep.subr.mxu0 %v6513_v55  ;;  %3404 = vmatprep.subr.mxu1 %v6476_v61 }
 0x20b   :  { %728 = vmatpush1.msra.mxu0 %v4536_v2  ;;  %3405 = vmatpush3.msra.mxu1 %v6514_v49 }
 0x20c   :  { %729 = vmatprep.subr.mxu0 %v6515_v38  ;;  %3406 = vmatprep.subr.mxu1 %v6476_v61 }
 0x20d   :  { %730 = vmatpush1.msra.mxu0 %v4546_v63  ;;  %3407 = vmatpush3.msra.mxu1 %v4548_v0 }
 0x20e   :  { %731 = vmatprep.subr.mxu0 %v4552_v62  ;;  %3408 = vmatprep.subr.mxu1 %v6476_v61 }
 0x20f   :  { %732 = vmatpush1.msra.mxu0 %v4556_v1  ;;  %3409 = vmatpush3.msra.mxu1 %v4558_v16 }
 0x210   :  { %733 = vmatprep.subr.mxu0 %v4562_v60  ;;  %3410 = vmatprep.subr.mxu1 %v6476_v61 }
 0x211   :  { %734 = vmatpush1.msra.mxu0 %v4566_v58  ;;  %767 = vmatprep.mubr.f32.mxu0 %v6476_v61 }
 0x212   :  { %3411 = vmatpush3.msra.mxu1 %v4570_v57  ;;  %3412 = vmatprep.mubr.msk.f32.mxu1 %vm4173_vm0, %v6476_v61 }
 0x213   :  { %768 = vmatmul.mubr.f32.vlgmr.msra.gmra.mxu0 %v4670_v52  ;;  %3413 = vmatmul.mubr.f32.vlgmr.msra.gmra.mxu1 %v4670_v52  ;;  %v6548_v52 = vld [vmem:[#allocation44_spill] sm:$0xff] }
 0x214   :  { %934 = vmatprep.subr.mxu0 %v4209_v3  ;;  %1005 = vmatprep.subr.mxu1 %v4211_v4  ;;  %v6516_v3 = vld [vmem:[#allocation12_spill] sm:$0xff]  ;;  %v6517_v4 = vld [vmem:[#allocation13_spill] sm:$0xff] }
 0x215   :  { %935 = vmatpush1.msra.mxu0 %v4215_v5  ;;  %1006 = vmatpush1.msra.mxu1 %v4217_v6  ;;  %v6518_v5 = vld [vmem:[#allocation14_spill] sm:$0xff]  ;;  %v6519_v6 = vld [vmem:[#allocation15_spill] sm:$0xff] }
 0x216   :  { %936 = vmatprep.subr.mxu0 %v4219_v7  ;;  %1007 = vmatprep.subr.mxu1 %v4223_v8  ;;  %v6520_v7 = vld [vmem:[#allocation16_spill] sm:$0xff]  ;;  %v6521_v8 = vld [vmem:[#allocation17_spill] sm:$0xff] }
 0x217   :  { %937 = vmatpush1.msra.mxu0 %v4225_v9  ;;  %1008 = vmatpush1.msra.mxu1 %v4227_v10  ;;  %v6522_v9 = vld [vmem:[#allocation18_spill] sm:$0xff]  ;;  %v6523_v10 = vld [vmem:[#allocation19_spill] sm:$0xff] }
 0x218   :  { %938 = vmatprep.subr.mxu0 %v4231_v11  ;;  %1009 = vmatprep.subr.mxu1 %v4233_v12  ;;  %v6524_v11 = vld [vmem:[#allocation20_spill] sm:$0xff]  ;;  %v6525_v12 = vld [vmem:[#allocation21_spill] sm:$0xff] }
 0x219   :  { %939 = vmatpush1.msra.mxu0 %v4235_v13  ;;  %1010 = vmatpush1.msra.mxu1 %v4238_v14  ;;  %v6526_v13 = vld [vmem:[#allocation22_spill] sm:$0xff]  ;;  %v6527_v14 = vld [vmem:[#allocation23_spill] sm:$0xff] }
 0x21a   :  { %940 = vmatprep.subr.mxu0 %v4240_v15  ;;  %1011 = vmatprep.subr.mxu1 %v4247_v17  ;;  %v6528_v15 = vld [vmem:[#allocation24_spill] sm:$0xff]  ;;  %v6529_v17 = vld [vmem:[#allocation25_spill] sm:$0xff] }
 0x21b   :  { %941 = vmatpush1.msra.mxu0 %v4251_v18  ;;  %1012 = vmatpush1.msra.mxu1 %v4253_v19  ;;  %v6530_v18 = vld [vmem:[#allocation26_spill] sm:$0xff]  ;;  %v6531_v19 = vld [vmem:[#allocation27_spill] sm:$0xff] }
 0x21c   :  { %942 = vmatprep.subr.mxu0 %v4257_v20  ;;  %1013 = vmatprep.subr.mxu1 %v4259_v21  ;;  %v6532_v20 = vld [vmem:[#allocation28_spill] sm:$0xff]  ;;  %v6533_v21 = vld [vmem:[#allocation29_spill] sm:$0xff] }
 0x21d   :  { %943 = vmatpush1.msra.mxu0 %v4262_v22  ;;  %1014 = vmatpush1.msra.mxu1 %v4264_v23  ;;  %v6534_v22 = vld [vmem:[#allocation30_spill] sm:$0xff]  ;;  %v6535_v23 = vld [vmem:[#allocation31_spill] sm:$0xff] }
 0x21e   :  { %944 = vmatprep.subr.mxu0 %v4271_v25  ;;  %1015 = vmatprep.subr.mxu1 %v4275_v26  ;;  %v6536_v25 = vld [vmem:[#allocation32_spill] sm:$0xff]  ;;  %v6537_v26 = vld [vmem:[#allocation33_spill] sm:$0xff] }
 0x21f   :  { %945 = vmatpush1.msra.mxu0 %v4277_v27  ;;  %1016 = vmatpush1.msra.mxu1 %v4281_v28  ;;  %v6538_v27 = vld [vmem:[#allocation34_spill] sm:$0xff]  ;;  %v6539_v28 = vld [vmem:[#allocation35_spill] sm:$0xff] }
 0x220   :  { %946 = vmatprep.subr.mxu0 %v4283_v29  ;;  %1017 = vmatprep.subr.mxu1 %v4286_v30  ;;  %v6540_v29 = vld [vmem:[#allocation36_spill] sm:$0xff]  ;;  %v6541_v30 = vld [vmem:[#allocation37_spill] sm:$0xff] }
 0x221   :  { %947 = vmatpush1.msra.mxu0 %v4288_v31  ;;  %1018 = vmatpush1.msra.mxu1 %v4292_v32  ;;  %v6542_v31 = vld [vmem:[#allocation38_spill] sm:$0xff]  ;;  %v6543_v32 = vld [vmem:[#allocation39_spill] sm:$0xff] }
 0x222   :  { %948 = vmatprep.subr.mxu0 %v4294_v33  ;;  %1019 = vmatprep.subr.mxu1 %v4298_v34  ;;  %v6544_v33 = vld [vmem:[#allocation40_spill] sm:$0xff]  ;;  %v6545_v34 = vld [vmem:[#allocation41_spill] sm:$0xff] }
 0x223   :  { %949 = vmatpush1.msra.mxu0 %v4300_v35  ;;  %1020 = vmatpush1.msra.mxu1 %v4304_v36  ;;  %v6546_v35 = vld [vmem:[#allocation42_spill] sm:$0xff]  ;;  %v6547_v36 = vld [vmem:[#allocation43_spill] sm:$0xff] }
 0x224   :  { %950 = vmatprep.subr.mxu0 %v6516_v3  ;;  %1021 = vmatprep.subr.mxu1 %v6517_v4  ;;  %v542_v3 = vld [vmem:[#allocation3 + $0x48] sm:$0xff] }
 0x225   :  { %951 = vmatpush1.msra.mxu0 %v6518_v5  ;;  %1022 = vmatpush1.msra.mxu1 %v6519_v6 }
 0x226   :  { %952 = vmatprep.subr.mxu0 %v6520_v7  ;;  %1023 = vmatprep.subr.mxu1 %v6521_v8  ;;  %v540_v8 = vld [vmem:[#allocation3 + $0x38] sm:$0xff] }
 0x227   :  { %953 = vmatpush1.msra.mxu0 %v6522_v9  ;;  %1024 = vmatpush1.msra.mxu1 %v6523_v10  ;;  %v541_v9 = vld [vmem:[#allocation3 + $0x40] sm:$0xff] }
 0x228   :  { %954 = vmatprep.subr.mxu0 %v6524_v11  ;;  %1025 = vmatprep.subr.mxu1 %v6525_v12 }
 0x229   :  { %955 = vmatpush1.msra.mxu0 %v6526_v13  ;;  %1026 = vmatpush1.msra.mxu1 %v6527_v14 }
 0x22a   :  { %956 = vmatprep.subr.mxu0 %v6528_v15  ;;  %1027 = vmatprep.subr.mxu1 %v6529_v17 }
 0x22b   :  { %957 = vmatpush1.msra.mxu0 %v6530_v18  ;;  %1028 = vmatpush1.msra.mxu1 %v6531_v19  ;;  %v543_v18 = vld [vmem:[#allocation3 + $0x50] sm:$0xff] }
 0x22c   :  { %958 = vmatprep.subr.mxu0 %v6532_v20  ;;  %1029 = vmatprep.subr.mxu1 %v6533_v21 }
 0x22d   :  { %959 = vmatpush1.msra.mxu0 %v6534_v22  ;;  %1030 = vmatpush1.msra.mxu1 %v6535_v23 }
 0x22e   :  { %960 = vmatprep.subr.mxu0 %v6536_v25  ;;  %1031 = vmatprep.subr.mxu1 %v6537_v26  ;;  %v544_v25 = vld [vmem:[#allocation3 + $0x58] sm:$0xff]  ;;  %v546_v26 = vld [vmem:[#allocation3 + $0x68] sm:$0xff] }
 0x22f   :  { %961 = vmatpush1.msra.mxu0 %v6538_v27  ;;  %1032 = vmatpush1.msra.mxu1 %v6539_v28 }
 0x230   :  { %962 = vmatprep.subr.mxu0 %v6540_v29  ;;  %1033 = vmatprep.subr.mxu1 %v6541_v30 }
 0x231   :  { %963 = vmatpush1.msra.mxu0 %v6542_v31  ;;  %1034 = vmatpush1.msra.mxu1 %v6543_v32  ;;  %v545_v31 = vld [vmem:[#allocation3 + $0x60] sm:$0xff] }
 0x232   :  { %964 = vmatprep.subr.mxu0 %v6544_v33  ;;  %1035 = vmatprep.subr.mxu1 %v6545_v34 }
 0x233   :  { %965 = vmatpush1.msra.mxu0 %v6546_v35  ;;  %1036 = vmatpush1.msra.mxu1 %v6547_v36 }
 0x234   :  { %998 = vmatprep.mubr.f32.mxu0 %v6476_v61  ;;  %1069 = vmatprep.mubr.f32.mxu1 %v6476_v61 }
 0x235   :  { %1076 = vmatprep.subr.mxu0 %v6548_v52  ;;  %3415 = vmatprep.subr.mxu1 %v6476_v61 }
 0x2b2   :  { %v698_v4 = vpop.f32.mrf.mxu1  ;;  %v627_v6 = vpop.f32.mrf.mxu0 }
 0x2b3   :  { %v846_v5 = vadd.f32 %v698_v4, %v542_v3  ;;  %v844_v11 = vadd.f32 %v627_v6, %v540_v8 }
 0x2b4   :  { %v629_v10 = vpop.f32.mrf.mxu0  ;;  %v700_v19 = vpop.f32.mrf.mxu1 }
 0x2b5   :  { %v3170_v7 = vmul.f32 -1.442695, %v846_v5  ;;  %v845_v12 = vadd.f32 %v629_v10, %v541_v9  ;;  %v3168_v13 = vmul.f32 -1.442695, %v844_v11  ;;  %v847_v20 = vadd.f32 %v700_v19, %v543_v18 }
 0x2b7   :  { %3671 = vpow2.f32 %v3170_v7  ;;  %v3169_v14 = vmul.f32 -1.442695, %v845_v12  ;;  %v3171_v22 = vmul.f32 -1.442695, %v847_v20 }
 0x2b8   :  { %3673 = vpow2.f32 %v3168_v13 }
 0x2b9   :  { %3675 = vpow2.f32 %v3169_v14 }
 0x2c4   :  { %v3672_v15 = vpop.eup %3671 }
 0x2c5   :  { %v868_v17 = vadd.f32 1.0, %v3672_v15  ;;  %v3674_v21 = vpop.eup %3673 }
 0x2c6   :  { %v3676_v23 = vpop.eup %3675  ;;  %v866_v27 = vadd.f32 1.0, %v3674_v21 }
 0x2c7   :  { %3677 = vrcp.f32 %v868_v17  ;;  %v867_v28 = vadd.f32 1.0, %v3676_v23 }
 0x2c8   :  { %3679 = vpow2.f32 %v3171_v22 }
 0x2c9   :  { %3681 = vrcp.f32 %v866_v27 }
 0x2ca   :  { %3683 = vrcp.f32 %v867_v28 }
 0x2d3   :  { %v769_v29 = vpop.f32.mrf.mxu0  ;;  %v840_v30 = vpop.f32.mrf.mxu1 }
 0x2d4   :  { %v848_v32 = vadd.f32 %v769_v29, %v544_v25  ;;  %v850_v33 = vadd.f32 %v840_v30, %v546_v26  ;;  %v3678_v34 = vpop.eup %3677  ;;  %v925_v30 = vpop.permute.xlu1 %924 }
 0x2d5   :  { %v771_v35 = vpop.f32.mrf.mxu0  ;;  %v3414_v36 = vpop.f32.mrf.mxu1  ;;  %905 = vst [vmem:[#allocation8 + $0x38] sm:$0xff] %v3678_v34 }
 0x2d6   :  { %v3172_v52 = vmul.f32 -1.442695, %v848_v32  ;;  %v883_v3 = vand.u32 2147483647, %v850_v33  ;;  %v849_v4 = vadd.f32 %v771_v35, %v545_v31  ;;  %v3680_v7 = vpop.eup %3679  ;;  %v882_v27 = vmax.f32 %v850_v33, 0.0 }
 0x2d7   :  { %v3682_v8 = vpop.eup %3681  ;;  %v869_v9 = vadd.f32 1.0, %v3680_v7  ;;  %v6563_v7 = vld [vmem:[#allocation70_spill] sm:$0xff] }
 0x2d8   :  { %3685 = vpow2.f32 %v3172_v52  ;;  %v884_v5 = vsub.f32 0.0, %v883_v3  ;;  %v3684_v10 = vpop.eup %3683 }
 0x2d9   :  { %3687 = vtanh.f32 %v849_v4  ;;  %v891_v14 = vmul.f32 %v3684_v10, %v4667_v44  ;;  %v6560_v4 = vld [vmem:[#allocation67_spill] sm:$0xff]  ;;  %v6566_v10 = vld [vmem:[#allocation74_spill] sm:$0xff] }
 0x2da   :  { %v885_v6 = vmul.f32 1.442695, %v884_v5  ;;  %v6561_v5 = vld [vmem:[#allocation68_spill] sm:$0xff] }
 0x2dc   :  { %3689 = vpow2.f32 %v885_v6  ;;  %v6562_v6 = vld [vmem:[#allocation69_spill] sm:$0xff] }
 0x2dd   :  { %3691 = vrcp.f32 %v869_v9  ;;  %v6565_v9 = vld [vmem:[#allocation72_spill] sm:$0xff] }
 0x2e5   :  { %v3686_v11 = vpop.eup %3685 }
 0x2e6   :  { %v3688_v12 = vpop.eup %3687  ;;  %v870_v13 = vadd.f32 1.0, %v3686_v11  ;;  %v6567_v11 = vld [vmem:[#allocation75_spill] sm:$0xff] }
 0x2e7   :  { %v892_v15 = vmul.f32 %v3688_v12, %v3682_v8  ;;  %v6564_v8 = vld [vmem:[#allocation71_spill] sm:$0xff] }
 0x2e8   :  { %3693 = vrcp.f32 %v870_v13  ;;  %v4947_v13 = vld [vmem:[#allocation6 + $0x278] sm:$0xff] }
 0x2e9   :  { %v3690_v17 = vpop.eup %3689  ;;  %v893_v18 = vadd.f32 %v892_v15, %v891_v14  ;;  %v4950_v14 = vld [vmem:[#allocation6 + $0x238] sm:$0xff]  ;;  %v4953_v15 = vld [vmem:[#allocation6 + $0x248] sm:$0xff] }
 0x2ea   :  { %v887_v19 = vadd.f32 1.0, %v3690_v17  ;;  %v3692_v20 = vpop.eup %3691  ;;  %6568 = vst [vmem:[#allocation45_spill] sm:$0xff] %v4950_v14  ;;  %6569 = vst [vmem:[#allocation46_spill] sm:$0xff] %v4953_v15  ;;  %v4956_v17 = vld [vmem:[#allocation6 + $0x230] sm:$0xff] }
 0x2eb   :  { %902 = vst [vmem:[#allocation8 + $0x20] sm:$0xff] %v893_v18  ;;  %v895_v23 = vmul.f32 %v3692_v20, %v3688_v12  ;;  %v4944_v12 = vld [vmem:[#allocation6 + $0x268] sm:$0xff]  ;;  %6570 = vst [vmem:[#allocation47_spill] sm:$0xff] %v4956_v17  ;;  %v4965_v20 = vld [vmem:[#allocation6 + $0x210] sm:$0xff] }
 0x2ec   :  { %3695 = vlog2.f32 %v887_v19  ;;  %v4962_v19 = vld [vmem:[#allocation6 + $0x200] sm:$0xff]  ;;  %6573 = vst [vmem:[#allocation50_spill] sm:$0xff] %v4965_v20 }
 0x2ed   :  { %6572 = vst [vmem:[#allocation49_spill] sm:$0xff] %v4962_v19 }
 0x2f5   :  { %v3694_v21 = vpop.eup %3693 }
 0x2f6   :  { %v894_v22 = vmul.f32 %v3694_v21, %v4662_v46  ;;  %v4968_v21 = vld [vmem:[#allocation6 + $0x1f8] sm:$0xff] }
 0x2f7   :  { %6574 = vst [vmem:[#allocation51_spill] sm:$0xff] %v4968_v21 }
 0x2f8   :  { %v4811_v25 = vadd.f32 %v895_v23, %v894_v22  ;;  %v4971_v22 = vld [vmem:[#allocation6 + $0x208] sm:$0xff] }
 0x2f9   :  { %v3696_v26 = vpop.eup %3695  ;;  %6575 = vst [vmem:[#allocation52_spill] sm:$0xff] %v4971_v22  ;;  %v4974_v23 = vld [vmem:[#allocation6 + $0x1c8] sm:$0xff] }
 0x2fa   :  { %903 = vst [vmem:[#allocation8 + $0x28] sm:$0xff] %v4811_v25  ;;  %v889_v28 = vmul.f32 0.6931472, %v3696_v26  ;;  %v920_v35 = vsub.f32 %v893_v18, %v4811_v25  ;;  %v4959_v18 = vld [vmem:[#allocation6 + $0x240] sm:$0xff]  ;;  %6576 = vst [vmem:[#allocation53_spill] sm:$0xff] %v4974_v23  ;;  %v4977_v26 = vld [vmem:[#allocation6 + $0x1d8] sm:$0xff] }
 0x2fb   :  { %6571 = vst [vmem:[#allocation48_spill] sm:$0xff] %v4959_v18  ;;  %6577 = vst [vmem:[#allocation54_spill] sm:$0xff] %v4977_v26 }
 0x2fc   :  { %v890_v44 = vadd.f32 %v889_v28, %v882_v27  ;;  %v4980_v27 = vld [vmem:[#allocation6 + $0x1c0] sm:$0xff]  ;;  %v4983_v28 = vld [vmem:[#allocation6 + $0x1d0] sm:$0xff] }
 0x2fd   :  { %6578 = vst [vmem:[#allocation55_spill] sm:$0xff] %v4980_v27  ;;  %6579 = vst [vmem:[#allocation73_spill] sm:$0xff] %v4983_v28 }
 0x2fe   :  { %904 = vst [vmem:[#allocation8 + $0x30] sm:$0xff] %v890_v44  ;;  %v921_v29 = vsub.f32 0.0, %v890_v44  ;;  %v4986_v44 = vld [vmem:[#allocation6 + $0x190] sm:$0xff] }
 0x2ff   :  { %6580 = vst [vmem:[#allocation76_spill] sm:$0xff] %v4986_v44 }
 0x300   :  { %v927_v31 = vmul.f32 %v925_v30, %v921_v29  ;;  %v4989_v29 = vld [vmem:[#allocation6 + $0x1a0] sm:$0xff]  ;;  %v4992_v30 = vld [vmem:[#allocation6 + $0x188] sm:$0xff] }
 0x301   :  { %6581 = vst [vmem:[#allocation77_spill] sm:$0xff] %v4989_v29  ;;  %6582 = vst [vmem:[#allocation78_spill] sm:$0xff] %v4992_v30 }
 0x302   :  { %v928_v32 = vmul.f32 1.442695, %v927_v31  ;;  %v4995_v31 = vld [vmem:[#allocation6 + $0x198] sm:$0xff] }
 0x303   :  { %6583 = vst [vmem:[#allocation79_spill] sm:$0xff] %v4995_v31 }
 0x304   :  { %3697 = vpow2.f32 %v928_v32  ;;  %v4998_v32 = vld [vmem:[#allocation6 + $0x158] sm:$0xff] }
 0x305   :  { %6584 = vst [vmem:[#allocation80_spill] sm:$0xff] %v4998_v32 }
 0x311   :  { %v3698_v36 = vpop.eup %3697 }
 0x312   :  { %v930_v52 = vmul.f32 %v3698_v36, %v920_v35  ;;  %v5001_v35 = vld [vmem:[#allocation6 + $0x168] sm:$0xff]  ;;  %v5004_v36 = vld [vmem:[#allocation6 + $0x150] sm:$0xff] }
 0x313   :  { %6585 = vst [vmem:[#allocation81_spill] sm:$0xff] %v5001_v35  ;;  %6586 = vst [vmem:[#allocation82_spill] sm:$0xff] %v5004_v36 }
 0x314   :  { %v4816_v46 = vadd.f32 %v930_v52, %v4811_v25  ;;  %v5007_v52 = vld [vmem:[#allocation6 + $0x160] sm:$0xff] }
 0x315   :  { %6587 = vst [vmem:[#allocation83_spill] sm:$0xff] %v5007_v52 }
 0x316   :  { %3699 = vtanh.f32 %v4816_v46 }
 0x323   :  { %v3700_v33 = vpop.eup %3699 }
 0x324   :  { %v4819_v3 = vmul.f32 %v3700_v33, %v3678_v34  ;;  %v6559_v34 = vld [vmem:[#allocation66_spill] sm:$0xff]  ;;  %v5010_v33 = vld [vmem:[#allocation6 + $0x120] sm:$0xff] }
 0x325   :  { %6588 = vst [vmem:[#allocation12_spill] sm:$0xff] %v5010_v33 }
 0x326   :  { %999 = vmatmul.mubr.f32.vlgmr.msra.gmra.mxu0 %v4819_v3  ;;  %1070 = vmatmul.mubr.f32.vlgmr.msra.gmra.mxu1 %v4819_v3 }
 0x327   :  { %1077 = vmatpush1.msra.mxu0 %v6478_v37  ;;  %3416 = vmatpush3.msra.mxu1 %v6479_v56  ;;  %v6549_v37 = vld [vmem:[#allocation56_spill] sm:$0xff]  ;;  %v6550_v56 = vld [vmem:[#allocation57_spill] sm:$0xff] }
 0x328   :  { %1078 = vmatprep.subr.mxu0 %v6480_v40  ;;  %3417 = vmatprep.subr.mxu1 %v6476_v61  ;;  %v6551_v40 = vld [vmem:[#allocation58_spill] sm:$0xff] }
 0x329   :  { %1079 = vmatpush1.msra.mxu0 %v6481_v42  ;;  %3418 = vmatpush3.msra.mxu1 %v6482_v39  ;;  %v6552_v42 = vld [vmem:[#allocation59_spill] sm:$0xff]  ;;  %v6553_v39 = vld [vmem:[#allocation60_spill] sm:$0xff] }
 0x32a   :  { %1080 = vmatprep.subr.mxu0 %v6483_v41  ;;  %3419 = vmatprep.subr.mxu1 %v6476_v61  ;;  %v6554_v41 = vld [vmem:[#allocation61_spill] sm:$0xff] }
 0x32b   :  { %1081 = vmatpush1.msra.mxu0 %v6484_v43  ;;  %3420 = vmatpush3.msra.mxu1 %v6485_v51  ;;  %v6555_v43 = vld [vmem:[#allocation62_spill] sm:$0xff]  ;;  %v6556_v51 = vld [vmem:[#allocation63_spill] sm:$0xff] }
 0x32c   :  { %1082 = vmatprep.subr.mxu0 %v6486_v47  ;;  %3421 = vmatprep.subr.mxu1 %v6476_v61  ;;  %v6557_v47 = vld [vmem:[#allocation64_spill] sm:$0xff] }
 0x32d   :  { %1083 = vmatpush1.msra.mxu0 %v6487_v45  ;;  %3422 = vmatpush3.msra.mxu1 %v6549_v37  ;;  %v6558_v45 = vld [vmem:[#allocation65_spill] sm:$0xff]  ;;  %v5016_v37 = vld [vmem:[#allocation6 + $0x118] sm:$0xff] }
 0x32e   :  { %1084 = vmatprep.subr.mxu0 %v6550_v56  ;;  %3423 = vmatprep.subr.mxu1 %v6476_v61  ;;  %6590 = vst [vmem:[#allocation14_spill] sm:$0xff] %v5016_v37  ;;  %v5019_v56 = vld [vmem:[#allocation6 + $0x128] sm:$0xff] }
 0x32f   :  { %1085 = vmatpush1.msra.mxu0 %v6551_v40  ;;  %3424 = vmatpush3.msra.mxu1 %v6552_v42  ;;  %6591 = vst [vmem:[#allocation15_spill] sm:$0xff] %v5019_v56  ;;  %v5022_v40 = vld [vmem:[#allocation6 + $0xe8] sm:$0xff]  ;;  %v5025_v42 = vld [vmem:[#allocation6 + $0xf8] sm:$0xff] }
 0x330   :  { %1086 = vmatprep.subr.mxu0 %v6553_v39  ;;  %3425 = vmatprep.subr.mxu1 %v6476_v61  ;;  %6592 = vst [vmem:[#allocation16_spill] sm:$0xff] %v5022_v40  ;;  %6593 = vst [vmem:[#allocation17_spill] sm:$0xff] %v5025_v42  ;;  %v5028_v39 = vld [vmem:[#allocation6 + $0xe0] sm:$0xff] }
 0x331   :  { %1087 = vmatpush1.msra.mxu0 %v6554_v41  ;;  %3426 = vmatpush3.msra.mxu1 %v6555_v43  ;;  %6594 = vst [vmem:[#allocation18_spill] sm:$0xff] %v5028_v39  ;;  %v5031_v41 = vld [vmem:[#allocation6 + $0xf0] sm:$0xff] }
 0x332   :  { %1088 = vmatprep.subr.mxu0 %v6556_v51  ;;  %3427 = vmatprep.subr.mxu1 %v6476_v61  ;;  %6595 = vst [vmem:[#allocation19_spill] sm:$0xff] %v5031_v41  ;;  %v5034_v43 = vld [vmem:[#allocation6 + $0xb0] sm:$0xff]  ;;  %v5037_v51 = vld [vmem:[#allocation6 + $0xc0] sm:$0xff] }
 0x333   :  { %1089 = vmatpush1.msra.mxu0 %v6557_v47  ;;  %3428 = vmatpush3.msra.mxu1 %v6558_v45  ;;  %6596 = vst [vmem:[#allocation20_spill] sm:$0xff] %v5034_v43  ;;  %6597 = vst [vmem:[#allocation21_spill] sm:$0xff] %v5037_v51  ;;  %v5040_v47 = vld [vmem:[#allocation6 + $0xa8] sm:$0xff]  ;;  %v5043_v45 = vld [vmem:[#allocation6 + $0xb8] sm:$0xff] }
 0x334   :  { %1090 = vmatprep.subr.mxu0 %v6559_v34  ;;  %3429 = vmatprep.subr.mxu1 %v6476_v61  ;;  %6598 = vst [vmem:[#allocation22_spill] sm:$0xff] %v5040_v47  ;;  %6599 = vst [vmem:[#allocation23_spill] sm:$0xff] %v5043_v45  ;;  %v5046_v34 = vld [vmem:[#allocation6 + $0x78] sm:$0xff] }
 0x335   :  { %1091 = vmatpush1.msra.mxu0 %v6560_v4  ;;  %3430 = vmatpush3.msra.mxu1 %v6561_v5  ;;  %6600 = vst [vmem:[#allocation24_spill] sm:$0xff] %v5046_v34  ;;  %v5049_v4 = vld [vmem:[#allocation6 + $0x88] sm:$0xff]  ;;  %v5052_v5 = vld [vmem:[#allocation6 + $0x70] sm:$0xff] }
 0x336   :  { %1092 = vmatprep.subr.mxu0 %v6562_v6  ;;  %3431 = vmatprep.subr.mxu1 %v6476_v61  ;;  %6601 = vst [vmem:[#allocation25_spill] sm:$0xff] %v5049_v4  ;;  %6602 = vst [vmem:[#allocation26_spill] sm:$0xff] %v5052_v5  ;;  %v5055_v6 = vld [vmem:[#allocation6 + $0x80] sm:$0xff] }
 0x337   :  { %1093 = vmatpush1.msra.mxu0 %v6563_v7  ;;  %3432 = vmatpush3.msra.mxu1 %v6564_v8  ;;  %6603 = vst [vmem:[#allocation27_spill] sm:$0xff] %v5055_v6  ;;  %v5058_v7 = vld [vmem:[#allocation6 + $0x40] sm:$0xff]  ;;  %v5061_v8 = vld [vmem:[#allocation6 + $0x50] sm:$0xff] }
 0x338   :  { %1094 = vmatprep.subr.mxu0 %v6565_v9  ;;  %3433 = vmatprep.subr.mxu1 %v6476_v61  ;;  %6604 = vst [vmem:[#allocation28_spill] sm:$0xff] %v5058_v7  ;;  %6605 = vst [vmem:[#allocation29_spill] sm:$0xff] %v5061_v8  ;;  %v5064_v9 = vld [vmem:[#allocation6 + $0x38] sm:$0xff] }
 0x339   :  { %1095 = vmatpush1.msra.mxu0 %v6505_v48  ;;  %3434 = vmatpush3.msra.mxu1 %v6566_v10  ;;  %v4920_v48 = vld [vmem:[#allocation6 + $0x2d8] sm:$0xff]  ;;  %6606 = vst [vmem:[#allocation30_spill] sm:$0xff] %v5064_v9  ;;  %v5067_v10 = vld [vmem:[#allocation6 + $0x48] sm:$0xff] }
 0x33a   :  { %1096 = vmatprep.subr.mxu0 %v6567_v11  ;;  %3435 = vmatprep.subr.mxu1 %v6476_v61  ;;  %6607 = vst [vmem:[#allocation31_spill] sm:$0xff] %v5067_v10  ;;  %v5070_v11 = vld [vmem:[#allocation6 + $0x8] sm:$0xff] }
 0x33b   :  { %1097 = vmatpush1.msra.mxu0 %v6508_v59  ;;  %3436 = vmatpush3.msra.mxu1 %v6509_v53  ;;  %v4923_v53 = vld [vmem:[#allocation6 + $0x2e8] sm:$0xff]  ;;  %v4929_v59 = vld [vmem:[#allocation6 + $0x2b8] sm:$0xff]  ;;  %6608 = vst [vmem:[#allocation32_spill] sm:$0xff] %v5070_v11 }
 0x33c   :  { %1098 = vmatprep.subr.mxu0 %v6510_v54  ;;  %3437 = vmatprep.subr.mxu1 %v6476_v61  ;;  %v4926_v54 = vld [vmem:[#allocation6 + $0x2a8] sm:$0xff] }
 0x33d   :  { %1099 = vmatpush1.msra.mxu0 %v6511_v50  ;;  %3438 = vmatpush3.msra.mxu1 %v6512_v24  ;;  %v4932_v24 = vld [vmem:[#allocation6 + $0x2a0] sm:$0xff]  ;;  %v4938_v50 = vld [vmem:[#allocation6 + $0x270] sm:$0xff] }
 0x33e   :  { %1100 = vmatprep.subr.mxu0 %v6513_v55  ;;  %3439 = vmatprep.subr.mxu1 %v6476_v61  ;;  %v4935_v55 = vld [vmem:[#allocation6 + $0x2b0] sm:$0xff] }
 0x33f   :  { %1101 = vmatpush1.msra.mxu0 %v4536_v2  ;;  %3440 = vmatpush3.msra.mxu1 %v6514_v49  ;;  %v4890_v2 = vld [vmem:[#allocation6 + $0x350] sm:$0xff]  ;;  %v4941_v49 = vld [vmem:[#allocation6 + $0x280] sm:$0xff] }
 0x340   :  { %1102 = vmatprep.subr.mxu0 %v6515_v38  ;;  %3441 = vmatprep.subr.mxu1 %v6476_v61  ;;  %v4917_v38 = vld [vmem:[#allocation6 + $0x2f0] sm:$0xff] }
 0x341   :  { %1103 = vmatpush1.msra.mxu0 %v4546_v63  ;;  %3442 = vmatpush3.msra.mxu1 %v4548_v0  ;;  %v4902_v63 = vld [vmem:[#allocation6 + $0x318] sm:$0xff]  ;;  %v4905_v0 = vld [vmem:[#allocation6 + $0x328] sm:$0xff] }
 0x342   :  { %1104 = vmatprep.subr.mxu0 %v4552_v62  ;;  %3443 = vmatprep.subr.mxu1 %v6476_v61  ;;  %v4908_v62 = vld [vmem:[#allocation6 + $0x310] sm:$0xff] }
 0x343   :  { %1105 = vmatpush1.msra.mxu0 %v4556_v1  ;;  %3444 = vmatpush3.msra.mxu1 %v4558_v16  ;;  %v4911_v1 = vld [vmem:[#allocation6 + $0x320] sm:$0xff] }
 0x344   :  { %1106 = vmatprep.subr.mxu0 %v4562_v60  ;;  %3445 = vmatprep.subr.mxu1 %v6476_v61  ;;  %v4893_v60 = vld [vmem:[#allocation6 + $0x360] sm:$0xff] }
 0x345   :  { %1107 = vmatpush1.msra.mxu0 %v4566_v58  ;;  %1140 = vmatprep.mubr.f32.mxu0 %v6476_v61  ;;  %v4896_v58 = vld [vmem:[#allocation6 + $0x348] sm:$0xff]  ;;  %v4914_v16 = vld [vmem:[#allocation6 + $0x2e0] sm:$0xff] }
 0x346   :  { %3446 = vmatpush3.msra.mxu1 %v4570_v57  ;;  %3447 = vmatprep.mubr.msk.f32.mxu1 %vm4173_vm0, %v6476_v61  ;;  %v4899_v57 = vld [vmem:[#allocation6 + $0x358] sm:$0xff] }
 0x347   :  { %1141 = vmatmul.mubr.f32.vlgmr.msra.gmra.mxu0 %v4819_v3  ;;  %3448 = vmatmul.mubr.f32.vlgmr.msra.gmra.mxu1 %v4819_v3  ;;  %v5013_v3 = vld [vmem:[#allocation6 + $0x130] sm:$0xff] }
 0x348   :  { %1307 = vmatprep.subr.mxu0 %v4890_v2  ;;  %1378 = vmatprep.subr.mxu1 %v4893_v60  ;;  %6589 = vst [vmem:[#allocation13_spill] sm:$0xff] %v5013_v3 }
 0x349   :  { %1308 = vmatpush1.msra.mxu0 %v4896_v58  ;;  %1379 = vmatpush1.msra.mxu1 %v4899_v57 }
 0x34a   :  { %1309 = vmatprep.subr.mxu0 %v4902_v63  ;;  %1380 = vmatprep.subr.mxu1 %v4905_v0 }
 0x34b   :  { %1310 = vmatpush1.msra.mxu0 %v4908_v62  ;;  %1381 = vmatpush1.msra.mxu1 %v4911_v1 }
 0x34c   :  { %1311 = vmatprep.subr.mxu0 %v4914_v16  ;;  %1382 = vmatprep.subr.mxu1 %v4917_v38 }
 0x34d   :  { %1312 = vmatpush1.msra.mxu0 %v4920_v48  ;;  %1383 = vmatpush1.msra.mxu1 %v4923_v53 }
 0x34e   :  { %1313 = vmatprep.subr.mxu0 %v4926_v54  ;;  %1384 = vmatprep.subr.mxu1 %v4929_v59 }
 0x34f   :  { %1314 = vmatpush1.msra.mxu0 %v4932_v24  ;;  %1385 = vmatpush1.msra.mxu1 %v4935_v55 }
 0x350   :  { %1315 = vmatprep.subr.mxu0 %v4938_v50  ;;  %1386 = vmatprep.subr.mxu1 %v4941_v49 }
 0x351   :  { %1316 = vmatpush1.msra.mxu0 %v4944_v12  ;;  %1387 = vmatpush1.msra.mxu1 %v4947_v13 }
 0x352   :  { %1317 = vmatprep.subr.mxu0 %v4950_v14  ;;  %1388 = vmatprep.subr.mxu1 %v4953_v15 }
 0x353   :  { %1318 = vmatpush1.msra.mxu0 %v4956_v17  ;;  %1389 = vmatpush1.msra.mxu1 %v4959_v18 }
 0x354   :  { %1319 = vmatprep.subr.mxu0 %v4962_v19  ;;  %1390 = vmatprep.subr.mxu1 %v4965_v20 }
 0x355   :  { %1320 = vmatpush1.msra.mxu0 %v4968_v21  ;;  %1391 = vmatpush1.msra.mxu1 %v4971_v22 }
 0x356   :  { %1321 = vmatprep.subr.mxu0 %v4974_v23  ;;  %1392 = vmatprep.subr.mxu1 %v4977_v26 }
 0x357   :  { %1322 = vmatpush1.msra.mxu0 %v4980_v27  ;;  %1393 = vmatpush1.msra.mxu1 %v4983_v28 }
 0x358   :  { %1323 = vmatprep.subr.mxu0 %v4986_v44  ;;  %1394 = vmatprep.subr.mxu1 %v4989_v29 }
 0x359   :  { %1324 = vmatpush1.msra.mxu0 %v4992_v30  ;;  %1395 = vmatpush1.msra.mxu1 %v4995_v31 }
 0x35a   :  { %1325 = vmatprep.subr.mxu0 %v4998_v32  ;;  %1396 = vmatprep.subr.mxu1 %v5001_v35 }
 0x35b   :  { %1326 = vmatpush1.msra.mxu0 %v5004_v36  ;;  %1397 = vmatpush1.msra.mxu1 %v5007_v52 }
 0x35c   :  { %1327 = vmatprep.subr.mxu0 %v5010_v33  ;;  %1398 = vmatprep.subr.mxu1 %v5013_v3 }
 0x35d   :  { %1328 = vmatpush1.msra.mxu0 %v5016_v37  ;;  %1399 = vmatpush1.msra.mxu1 %v5019_v56  ;;  %v919_v37 = vld [vmem:[#allocation3 + $0xa0] sm:$0xff] }
 0x35e   :  { %1329 = vmatprep.subr.mxu0 %v5022_v40  ;;  %1400 = vmatprep.subr.mxu1 %v5025_v42 }
 0x35f   :  { %1330 = vmatpush1.msra.mxu0 %v5028_v39  ;;  %1401 = vmatpush1.msra.mxu1 %v5031_v41 }
 0x360   :  { %1331 = vmatprep.subr.mxu0 %v5034_v43  ;;  %1402 = vmatprep.subr.mxu1 %v5037_v51 }
 0x361   :  { %1332 = vmatpush1.msra.mxu0 %v5040_v47  ;;  %1403 = vmatpush1.msra.mxu1 %v5043_v45 }
 0x362   :  { %1333 = vmatprep.subr.mxu0 %v5046_v34  ;;  %1404 = vmatprep.subr.mxu1 %v5049_v4  ;;  %v914_v34 = vld [vmem:[#allocation3 + $0x78] sm:$0xff] }
 0x363   :  { %1334 = vmatpush1.msra.mxu0 %v5052_v5  ;;  %1405 = vmatpush1.msra.mxu1 %v5055_v6  ;;  %v5073_v6 = vld [vmem:[#allocation6 + $0x18] sm:$0xff] }
 0x364   :  { %1335 = vmatprep.subr.mxu0 %v5058_v7  ;;  %1406 = vmatprep.subr.mxu1 %v5061_v8  ;;  %6609 = vst [vmem:[#allocation33_spill] sm:$0xff] %v5073_v6  ;;  %v5076_v7 = vld [vmem:[#allocation6] sm:$0xff]  ;;  %v5079_v8 = vld [vmem:[#allocation6 + $0x10] sm:$0xff] }
 0x365   :  { %1336 = vmatpush1.msra.mxu0 %v5064_v9  ;;  %1407 = vmatpush1.msra.mxu1 %v5067_v10  ;;  %6610 = vst [vmem:[#allocation34_spill] sm:$0xff] %v5076_v7  ;;  %6611 = vst [vmem:[#allocation35_spill] sm:$0xff] %v5079_v8  ;;  %v5084_v10 = vld [vmem:[#allocation6 + $0x370] sm:$0xff] }
 0x366   :  { %1337 = vmatprep.subr.mxu0 %v5070_v11  ;;  %1408 = vmatprep.subr.mxu1 %v5073_v6  ;;  %6612 = vst [vmem:[#allocation36_spill] sm:$0xff] %v5084_v10  ;;  %v915_v11 = vld [vmem:[#allocation3 + $0x80] sm:$0xff] }
 0x367   :  { %1338 = vmatpush1.msra.mxu0 %v5076_v7  ;;  %1409 = vmatpush1.msra.mxu1 %v5079_v8  ;;  %v913_v7 = vld [vmem:[#allocation3 + $0x70] sm:$0xff] }
 0x368   :  { %1371 = vmatprep.mubr.f32.mxu0 %v6476_v61  ;;  %1442 = vmatprep.mubr.f32.mxu1 %v6476_v61 }
 0x369   :  { %1449 = vmatprep.subr.mxu0 %v5084_v10  ;;  %3450 = vmatprep.subr.mxu1 %v6476_v61  ;;  %v916_v10 = vld [vmem:[#allocation3 + $0x88] sm:$0xff] }
 0x3e6   :  { %v1071_v6 = vpop.f32.mrf.mxu1  ;;  %v1000_v5 = vpop.f32.mrf.mxu0 }
 0x3e7   :  { %v1219_v9 = vadd.f32 %v1071_v6, %v915_v11  ;;  %v1217_v8 = vadd.f32 %v1000_v5, %v913_v7 }
 0x3e8   :  { %v1002_v45 = vpop.f32.mrf.mxu0  ;;  %v1073_v42 = vpop.f32.mrf.mxu1 }
 0x3e9   :  { %v3176_v4 = vmul.f32 -1.442695, %v1219_v9  ;;  %v1218_v47 = vadd.f32 %v1002_v45, %v914_v34  ;;  %v3174_v51 = vmul.f32 -1.442695, %v1217_v8  ;;  %v1220_v40 = vadd.f32 %v1073_v42, %v916_v10  ;;  %v917_v9 = vld [vmem:[#allocation3 + $0x90] sm:$0xff]  ;;  %v918_v34 = vld [vmem:[#allocation3 + $0x98] sm:$0xff] }
 0x3eb   :  { %3701 = vpow2.f32 %v3176_v4  ;;  %v3175_v43 = vmul.f32 -1.442695, %v1218_v47  ;;  %v3177_v6 = vmul.f32 -1.442695, %v1220_v40 }
 0x3ec   :  { %3703 = vpow2.f32 %v3174_v51 }
 0x3ed   :  { %3705 = vpow2.f32 %v3175_v43 }
 0x3f8   :  { %v3702_v41 = vpop.eup %3701 }
 0x3f9   :  { %v1241_v39 = vadd.f32 1.0, %v3702_v41  ;;  %v3704_v56 = vpop.eup %3703 }
 0x3fa   :  { %v3706_v11 = vpop.eup %3705  ;;  %v1239_v4 = vadd.f32 1.0, %v3704_v56 }
 0x3fb   :  { %3707 = vrcp.f32 %v1241_v39  ;;  %v1240_v3 = vadd.f32 1.0, %v3706_v11 }
 0x3fc   :  { %3709 = vpow2.f32 %v3177_v6 }
 0x3fd   :  { %3711 = vrcp.f32 %v1239_v4 }
 0x3fe   :  { %3713 = vrcp.f32 %v1240_v3 }
 0x407   :  { %v1142_v5 = vpop.f32.mrf.mxu0  ;;  %v1213_v45 = vpop.f32.mrf.mxu1 }
 0x408   :  { %v1221_v47 = vadd.f32 %v1142_v5, %v917_v9  ;;  %v1223_v51 = vadd.f32 %v1213_v45, %v919_v37  ;;  %v3708_v43 = vpop.eup %3707 }
 0x409   :  { %v1144_v7 = vpop.f32.mrf.mxu0  ;;  %v3449_v41 = vpop.f32.mrf.mxu1  ;;  %1278 = vst [vmem:[#allocation8 + $0x58] sm:$0xff] %v3708_v43 }
 0x40a   :  { %v3178_v39 = vmul.f32 -1.442695, %v1221_v47  ;;  %v1256_v42 = vand.u32 2147483647, %v1223_v51  ;;  %v1222_v8 = vadd.f32 %v1144_v7, %v918_v34  ;;  %v3710_v10 = vpop.eup %3709 }
 0x40b   :  { %v3712_v6 = vpop.eup %3711  ;;  %v1242_v11 = vadd.f32 1.0, %v3710_v10 }
 0x40c   :  { %3715 = vpow2.f32 %v3178_v39  ;;  %v1257_v40 = vsub.f32 0.0, %v1256_v42  ;;  %v3714_v33 = vpop.eup %3713 }
 0x40d   :  { %3717 = vtanh.f32 %v1222_v8  ;;  %v1264_v4 = vmul.f32 %v3714_v33, %v4816_v46 }
 0x40e   :  { %v1258_v56 = vmul.f32 1.442695, %v1257_v40 }
 0x410   :  { %3719 = vpow2.f32 %v1258_v56  ;;  %v1255_v56 = vmax.f32 %v1223_v51, 0.0 }
 0x411   :  { %3721 = vrcp.f32 %v1242_v11 }
 0x419   :  { %v3716_v9 = vpop.eup %3715 }
 0x41a   :  { %v3718_v37 = vpop.eup %3717  ;;  %v1243_v5 = vadd.f32 1.0, %v3716_v9 }
 0x41b   :  { %v1265_v45 = vmul.f32 %v3718_v37, %v3712_v6  ;;  %v1298_v6 = vpop.permute.xlu1 %1297 }
 0x41c   :  { %3723 = vrcp.f32 %v1243_v5 }
 0x41d   :  { %v3720_v47 = vpop.eup %3719  ;;  %v1266_v34 = vadd.f32 %v1265_v45, %v1264_v4 }
 0x41e   :  { %v1260_v3 = vadd.f32 1.0, %v3720_v47  ;;  %v3722_v7 = vpop.eup %3721  ;;  %v5102_v47 = vld [vmem:[#allocation6 + $0x368] sm:$0xff] }
 0x41f   :  { %1275 = vst [vmem:[#allocation8 + $0x40] sm:$0xff] %v1266_v34  ;;  %v1268_v42 = vmul.f32 %v3722_v7, %v3718_v37  ;;  %v5115_v7 = vld [vmem:[#allocation6 + $0x340] sm:$0xff] }
 0x420   :  { %3725 = vlog2.f32 %v1260_v3  ;;  %v5105_v3 = vld [vmem:[#allocation6 + $0x378] sm:$0xff] }
 0x429   :  { %v3724_v41 = vpop.eup %3723 }
 0x42a   :  { %v1267_v39 = vmul.f32 %v3724_v41, %v4811_v25  ;;  %v5118_v41 = vld [vmem:[#allocation6 + $0x300] sm:$0xff] }
 0x42c   :  { %v5090_v8 = vadd.f32 %v1268_v42, %v1267_v39  ;;  %v5122_v39 = vld [vmem:[#allocation6 + $0x2f8] sm:$0xff]  ;;  %v5125_v42 = vld [vmem:[#allocation6 + $0x308] sm:$0xff] }
 0x42d   :  { %v3726_v40 = vpop.eup %3725 }
 0x42e   :  { %v1262_v10 = vmul.f32 0.6931472, %v3726_v40  ;;  %1276 = vst [vmem:[#allocation8 + $0x48] sm:$0xff] %v5090_v8  ;;  %v1293_v5 = vsub.f32 %v1266_v34, %v5090_v8  ;;  %v5108_v34 = vld [vmem:[#allocation6 + $0x338] sm:$0xff]  ;;  %v5128_v40 = vld [vmem:[#allocation6 + $0x2c8] sm:$0xff] }
 0x430   :  { %v1263_v46 = vadd.f32 %v1262_v10, %v1255_v56  ;;  %v5132_v56 = vld [vmem:[#allocation6 + $0x2c0] sm:$0xff]  ;;  %v5135_v10 = vld [vmem:[#allocation6 + $0x2d0] sm:$0xff] }
 0x432   :  { %1277 = vst [vmem:[#allocation8 + $0x50] sm:$0xff] %v1263_v46  ;;  %v1294_v33 = vsub.f32 0.0, %v1263_v46  ;;  %v5138_v46 = vld [vmem:[#allocation6 + $0x290] sm:$0xff] }
 0x434   :  { %v1300_v11 = vmul.f32 %v1298_v6, %v1294_v33  ;;  %v5142_v33 = vld [vmem:[#allocation6 + $0x288] sm:$0xff]  ;;  %v5145_v6 = vld [vmem:[#allocation6 + $0x298] sm:$0xff] }
 0x436   :  { %v1301_v9 = vmul.f32 1.442695, %v1300_v11  ;;  %v5148_v11 = vld [vmem:[#allocation6 + $0x258] sm:$0xff] }
 0x437   :  { %6613 = vst [vmem:[#allocation37_spill] sm:$0xff] %v5148_v11 }
 0x438   :  { %3727 = vpow2.f32 %v1301_v9  ;;  %v5152_v9 = vld [vmem:[#allocation6 + $0x250] sm:$0xff] }
 0x439   :  { %6614 = vst [vmem:[#allocation38_spill] sm:$0xff] %v5152_v9 }
 0x445   :  { %v3728_v4 = vpop.eup %3727 }
 0x446   :  { %v1303_v45 = vmul.f32 %v3728_v4, %v1293_v5  ;;  %v5155_v5 = vld [vmem:[#allocation6 + $0x260] sm:$0xff] }
 0x447   :  { %6615 = vst [vmem:[#allocation39_spill] sm:$0xff] %v5155_v5  ;;  %v5158_v4 = vld [vmem:[#allocation6 + $0x220] sm:$0xff] }
 0x448   :  { %v5095_v25 = vadd.f32 %v1303_v45, %v5090_v8  ;;  %6616 = vst [vmem:[#allocation40_spill] sm:$0xff] %v5158_v4  ;;  %v5162_v45 = vld [vmem:[#allocation6 + $0x218] sm:$0xff] }
 0x449   :  { %6617 = vst [vmem:[#allocation41_spill] sm:$0xff] %v5162_v45 }
 0x44a   :  { %3729 = vtanh.f32 %v5095_v25 }
 0x457   :  { %v3730_v51 = vpop.eup %3729 }
 0x458   :  { %v5098_v37 = vmul.f32 %v3730_v51, %v3708_v43  ;;  %v5112_v43 = vld [vmem:[#allocation6 + $0x330] sm:$0xff]  ;;  %v5165_v51 = vld [vmem:[#allocation6 + $0x228] sm:$0xff] }
 0x459   :  { %6618 = vst [vmem:[#allocation42_spill] sm:$0xff] %v5165_v51 }
 0x45a   :  { %1372 = vmatmul.mubr.f32.vlgmr.msra.gmra.mxu0 %v5098_v37  ;;  %1443 = vmatmul.mubr.f32.vlgmr.msra.gmra.mxu1 %v5098_v37 }
 0x45b   :  { %1450 = vmatpush1.msra.mxu0 %v5102_v47  ;;  %3451 = vmatpush3.msra.mxu1 %v5105_v3 }
 0x45c   :  { %1451 = vmatprep.subr.mxu0 %v5108_v34  ;;  %3452 = vmatprep.subr.mxu1 %v6476_v61 }
 0x45d   :  { %1452 = vmatpush1.msra.mxu0 %v5112_v43  ;;  %3453 = vmatpush3.msra.mxu1 %v5115_v7 }
 0x45e   :  { %1453 = vmatprep.subr.mxu0 %v5118_v41  ;;  %3454 = vmatprep.subr.mxu1 %v6476_v61 }
 0x45f   :  { %1454 = vmatpush1.msra.mxu0 %v5122_v39  ;;  %3455 = vmatpush3.msra.mxu1 %v5125_v42 }
 0x460   :  { %1455 = vmatprep.subr.mxu0 %v5128_v40  ;;  %3456 = vmatprep.subr.mxu1 %v6476_v61 }
 0x461   :  { %1456 = vmatpush1.msra.mxu0 %v5132_v56  ;;  %3457 = vmatpush3.msra.mxu1 %v5135_v10 }
 0x462   :  { %1457 = vmatprep.subr.mxu0 %v5138_v46  ;;  %3458 = vmatprep.subr.mxu1 %v6476_v61 }
 0x463   :  { %1458 = vmatpush1.msra.mxu0 %v5142_v33  ;;  %3459 = vmatpush3.msra.mxu1 %v5145_v6 }
 0x464   :  { %1459 = vmatprep.subr.mxu0 %v5148_v11  ;;  %3460 = vmatprep.subr.mxu1 %v6476_v61  ;;  %v5168_v11 = vld [vmem:[#allocation6 + $0x1e8] sm:$0xff] }
 0x465   :  { %1460 = vmatpush1.msra.mxu0 %v5152_v9  ;;  %3461 = vmatpush3.msra.mxu1 %v5155_v5  ;;  %6619 = vst [vmem:[#allocation43_spill] sm:$0xff] %v5168_v11  ;;  %v5172_v5 = vld [vmem:[#allocation6 + $0x1e0] sm:$0xff]  ;;  %v5178_v9 = vld [vmem:[#allocation6 + $0x1b0] sm:$0xff] }
 0x466   :  { %1461 = vmatprep.subr.mxu0 %v5158_v4  ;;  %3462 = vmatprep.subr.mxu1 %v6476_v61  ;;  %6620 = vst [vmem:[#allocation44_spill] sm:$0xff] %v5172_v5  ;;  %v5175_v4 = vld [vmem:[#allocation6 + $0x1f0] sm:$0xff]  ;;  %6622 = vst [vmem:[#allocation57_spill] sm:$0xff] %v5178_v9 }
 0x467   :  { %1462 = vmatpush1.msra.mxu0 %v5162_v45  ;;  %3463 = vmatpush3.msra.mxu1 %v5165_v51  ;;  %6621 = vst [vmem:[#allocation56_spill] sm:$0xff] %v5175_v4  ;;  %v5182_v51 = vld [vmem:[#allocation6 + $0x1a8] sm:$0xff]  ;;  %v5188_v45 = vld [vmem:[#allocation6 + $0x178] sm:$0xff] }
 0x468   :  { %1463 = vmatprep.subr.mxu0 %v5168_v11  ;;  %3464 = vmatprep.subr.mxu1 %v6476_v61  ;;  %6623 = vst [vmem:[#allocation58_spill] sm:$0xff] %v5182_v51  ;;  %v5185_v11 = vld [vmem:[#allocation6 + $0x1b8] sm:$0xff]  ;;  %6625 = vst [vmem:[#allocation60_spill] sm:$0xff] %v5188_v45 }
 0x469   :  { %1464 = vmatpush1.msra.mxu0 %v5172_v5  ;;  %3465 = vmatpush3.msra.mxu1 %v5175_v4  ;;  %6624 = vst [vmem:[#allocation59_spill] sm:$0xff] %v5185_v11  ;;  %v5192_v4 = vld [vmem:[#allocation6 + $0x170] sm:$0xff]  ;;  %v5198_v5 = vld [vmem:[#allocation6 + $0x140] sm:$0xff] }
 0x46a   :  { %1465 = vmatprep.subr.mxu0 %v5178_v9  ;;  %3466 = vmatprep.subr.mxu1 %v6476_v61  ;;  %6626 = vst [vmem:[#allocation61_spill] sm:$0xff] %v5192_v4  ;;  %v5195_v9 = vld [vmem:[#allocation6 + $0x180] sm:$0xff]  ;;  %6628 = vst [vmem:[#allocation63_spill] sm:$0xff] %v5198_v5 }
 0x46b   :  { %1466 = vmatpush1.msra.mxu0 %v5182_v51  ;;  %3467 = vmatpush3.msra.mxu1 %v5185_v11  ;;  %6627 = vst [vmem:[#allocation62_spill] sm:$0xff] %v5195_v9  ;;  %v5202_v11 = vld [vmem:[#allocation6 + $0x138] sm:$0xff]  ;;  %v5208_v51 = vld [vmem:[#allocation6 + $0x108] sm:$0xff] }
 0x46c   :  { %1467 = vmatprep.subr.mxu0 %v5188_v45  ;;  %3468 = vmatprep.subr.mxu1 %v6476_v61  ;;  %6629 = vst [vmem:[#allocation64_spill] sm:$0xff] %v5202_v11  ;;  %v5205_v45 = vld [vmem:[#allocation6 + $0x148] sm:$0xff]  ;;  %6631 = vst [vmem:[#allocation66_spill] sm:$0xff] %v5208_v51 }
 0x46d   :  { %1468 = vmatpush1.msra.mxu0 %v5192_v4  ;;  %3469 = vmatpush3.msra.mxu1 %v5195_v9  ;;  %6630 = vst [vmem:[#allocation65_spill] sm:$0xff] %v5205_v45  ;;  %v5212_v9 = vld [vmem:[#allocation6 + $0x100] sm:$0xff]  ;;  %v5218_v4 = vld [vmem:[#allocation6 + $0xd0] sm:$0xff] }
 0x46e   :  { %1469 = vmatprep.subr.mxu0 %v5198_v5  ;;  %3470 = vmatprep.subr.mxu1 %v6476_v61  ;;  %6632 = vst [vmem:[#allocation67_spill] sm:$0xff] %v5212_v9  ;;  %v5215_v5 = vld [vmem:[#allocation6 + $0x110] sm:$0xff]  ;;  %6634 = vst [vmem:[#allocation69_spill] sm:$0xff] %v5218_v4 }
 0x46f   :  { %1470 = vmatpush1.msra.mxu0 %v5202_v11  ;;  %3471 = vmatpush3.msra.mxu1 %v5205_v45  ;;  %6633 = vst [vmem:[#allocation68_spill] sm:$0xff] %v5215_v5  ;;  %v5222_v45 = vld [vmem:[#allocation6 + $0xc8] sm:$0xff]  ;;  %v5228_v11 = vld [vmem:[#allocation6 + $0x98] sm:$0xff] }
 0x470   :  { %1471 = vmatprep.subr.mxu0 %v5208_v51  ;;  %3472 = vmatprep.subr.mxu1 %v6476_v61  ;;  %6635 = vst [vmem:[#allocation70_spill] sm:$0xff] %v5222_v45  ;;  %v5225_v51 = vld [vmem:[#allocation6 + $0xd8] sm:$0xff]  ;;  %6637 = vst [vmem:[#allocation72_spill] sm:$0xff] %v5228_v11 }
 0x471   :  { %1472 = vmatpush1.msra.mxu0 %v5212_v9  ;;  %3473 = vmatpush3.msra.mxu1 %v5215_v5  ;;  %6636 = vst [vmem:[#allocation71_spill] sm:$0xff] %v5225_v51  ;;  %v5232_v5 = vld [vmem:[#allocation6 + $0x90] sm:$0xff]  ;;  %v5238_v9 = vld [vmem:[#allocation6 + $0x60] sm:$0xff] }
 0x472   :  { %1473 = vmatprep.subr.mxu0 %v5218_v4  ;;  %3474 = vmatprep.subr.mxu1 %v6476_v61  ;;  %v5235_v4 = vld [vmem:[#allocation6 + $0xa0] sm:$0xff]  ;;  %6639 = vst [vmem:[#allocation75_spill] sm:$0xff] %v5238_v9 }
 0x473   :  { %1474 = vmatpush1.msra.mxu0 %v5222_v45  ;;  %3475 = vmatpush3.msra.mxu1 %v5225_v51  ;;  %6638 = vst [vmem:[#allocation74_spill] sm:$0xff] %v5235_v4  ;;  %v5242_v51 = vld [vmem:[#allocation6 + $0x58] sm:$0xff]  ;;  %v5248_v45 = vld [vmem:[#allocation6 + $0x28] sm:$0xff] }
 0x474   :  { %1475 = vmatprep.subr.mxu0 %v5228_v11  ;;  %3476 = vmatprep.subr.mxu1 %v6476_v61  ;;  %v5245_v11 = vld [vmem:[#allocation6 + $0x68] sm:$0xff] }
 0x475   :  { %1476 = vmatpush1.msra.mxu0 %v5232_v5  ;;  %3477 = vmatpush3.msra.mxu1 %v5235_v4  ;;  %v5252_v4 = vld [vmem:[#allocation6 + $0x20] sm:$0xff] }
 0x476   :  { %1477 = vmatprep.subr.mxu0 %v5238_v9  ;;  %3478 = vmatprep.subr.mxu1 %v6476_v61  ;;  %v5256_v9 = vld [vmem:[#allocation6 + $0x30] sm:$0xff] }
 0x477   :  { %1478 = vmatpush1.msra.mxu0 %v5242_v51  ;;  %3479 = vmatpush3.msra.mxu1 %v5245_v11 }
 0x478   :  { %1479 = vmatprep.subr.mxu0 %v5248_v45  ;;  %3480 = vmatprep.subr.mxu1 %v6476_v61 }
 0x479   :  { %1480 = vmatpush1.msra.mxu0 %v5252_v4  ;;  %1513 = vmatprep.mubr.f32.mxu0 %v6476_v61 }
 0x47a   :  { %3481 = vmatpush3.msra.mxu1 %v5256_v9  ;;  %3482 = vmatprep.mubr.msk.f32.mxu1 %vm4173_vm0, %v6476_v61 }
 0x47b   :  { %1514 = vmatmul.mubr.f32.vlgmr.msra.gmra.mxu0 %v5098_v37  ;;  %3483 = vmatmul.mubr.f32.vlgmr.msra.gmra.mxu1 %v5098_v37  ;;  %v6640_v37 = vld [vmem:[#allocation12_spill] sm:$0xff] }
 0x47c   :  { %1680 = vmatprep.subr.mxu0 %v4890_v2  ;;  %1751 = vmatprep.subr.mxu1 %v4893_v60 }
 0x47d   :  { %1681 = vmatpush1.msra.mxu0 %v4896_v58  ;;  %1752 = vmatpush1.msra.mxu1 %v4899_v57 }
 0x47e   :  { %1682 = vmatprep.subr.mxu0 %v4902_v63  ;;  %1753 = vmatprep.subr.mxu1 %v4905_v0 }
 0x47f   :  { %1683 = vmatpush1.msra.mxu0 %v4908_v62  ;;  %1754 = vmatpush1.msra.mxu1 %v4911_v1 }
 0x480   :  { %1684 = vmatprep.subr.mxu0 %v4914_v16  ;;  %1755 = vmatprep.subr.mxu1 %v4917_v38 }
 0x481   :  { %1685 = vmatpush1.msra.mxu0 %v4920_v48  ;;  %1756 = vmatpush1.msra.mxu1 %v4923_v53 }
 0x482   :  { %1686 = vmatprep.subr.mxu0 %v4926_v54  ;;  %1757 = vmatprep.subr.mxu1 %v4929_v59 }
 0x483   :  { %1687 = vmatpush1.msra.mxu0 %v4932_v24  ;;  %1758 = vmatpush1.msra.mxu1 %v4935_v55 }
 0x484   :  { %1688 = vmatprep.subr.mxu0 %v4938_v50  ;;  %1759 = vmatprep.subr.mxu1 %v4941_v49 }
 0x485   :  { %1689 = vmatpush1.msra.mxu0 %v4944_v12  ;;  %1760 = vmatpush1.msra.mxu1 %v4947_v13 }
 0x486   :  { %1690 = vmatprep.subr.mxu0 %v4950_v14  ;;  %1761 = vmatprep.subr.mxu1 %v4953_v15 }
 0x487   :  { %1691 = vmatpush1.msra.mxu0 %v4956_v17  ;;  %1762 = vmatpush1.msra.mxu1 %v4959_v18  ;;  %v1292_v17 = vld [vmem:[#allocation3 + $0xd8] sm:$0xff] }
 0x488   :  { %1692 = vmatprep.subr.mxu0 %v4962_v19  ;;  %1763 = vmatprep.subr.mxu1 %v4965_v20 }
 0x489   :  { %1693 = vmatpush1.msra.mxu0 %v4968_v21  ;;  %1764 = vmatpush1.msra.mxu1 %v4971_v22 }
 0x48a   :  { %1694 = vmatprep.subr.mxu0 %v4974_v23  ;;  %1765 = vmatprep.subr.mxu1 %v4977_v26 }
 0x48b   :  { %1695 = vmatpush1.msra.mxu0 %v4980_v27  ;;  %1766 = vmatpush1.msra.mxu1 %v4983_v28  ;;  %v6641_v27 = vld [vmem:[#allocation13_spill] sm:$0xff]  ;;  %v6642_v28 = vld [vmem:[#allocation14_spill] sm:$0xff] }
 0x48c   :  { %1696 = vmatprep.subr.mxu0 %v4986_v44  ;;  %1767 = vmatprep.subr.mxu1 %v4989_v29  ;;  %v6643_v44 = vld [vmem:[#allocation15_spill] sm:$0xff]  ;;  %v6644_v29 = vld [vmem:[#allocation16_spill] sm:$0xff] }
 0x48d   :  { %1697 = vmatpush1.msra.mxu0 %v4992_v30  ;;  %1768 = vmatpush1.msra.mxu1 %v4995_v31  ;;  %v6645_v30 = vld [vmem:[#allocation17_spill] sm:$0xff]  ;;  %v6646_v31 = vld [vmem:[#allocation18_spill] sm:$0xff] }
 0x48e   :  { %1698 = vmatprep.subr.mxu0 %v4998_v32  ;;  %1769 = vmatprep.subr.mxu1 %v5001_v35  ;;  %v6647_v32 = vld [vmem:[#allocation19_spill] sm:$0xff]  ;;  %v6648_v35 = vld [vmem:[#allocation20_spill] sm:$0xff] }
 0x48f   :  { %1699 = vmatpush1.msra.mxu0 %v5004_v36  ;;  %1770 = vmatpush1.msra.mxu1 %v5007_v52  ;;  %v6649_v36 = vld [vmem:[#allocation21_spill] sm:$0xff]  ;;  %v6650_v52 = vld [vmem:[#allocation22_spill] sm:$0xff] }
 0x490   :  { %1700 = vmatprep.subr.mxu0 %v6640_v37  ;;  %1771 = vmatprep.subr.mxu1 %v6641_v27  ;;  %v6651_v37 = vld [vmem:[#allocation23_spill] sm:$0xff]  ;;  %v6652_v27 = vld [vmem:[#allocation24_spill] sm:$0xff] }
 0x491   :  { %1701 = vmatpush1.msra.mxu0 %v6642_v28  ;;  %1772 = vmatpush1.msra.mxu1 %v6643_v44  ;;  %v6653_v28 = vld [vmem:[#allocation25_spill] sm:$0xff]  ;;  %v6654_v44 = vld [vmem:[#allocation26_spill] sm:$0xff] }
 0x492   :  { %1702 = vmatprep.subr.mxu0 %v6644_v29  ;;  %1773 = vmatprep.subr.mxu1 %v6645_v30  ;;  %v6655_v29 = vld [vmem:[#allocation27_spill] sm:$0xff]  ;;  %v6656_v30 = vld [vmem:[#allocation28_spill] sm:$0xff] }
 0x493   :  { %1703 = vmatpush1.msra.mxu0 %v6646_v31  ;;  %1774 = vmatpush1.msra.mxu1 %v6647_v32  ;;  %v6657_v31 = vld [vmem:[#allocation29_spill] sm:$0xff]  ;;  %v6658_v32 = vld [vmem:[#allocation30_spill] sm:$0xff] }
 0x494   :  { %1704 = vmatprep.subr.mxu0 %v6648_v35  ;;  %1775 = vmatprep.subr.mxu1 %v6649_v36  ;;  %v6659_v35 = vld [vmem:[#allocation31_spill] sm:$0xff]  ;;  %v6660_v36 = vld [vmem:[#allocation32_spill] sm:$0xff] }
 0x495   :  { %1705 = vmatpush1.msra.mxu0 %v6650_v52  ;;  %1776 = vmatpush1.msra.mxu1 %v6651_v37  ;;  %v6661_v52 = vld [vmem:[#allocation33_spill] sm:$0xff]  ;;  %v6662_v37 = vld [vmem:[#allocation34_spill] sm:$0xff] }
 0x496   :  { %1706 = vmatprep.subr.mxu0 %v6652_v27  ;;  %1777 = vmatprep.subr.mxu1 %v6653_v28  ;;  %v6663_v27 = vld [vmem:[#allocation35_spill] sm:$0xff] }
 0x497   :  { %1707 = vmatpush1.msra.mxu0 %v6654_v44  ;;  %1778 = vmatpush1.msra.mxu1 %v6655_v29  ;;  %v6664_v29 = vld [vmem:[#allocation36_spill] sm:$0xff] }
 0x498   :  { %1708 = vmatprep.subr.mxu0 %v6656_v30  ;;  %1779 = vmatprep.subr.mxu1 %v6657_v31  ;;  %v1288_v31 = vld [vmem:[#allocation3 + $0xb8] sm:$0xff] }
 0x499   :  { %1709 = vmatpush1.msra.mxu0 %v6658_v32  ;;  %1780 = vmatpush1.msra.mxu1 %v6659_v35 }
 0x49a   :  { %1710 = vmatprep.subr.mxu0 %v6660_v36  ;;  %1781 = vmatprep.subr.mxu1 %v6661_v52  ;;  %v1286_v36 = vld [vmem:[#allocation3 + $0xa8] sm:$0xff]  ;;  %v1287_v52 = vld [vmem:[#allocation3 + $0xb0] sm:$0xff] }
 0x49b   :  { %1711 = vmatpush1.msra.mxu0 %v6662_v37  ;;  %1782 = vmatpush1.msra.mxu1 %v6663_v27 }
 0x49c   :  { %1744 = vmatprep.mubr.f32.mxu0 %v6476_v61  ;;  %1815 = vmatprep.mubr.f32.mxu1 %v6476_v61 }
 0x49d   :  { %1822 = vmatprep.subr.mxu0 %v6664_v29  ;;  %3485 = vmatprep.subr.mxu1 %v6476_v61  ;;  %v1289_v29 = vld [vmem:[#allocation3 + $0xc0] sm:$0xff] }
 0x51a   :  { %v1444_v32 = vpop.f32.mrf.mxu1  ;;  %v1373_v35 = vpop.f32.mrf.mxu0 }
 0x51b   :  { %v1592_v30 = vadd.f32 %v1444_v32, %v1288_v31  ;;  %v1590_v37 = vadd.f32 %v1373_v35, %v1286_v36  ;;  %v1291_v36 = vld [vmem:[#allocation3 + $0xd0] sm:$0xff] }
 0x51c   :  { %v1375_v28 = vpop.f32.mrf.mxu0  ;;  %v1446_v20 = vpop.f32.mrf.mxu1 }
 0x51d   :  { %v3182_v44 = vmul.f32 -1.442695, %v1592_v30  ;;  %v1591_v26 = vadd.f32 %v1375_v28, %v1287_v52  ;;  %v3180_v27 = vmul.f32 -1.442695, %v1590_v37  ;;  %v1593_v19 = vadd.f32 %v1446_v20, %v1289_v29  ;;  %v1290_v30 = vld [vmem:[#allocation3 + $0xc8] sm:$0xff] }
 0x51f   :  { %3731 = vpow2.f32 %v3182_v44  ;;  %v3181_v23 = vmul.f32 -1.442695, %v1591_v26  ;;  %v3183_v31 = vmul.f32 -1.442695, %v1593_v19 }
 0x520   :  { %3733 = vpow2.f32 %v3180_v27 }
 0x521   :  { %3735 = vpow2.f32 %v3181_v23 }
 0x52c   :  { %v3732_v22 = vpop.eup %3731 }
 0x52d   :  { %v1614_v21 = vadd.f32 1.0, %v3732_v22  ;;  %v3734_v18 = vpop.eup %3733 }
 0x52e   :  { %v3736_v32 = vpop.eup %3735  ;;  %v1612_v44 = vadd.f32 1.0, %v3734_v18 }
 0x52f   :  { %3737 = vrcp.f32 %v1614_v21  ;;  %v1613_v15 = vadd.f32 1.0, %v3736_v32 }
 0x530   :  { %3739 = vpow2.f32 %v3183_v31 }
 0x531   :  { %3741 = vrcp.f32 %v1612_v44 }
 0x532   :  { %3743 = vrcp.f32 %v1613_v15 }
 0x53b   :  { %v1515_v35 = vpop.f32.mrf.mxu0  ;;  %v1586_v28 = vpop.f32.mrf.mxu1 }
 0x53c   :  { %v1594_v26 = vadd.f32 %v1515_v35, %v1290_v30  ;;  %v1596_v27 = vadd.f32 %v1586_v28, %v1292_v17  ;;  %v3738_v23 = vpop.eup %3737 }
 0x53d   :  { %v1517_v52 = vpop.f32.mrf.mxu0  ;;  %v3484_v22 = vpop.f32.mrf.mxu1  ;;  %1651 = vst [vmem:[#allocation8 + $0x78] sm:$0xff] %v3738_v23 }
 0x53e   :  { %v3184_v21 = vmul.f32 -1.442695, %v1594_v26  ;;  %v1629_v20 = vand.u32 2147483647, %v1596_v27  ;;  %v1595_v29 = vadd.f32 %v1517_v52, %v1291_v36  ;;  %v3740_v37 = vpop.eup %3739 }
 0x53f   :  { %v3742_v31 = vpop.eup %3741  ;;  %v1615_v32 = vadd.f32 1.0, %v3740_v37 }
 0x540   :  { %3745 = vpow2.f32 %v3184_v21  ;;  %v1630_v19 = vsub.f32 0.0, %v1629_v20  ;;  %v3744_v14 = vpop.eup %3743 }
 0x541   :  { %3747 = vtanh.f32 %v1595_v29  ;;  %v1637_v44 = vmul.f32 %v3744_v14, %v5095_v25 }
 0x542   :  { %v1631_v18 = vmul.f32 1.442695, %v1630_v19 }
 0x544   :  { %3749 = vpow2.f32 %v1631_v18  ;;  %v1628_v18 = vmax.f32 %v1596_v27, 0.0 }
 0x545   :  { %3751 = vrcp.f32 %v1615_v32 }
 0x54d   :  { %v3746_v30 = vpop.eup %3745 }
 0x54e   :  { %v3748_v17 = vpop.eup %3747  ;;  %v1616_v35 = vadd.f32 1.0, %v3746_v30 }
 0x54f   :  { %v1638_v28 = vmul.f32 %v3748_v17, %v3742_v31  ;;  %v1671_v31 = vpop.permute.xlu0 %1670 }
 0x550   :  { %3753 = vrcp.f32 %v1616_v35 }
 0x551   :  { %v3750_v26 = vpop.eup %3749  ;;  %v1639_v36 = vadd.f32 %v1638_v28, %v1637_v44 }
 0x552   :  { %v1633_v15 = vadd.f32 1.0, %v3750_v26  ;;  %v3752_v52 = vpop.eup %3751  ;;  %v6666_v26 = vld [vmem:[#allocation38_spill] sm:$0xff] }
 0x553   :  { %1648 = vst [vmem:[#allocation8 + $0x60] sm:$0xff] %v1639_v36  ;;  %v1641_v20 = vmul.f32 %v3752_v52, %v3748_v17  ;;  %v6669_v52 = vld [vmem:[#allocation41_spill] sm:$0xff] }
 0x554   :  { %3755 = vlog2.f32 %v1633_v15  ;;  %v6668_v15 = vld [vmem:[#allocation40_spill] sm:$0xff] }
 0x55d   :  { %v3754_v22 = vpop.eup %3753 }
 0x55e   :  { %v1640_v21 = vmul.f32 %v3754_v22, %v5090_v8  ;;  %v6670_v22 = vld [vmem:[#allocation42_spill] sm:$0xff] }
 0x560   :  { %v5333_v29 = vadd.f32 %v1641_v20, %v1640_v21  ;;  %v6671_v21 = vld [vmem:[#allocation43_spill] sm:$0xff]  ;;  %v6672_v20 = vld [vmem:[#allocation44_spill] sm:$0xff] }
 0x561   :  { %v3756_v19 = vpop.eup %3755 }
 0x562   :  { %v1635_v37 = vmul.f32 0.6931472, %v3756_v19  ;;  %1649 = vst [vmem:[#allocation8 + $0x68] sm:$0xff] %v5333_v29  ;;  %v1666_v35 = vsub.f32 %v1639_v36, %v5333_v29  ;;  %v6667_v36 = vld [vmem:[#allocation39_spill] sm:$0xff]  ;;  %v6673_v19 = vld [vmem:[#allocation56_spill] sm:$0xff] }
 0x564   :  { %v1636_v14 = vadd.f32 %v1635_v37, %v1628_v18  ;;  %v6674_v18 = vld [vmem:[#allocation57_spill] sm:$0xff]  ;;  %v6675_v37 = vld [vmem:[#allocation58_spill] sm:$0xff] }
 0x566   :  { %1650 = vst [vmem:[#allocation8 + $0x70] sm:$0xff] %v1636_v14  ;;  %v1667_v25 = vsub.f32 0.0, %v1636_v14  ;;  %v6676_v14 = vld [vmem:[#allocation59_spill] sm:$0xff] }
 0x568   :  { %v1673_v32 = vmul.f32 %v1671_v31, %v1667_v25  ;;  %v6677_v25 = vld [vmem:[#allocation60_spill] sm:$0xff]  ;;  %v6678_v31 = vld [vmem:[#allocation61_spill] sm:$0xff] }
 0x56a   :  { %v1674_v30 = vmul.f32 1.442695, %v1673_v32  ;;  %v6679_v32 = vld [vmem:[#allocation62_spill] sm:$0xff] }
 0x56c   :  { %3757 = vpow2.f32 %v1674_v30  ;;  %v6680_v30 = vld [vmem:[#allocation63_spill] sm:$0xff] }
 0x579   :  { %v3758_v44 = vpop.eup %3757 }
 0x57a   :  { %v1676_v28 = vmul.f32 %v3758_v44, %v1666_v35  ;;  %v6681_v35 = vld [vmem:[#allocation64_spill] sm:$0xff]  ;;  %v6682_v44 = vld [vmem:[#allocation65_spill] sm:$0xff] }
 0x57c   :  { %v5338_v8 = vadd.f32 %v1676_v28, %v5333_v29  ;;  %v6683_v28 = vld [vmem:[#allocation66_spill] sm:$0xff] }
 0x57e   :  { %3759 = vtanh.f32 %v5338_v8 }
 0x58b   :  { %v3760_v27 = vpop.eup %3759 }
 0x58c   :  { %v5341_v17 = vmul.f32 %v3760_v27, %v3738_v23  ;;  %v6665_v23 = vld [vmem:[#allocation37_spill] sm:$0xff]  ;;  %v6684_v27 = vld [vmem:[#allocation67_spill] sm:$0xff] }
 0x58e   :  { %1745 = vmatmul.mubr.f32.vlgmr.msra.gmra.mxu0 %v5341_v17  ;;  %1816 = vmatmul.mubr.f32.vlgmr.msra.gmra.mxu1 %v5341_v17 }
 0x58f   :  { %1823 = vmatpush1.msra.mxu0 %v5102_v47  ;;  %3486 = vmatpush3.msra.mxu1 %v5105_v3 }
 0x590   :  { %1824 = vmatprep.subr.mxu0 %v5108_v34  ;;  %3487 = vmatprep.subr.mxu1 %v6476_v61 }
 0x591   :  { %1825 = vmatpush1.msra.mxu0 %v5112_v43  ;;  %3488 = vmatpush3.msra.mxu1 %v5115_v7 }
 0x592   :  { %1826 = vmatprep.subr.mxu0 %v5118_v41  ;;  %3489 = vmatprep.subr.mxu1 %v6476_v61 }
 0x593   :  { %1827 = vmatpush1.msra.mxu0 %v5122_v39  ;;  %3490 = vmatpush3.msra.mxu1 %v5125_v42 }
 0x594   :  { %1828 = vmatprep.subr.mxu0 %v5128_v40  ;;  %3491 = vmatprep.subr.mxu1 %v6476_v61 }
 0x595   :  { %1829 = vmatpush1.msra.mxu0 %v5132_v56  ;;  %3492 = vmatpush3.msra.mxu1 %v5135_v10 }
 0x596   :  { %1830 = vmatprep.subr.mxu0 %v5138_v46  ;;  %3493 = vmatprep.subr.mxu1 %v6476_v61 }
 0x597   :  { %1831 = vmatpush1.msra.mxu0 %v5142_v33  ;;  %3494 = vmatpush3.msra.mxu1 %v5145_v6 }
 0x598   :  { %1832 = vmatprep.subr.mxu0 %v6665_v23  ;;  %3495 = vmatprep.subr.mxu1 %v6476_v61 }
 0x599   :  { %1833 = vmatpush1.msra.mxu0 %v6666_v26  ;;  %3496 = vmatpush3.msra.mxu1 %v6667_v36 }
 0x59a   :  { %1834 = vmatprep.subr.mxu0 %v6668_v15  ;;  %3497 = vmatprep.subr.mxu1 %v6476_v61 }
 0x59b   :  { %1835 = vmatpush1.msra.mxu0 %v6669_v52  ;;  %3498 = vmatpush3.msra.mxu1 %v6670_v22 }
 0x59c   :  { %1836 = vmatprep.subr.mxu0 %v6671_v21  ;;  %3499 = vmatprep.subr.mxu1 %v6476_v61 }
 0x59d   :  { %1837 = vmatpush1.msra.mxu0 %v6672_v20  ;;  %3500 = vmatpush3.msra.mxu1 %v6673_v19 }
 0x59e   :  { %1838 = vmatprep.subr.mxu0 %v6674_v18  ;;  %3501 = vmatprep.subr.mxu1 %v6476_v61 }
 0x59f   :  { %1839 = vmatpush1.msra.mxu0 %v6675_v37  ;;  %3502 = vmatpush3.msra.mxu1 %v6676_v14  ;;  %v6686_v14 = vld [vmem:[#allocation69_spill] sm:$0xff] }
 0x5a0   :  { %1840 = vmatprep.subr.mxu0 %v6677_v25  ;;  %3503 = vmatprep.subr.mxu1 %v6476_v61  ;;  %v6685_v25 = vld [vmem:[#allocation68_spill] sm:$0xff] }
 0x5a1   :  { %1841 = vmatpush1.msra.mxu0 %v6678_v31  ;;  %3504 = vmatpush3.msra.mxu1 %v6679_v32  ;;  %v6687_v32 = vld [vmem:[#allocation70_spill] sm:$0xff]  ;;  %v6689_v31 = vld [vmem:[#allocation72_spill] sm:$0xff] }
 0x5a2   :  { %1842 = vmatprep.subr.mxu0 %v6680_v30  ;;  %3505 = vmatprep.subr.mxu1 %v6476_v61  ;;  %v6688_v30 = vld [vmem:[#allocation71_spill] sm:$0xff] }
 0x5a3   :  { %1843 = vmatpush1.msra.mxu0 %v6681_v35  ;;  %3506 = vmatpush3.msra.mxu1 %v6682_v44  ;;  %v6691_v44 = vld [vmem:[#allocation75_spill] sm:$0xff] }
 0x5a4   :  { %1844 = vmatprep.subr.mxu0 %v6683_v28  ;;  %3507 = vmatprep.subr.mxu1 %v6476_v61  ;;  %v6690_v28 = vld [vmem:[#allocation74_spill] sm:$0xff] }
 0x5a5   :  { %1845 = vmatpush1.msra.mxu0 %v6684_v27  ;;  %3508 = vmatpush3.msra.mxu1 %v6685_v25 }
 0x5a6   :  { %1846 = vmatprep.subr.mxu0 %v6686_v14  ;;  %3509 = vmatprep.subr.mxu1 %v6476_v61 }
 0x5a7   :  { %1847 = vmatpush1.msra.mxu0 %v6687_v32  ;;  %3510 = vmatpush3.msra.mxu1 %v6688_v30 }
 0x5a8   :  { %1848 = vmatprep.subr.mxu0 %v6689_v31  ;;  %3511 = vmatprep.subr.mxu1 %v6476_v61 }
 0x5a9   :  { %1849 = vmatpush1.msra.mxu0 %v5232_v5  ;;  %3512 = vmatpush3.msra.mxu1 %v6690_v28 }
 0x5aa   :  { %1850 = vmatprep.subr.mxu0 %v6691_v44  ;;  %3513 = vmatprep.subr.mxu1 %v6476_v61 }
 0x5ab   :  { %1851 = vmatpush1.msra.mxu0 %v5242_v51  ;;  %3514 = vmatpush3.msra.mxu1 %v5245_v11 }
 0x5ac   :  { %1852 = vmatprep.subr.mxu0 %v5248_v45  ;;  %3515 = vmatprep.subr.mxu1 %v6476_v61 }
 0x5ad   :  { %1853 = vmatpush1.msra.mxu0 %v5252_v4  ;;  %1886 = vmatprep.mubr.f32.mxu0 %v6476_v61 }
 0x5ae   :  { %3516 = vmatpush3.msra.mxu1 %v5256_v9  ;;  %3517 = vmatprep.mubr.msk.f32.mxu1 %vm4173_vm0, %v6476_v61 }
 0x5af   :  { %1887 = vmatmul.mubr.f32.vlgmr.msra.gmra.mxu0 %v5341_v17  ;;  %3518 = vmatmul.mubr.f32.vlgmr.msra.gmra.mxu1 %v5341_v17  ;;  %v6712_v17 = vld [vmem:[#allocation12_spill] sm:$0xff] }
 0x5b0   :  { %2053 = vmatprep.subr.mxu0 %v4890_v2  ;;  %2124 = vmatprep.subr.mxu1 %v4893_v60  ;;  %v6692_v2 = vld [vmem:[#allocation45_spill] sm:$0xff]  ;;  %v6693_v60 = vld [vmem:[#allocation46_spill] sm:$0xff] }
 0x5b1   :  { %2054 = vmatpush1.msra.mxu0 %v4896_v58  ;;  %2125 = vmatpush1.msra.mxu1 %v4899_v57  ;;  %v6694_v58 = vld [vmem:[#allocation47_spill] sm:$0xff]  ;;  %v6695_v57 = vld [vmem:[#allocation48_spill] sm:$0xff] }
 0x5b2   :  { %2055 = vmatprep.subr.mxu0 %v4902_v63  ;;  %2126 = vmatprep.subr.mxu1 %v4905_v0  ;;  %v6696_v63 = vld [vmem:[#allocation49_spill] sm:$0xff]  ;;  %v6697_v0 = vld [vmem:[#allocation50_spill] sm:$0xff] }
 0x5b3   :  { %2056 = vmatpush1.msra.mxu0 %v4908_v62  ;;  %2127 = vmatpush1.msra.mxu1 %v4911_v1  ;;  %v6698_v62 = vld [vmem:[#allocation51_spill] sm:$0xff]  ;;  %v6699_v1 = vld [vmem:[#allocation52_spill] sm:$0xff] }
 0x5b4   :  { %2057 = vmatprep.subr.mxu0 %v4914_v16  ;;  %2128 = vmatprep.subr.mxu1 %v4917_v38  ;;  %v6700_v16 = vld [vmem:[#allocation53_spill] sm:$0xff]  ;;  %v6701_v38 = vld [vmem:[#allocation54_spill] sm:$0xff] }
 0x5b5   :  { %2058 = vmatpush1.msra.mxu0 %v4920_v48  ;;  %2129 = vmatpush1.msra.mxu1 %v4923_v53  ;;  %v6702_v48 = vld [vmem:[#allocation55_spill] sm:$0xff]  ;;  %v6703_v53 = vld [vmem:[#allocation73_spill] sm:$0xff] }
 0x5b6   :  { %2059 = vmatprep.subr.mxu0 %v4926_v54  ;;  %2130 = vmatprep.subr.mxu1 %v4929_v59  ;;  %v6704_v54 = vld [vmem:[#allocation76_spill] sm:$0xff]  ;;  %v6705_v59 = vld [vmem:[#allocation77_spill] sm:$0xff] }
 0x5b7   :  { %2060 = vmatpush1.msra.mxu0 %v4932_v24  ;;  %2131 = vmatpush1.msra.mxu1 %v4935_v55  ;;  %v6706_v24 = vld [vmem:[#allocation78_spill] sm:$0xff]  ;;  %v6707_v55 = vld [vmem:[#allocation79_spill] sm:$0xff] }
 0x5b8   :  { %2061 = vmatprep.subr.mxu0 %v4938_v50  ;;  %2132 = vmatprep.subr.mxu1 %v4941_v49  ;;  %v6708_v50 = vld [vmem:[#allocation80_spill] sm:$0xff]  ;;  %v6709_v49 = vld [vmem:[#allocation81_spill] sm:$0xff] }
 0x5b9   :  { %2062 = vmatpush1.msra.mxu0 %v4944_v12  ;;  %2133 = vmatpush1.msra.mxu1 %v4947_v13  ;;  %v6710_v12 = vld [vmem:[#allocation82_spill] sm:$0xff]  ;;  %v6711_v13 = vld [vmem:[#allocation83_spill] sm:$0xff] }
 0x5ba   :  { %2063 = vmatprep.subr.mxu0 %v6692_v2  ;;  %2134 = vmatprep.subr.mxu1 %v6693_v60  ;;  %v6713_v2 = vld [vmem:[#allocation13_spill] sm:$0xff]  ;;  %v6714_v60 = vld [vmem:[#allocation14_spill] sm:$0xff] }
 0x5bb   :  { %2064 = vmatpush1.msra.mxu0 %v6694_v58  ;;  %2135 = vmatpush1.msra.mxu1 %v6695_v57  ;;  %v6715_v58 = vld [vmem:[#allocation15_spill] sm:$0xff]  ;;  %v6716_v57 = vld [vmem:[#allocation16_spill] sm:$0xff] }
 0x5bc   :  { %2065 = vmatprep.subr.mxu0 %v6696_v63  ;;  %2136 = vmatprep.subr.mxu1 %v6697_v0  ;;  %v6717_v63 = vld [vmem:[#allocation17_spill] sm:$0xff]  ;;  %v6718_v0 = vld [vmem:[#allocation18_spill] sm:$0xff] }
 0x5bd   :  { %2066 = vmatpush1.msra.mxu0 %v6698_v62  ;;  %2137 = vmatpush1.msra.mxu1 %v6699_v1  ;;  %v6719_v62 = vld [vmem:[#allocation19_spill] sm:$0xff]  ;;  %v6720_v1 = vld [vmem:[#allocation20_spill] sm:$0xff] }
 0x5be   :  { %2067 = vmatprep.subr.mxu0 %v6700_v16  ;;  %2138 = vmatprep.subr.mxu1 %v6701_v38  ;;  %v6721_v16 = vld [vmem:[#allocation21_spill] sm:$0xff]  ;;  %v6722_v38 = vld [vmem:[#allocation22_spill] sm:$0xff] }
 0x5bf   :  { %2068 = vmatpush1.msra.mxu0 %v6702_v48  ;;  %2139 = vmatpush1.msra.mxu1 %v6703_v53  ;;  %v6723_v48 = vld [vmem:[#allocation23_spill] sm:$0xff]  ;;  %v6724_v53 = vld [vmem:[#allocation24_spill] sm:$0xff] }
 0x5c0   :  { %2069 = vmatprep.subr.mxu0 %v6704_v54  ;;  %2140 = vmatprep.subr.mxu1 %v6705_v59  ;;  %v6725_v54 = vld [vmem:[#allocation25_spill] sm:$0xff]  ;;  %v6726_v59 = vld [vmem:[#allocation26_spill] sm:$0xff] }
 0x5c1   :  { %2070 = vmatpush1.msra.mxu0 %v6706_v24  ;;  %2141 = vmatpush1.msra.mxu1 %v6707_v55  ;;  %v6727_v24 = vld [vmem:[#allocation27_spill] sm:$0xff]  ;;  %v6728_v55 = vld [vmem:[#allocation28_spill] sm:$0xff] }
 0x5c2   :  { %2071 = vmatprep.subr.mxu0 %v6708_v50  ;;  %2142 = vmatprep.subr.mxu1 %v6709_v49  ;;  %v6729_v50 = vld [vmem:[#allocation29_spill] sm:$0xff]  ;;  %v6730_v49 = vld [vmem:[#allocation30_spill] sm:$0xff] }
 0x5c3   :  { %2072 = vmatpush1.msra.mxu0 %v6710_v12  ;;  %2143 = vmatpush1.msra.mxu1 %v6711_v13  ;;  %v6731_v12 = vld [vmem:[#allocation31_spill] sm:$0xff]  ;;  %v6732_v13 = vld [vmem:[#allocation32_spill] sm:$0xff] }
 0x5c4   :  { %2073 = vmatprep.subr.mxu0 %v6712_v17  ;;  %2144 = vmatprep.subr.mxu1 %v6713_v2  ;;  %v6733_v17 = vld [vmem:[#allocation33_spill] sm:$0xff]  ;;  %v6734_v2 = vld [vmem:[#allocation34_spill] sm:$0xff] }
 0x5c5   :  { %2074 = vmatpush1.msra.mxu0 %v6714_v60  ;;  %2145 = vmatpush1.msra.mxu1 %v6715_v58  ;;  %v6735_v60 = vld [vmem:[#allocation35_spill] sm:$0xff]  ;;  %v6736_v58 = vld [vmem:[#allocation36_spill] sm:$0xff] }
 0x5c6   :  { %2075 = vmatprep.subr.mxu0 %v6716_v57  ;;  %2146 = vmatprep.subr.mxu1 %v6717_v63  ;;  %v1661_v57 = vld [vmem:[#allocation3 + $0xf0] sm:$0xff] }
 0x5c7   :  { %2076 = vmatpush1.msra.mxu0 %v6718_v0  ;;  %2147 = vmatpush1.msra.mxu1 %v6719_v62 }
 0x5c8   :  { %2077 = vmatprep.subr.mxu0 %v6720_v1  ;;  %2148 = vmatprep.subr.mxu1 %v6721_v16  ;;  %v1659_v16 = vld [vmem:[#allocation3 + $0xe0] sm:$0xff] }
 0x5c9   :  { %2078 = vmatpush1.msra.mxu0 %v6722_v38  ;;  %2149 = vmatpush1.msra.mxu1 %v6723_v48  ;;  %v1660_v38 = vld [vmem:[#allocation3 + $0xe8] sm:$0xff] }
 0x5ca   :  { %2079 = vmatprep.subr.mxu0 %v6724_v53  ;;  %2150 = vmatprep.subr.mxu1 %v6725_v54 }
 0x5cb   :  { %2080 = vmatpush1.msra.mxu0 %v6726_v59  ;;  %2151 = vmatpush1.msra.mxu1 %v6727_v24 }
 0x5cc   :  { %2081 = vmatprep.subr.mxu0 %v6728_v55  ;;  %2152 = vmatprep.subr.mxu1 %v6729_v50 }
 0x5cd   :  { %2082 = vmatpush1.msra.mxu0 %v6730_v49  ;;  %2153 = vmatpush1.msra.mxu1 %v6731_v12  ;;  %v1662_v49 = vld [vmem:[#allocation3 + $0xf8] sm:$0xff] }
 0x5ce   :  { %2083 = vmatprep.subr.mxu0 %v6732_v13  ;;  %2154 = vmatprep.subr.mxu1 %v6733_v17 }
 0x5cf   :  { %2084 = vmatpush1.msra.mxu0 %v6734_v2  ;;  %2155 = vmatpush1.msra.mxu1 %v6735_v60 }
 0x5d0   :  { %2117 = vmatprep.mubr.f32.mxu0 %v6476_v61  ;;  %2188 = vmatprep.mubr.f32.mxu1 %v6476_v61 }
 0x5d1   :  { %2195 = vmatprep.subr.mxu0 %v6736_v58  ;;  %3520 = vmatprep.subr.mxu1 %v6476_v61  ;;  %v1663_v58 = vld [vmem:[#allocation3 + $0x100] sm:$0xff] }
 0x64e   :  { %v1817_v63 = vpop.f32.mrf.mxu1  ;;  %v1746_v62 = vpop.f32.mrf.mxu0 }
 0x64f   :  { %v1965_v0 = vadd.f32 %v1817_v63, %v1661_v57  ;;  %v1963_v53 = vadd.f32 %v1746_v62, %v1659_v16  ;;  %v1665_v57 = vld [vmem:[#allocation3 + $0x110] sm:$0xff]  ;;  %v1664_v16 = vld [vmem:[#allocation3 + $0x108] sm:$0xff] }
 0x650   :  { %v1748_v48 = vpop.f32.mrf.mxu0  ;;  %v1819_v12 = vpop.f32.mrf.mxu1 }
 0x651   :  { %v3188_v1 = vmul.f32 -1.442695, %v1965_v0  ;;  %v1964_v54 = vadd.f32 %v1748_v48, %v1660_v38  ;;  %v3186_v59 = vmul.f32 -1.442695, %v1963_v53  ;;  %v1966_v13 = vadd.f32 %v1819_v12, %v1662_v49 }
 0x653   :  { %3761 = vpow2.f32 %v3188_v1  ;;  %v3187_v24 = vmul.f32 -1.442695, %v1964_v54  ;;  %v3189_v2 = vmul.f32 -1.442695, %v1966_v13 }
 0x654   :  { %3763 = vpow2.f32 %v3186_v59 }
 0x655   :  { %3765 = vpow2.f32 %v3187_v24 }
 0x660   :  { %v3762_v55 = vpop.eup %3761 }
 0x661   :  { %v1987_v50 = vadd.f32 1.0, %v3762_v55  ;;  %v3764_v17 = vpop.eup %3763 }
 0x662   :  { %v3766_v60 = vpop.eup %3765  ;;  %v1985_v63 = vadd.f32 1.0, %v3764_v17 }
 0x663   :  { %3767 = vrcp.f32 %v1987_v50  ;;  %v1986_v0 = vadd.f32 1.0, %v3766_v60 }
 0x664   :  { %3769 = vpow2.f32 %v3189_v2 }
 0x665   :  { %3771 = vrcp.f32 %v1985_v63 }
 0x666   :  { %3773 = vrcp.f32 %v1986_v0 }
 0x66f   :  { %v1888_v62 = vpop.f32.mrf.mxu0  ;;  %v1959_v1 = vpop.f32.mrf.mxu1 }
 0x670   :  { %v1967_v38 = vadd.f32 %v1888_v62, %v1663_v58  ;;  %v1969_v48 = vadd.f32 %v1959_v1, %v1665_v57  ;;  %v3768_v53 = vpop.eup %3767 }
 0x671   :  { %v1890_v54 = vpop.f32.mrf.mxu0  ;;  %v3519_v59 = vpop.f32.mrf.mxu1  ;;  %2024 = vst [vmem:[#allocation8 + $0x98] sm:$0xff] %v3768_v53 }
 0x672   :  { %v3190_v24 = vmul.f32 -1.442695, %v1967_v38  ;;  %v2002_v55 = vand.u32 2147483647, %v1969_v48  ;;  %v1968_v50 = vadd.f32 %v1890_v54, %v1664_v16  ;;  %v3770_v13 = vpop.eup %3769 }
 0x673   :  { %v3772_v17 = vpop.eup %3771  ;;  %v1988_v2 = vadd.f32 1.0, %v3770_v13 }
 0x674   :  { %3775 = vpow2.f32 %v3190_v24  ;;  %v2003_v49 = vsub.f32 0.0, %v2002_v55  ;;  %v3774_v60 = vpop.eup %3773 }
 0x675   :  { %3777 = vtanh.f32 %v1968_v50  ;;  %v2010_v63 = vmul.f32 %v3774_v60, %v5338_v8 }
 0x676   :  { %v2004_v12 = vmul.f32 1.442695, %v2003_v49 }
 0x678   :  { %3779 = vpow2.f32 %v2004_v12  ;;  %v2001_v12 = vmax.f32 %v1969_v48, 0.0 }
 0x679   :  { %3781 = vrcp.f32 %v1988_v2  ;;  %v2044_v2 = vpop.permute.xlu1 %2043 }
 0x681   :  { %v3776_v58 = vpop.eup %3775 }
 0x682   :  { %v3778_v57 = vpop.eup %3777  ;;  %v1989_v62 = vadd.f32 1.0, %v3776_v58 }
 0x683   :  { %v2011_v1 = vmul.f32 %v3778_v57, %v3772_v17 }
 0x684   :  { %3783 = vrcp.f32 %v1989_v62 }
 0x685   :  { %v3780_v38 = vpop.eup %3779  ;;  %v2012_v16 = vadd.f32 %v2011_v1, %v2010_v63 }
 0x686   :  { %v2006_v0 = vadd.f32 1.0, %v3780_v38  ;;  %v3782_v54 = vpop.eup %3781  ;;  %v5663_v38 = vld [vmem:[#allocation6 + $0x188] sm:$0xff] }
 0x687   :  { %2021 = vst [vmem:[#allocation8 + $0x80] sm:$0xff] %v2012_v16  ;;  %v2014_v55 = vmul.f32 %v3782_v54, %v3778_v57  ;;  %v5672_v54 = vld [vmem:[#allocation6 + $0x168] sm:$0xff] }
 0x688   :  { %3785 = vlog2.f32 %v2006_v0  ;;  %v5669_v0 = vld [vmem:[#allocation6 + $0x158] sm:$0xff] }
 0x691   :  { %v3784_v59 = vpop.eup %3783 }
 0x692   :  { %v2013_v24 = vmul.f32 %v3784_v59, %v5333_v29  ;;  %v5675_v59 = vld [vmem:[#allocation6 + $0x150] sm:$0xff] }
 0x694   :  { %v5482_v50 = vadd.f32 %v2014_v55, %v2013_v24  ;;  %v5678_v24 = vld [vmem:[#allocation6 + $0x160] sm:$0xff] }
 0x695   :  { %v3786_v49 = vpop.eup %3785  ;;  %v5681_v55 = vld [vmem:[#allocation6 + $0x120] sm:$0xff] }
 0x696   :  { %v2008_v13 = vmul.f32 0.6931472, %v3786_v49  ;;  %2022 = vst [vmem:[#allocation8 + $0x88] sm:$0xff] %v5482_v50  ;;  %v2039_v62 = vsub.f32 %v2012_v16, %v5482_v50  ;;  %v5666_v16 = vld [vmem:[#allocation6 + $0x198] sm:$0xff]  ;;  %6744 = vst [vmem:[#allocation37_spill] sm:$0xff] %v5681_v55  ;;  %v5684_v49 = vld [vmem:[#allocation6 + $0x130] sm:$0xff] }
 0x697   :  { %6745 = vst [vmem:[#allocation38_spill] sm:$0xff] %v5684_v49 }
 0x698   :  { %v2009_v8 = vadd.f32 %v2008_v13, %v2001_v12  ;;  %v5687_v12 = vld [vmem:[#allocation6 + $0x118] sm:$0xff]  ;;  %v5690_v13 = vld [vmem:[#allocation6 + $0x128] sm:$0xff] }
 0x699   :  { %6746 = vst [vmem:[#allocation39_spill] sm:$0xff] %v5687_v12  ;;  %6747 = vst [vmem:[#allocation40_spill] sm:$0xff] %v5690_v13 }
 0x69a   :  { %2023 = vst [vmem:[#allocation8 + $0x90] sm:$0xff] %v2009_v8  ;;  %v2040_v17 = vsub.f32 0.0, %v2009_v8  ;;  %v5693_v8 = vld [vmem:[#allocation6 + $0xe8] sm:$0xff] }
 0x69b   :  { %6748 = vst [vmem:[#allocation41_spill] sm:$0xff] %v5693_v8 }
 0x69c   :  { %v2046_v60 = vmul.f32 %v2044_v2, %v2040_v17  ;;  %v5696_v17 = vld [vmem:[#allocation6 + $0xf8] sm:$0xff]  ;;  %v5699_v2 = vld [vmem:[#allocation6 + $0xe0] sm:$0xff] }
 0x69d   :  { %6749 = vst [vmem:[#allocation42_spill] sm:$0xff] %v5696_v17  ;;  %6750 = vst [vmem:[#allocation43_spill] sm:$0xff] %v5699_v2 }
 0x69e   :  { %v2047_v58 = vmul.f32 1.442695, %v2046_v60  ;;  %v5702_v60 = vld [vmem:[#allocation6 + $0xf0] sm:$0xff] }
 0x69f   :  { %6751 = vst [vmem:[#allocation44_spill] sm:$0xff] %v5702_v60 }
 0x6a0   :  { %3787 = vpow2.f32 %v2047_v58  ;;  %v5705_v58 = vld [vmem:[#allocation6 + $0xb0] sm:$0xff] }
 0x6a1   :  { %6752 = vst [vmem:[#allocation56_spill] sm:$0xff] %v5705_v58 }
 0x6ad   :  { %v3788_v63 = vpop.eup %3787 }
 0x6ae   :  { %v2049_v1 = vmul.f32 %v3788_v63, %v2039_v62  ;;  %v5708_v62 = vld [vmem:[#allocation6 + $0xc0] sm:$0xff]  ;;  %v5711_v63 = vld [vmem:[#allocation6 + $0xa8] sm:$0xff] }
 0x6af   :  { %6753 = vst [vmem:[#allocation57_spill] sm:$0xff] %v5708_v62  ;;  %6754 = vst [vmem:[#allocation58_spill] sm:$0xff] %v5711_v63 }
 0x6b0   :  { %v5487_v29 = vadd.f32 %v2049_v1, %v5482_v50  ;;  %v5714_v1 = vld [vmem:[#allocation6 + $0xb8] sm:$0xff] }
 0x6b1   :  { %6755 = vst [vmem:[#allocation64_spill] sm:$0xff] %v5714_v1 }
 0x6b2   :  { %3789 = vtanh.f32 %v5487_v29 }
 0x6bf   :  { %v3790_v48 = vpop.eup %3789 }
 0x6c0   :  { %v5490_v57 = vmul.f32 %v3790_v48, %v3768_v53  ;;  %v5660_v53 = vld [vmem:[#allocation6 + $0x1a0] sm:$0xff]  ;;  %v5717_v48 = vld [vmem:[#allocation6 + $0x78] sm:$0xff] }
 0x6c1   :  { %6756 = vst [vmem:[#allocation67_spill] sm:$0xff] %v5717_v48 }
 0x6c2   :  { %2118 = vmatmul.mubr.f32.vlgmr.msra.gmra.mxu0 %v5490_v57  ;;  %2189 = vmatmul.mubr.f32.vlgmr.msra.gmra.mxu1 %v5490_v57 }
 0x6c3   :  { %2196 = vmatpush1.msra.mxu0 %v5102_v47  ;;  %3521 = vmatpush3.msra.mxu1 %v5105_v3  ;;  %v6737_v47 = vld [vmem:[#allocation59_spill] sm:$0xff]  ;;  %v6738_v3 = vld [vmem:[#allocation60_spill] sm:$0xff] }
 0x6c4   :  { %2197 = vmatprep.subr.mxu0 %v5108_v34  ;;  %3522 = vmatprep.subr.mxu1 %v6476_v61  ;;  %v6739_v34 = vld [vmem:[#allocation61_spill] sm:$0xff] }
 0x6c5   :  { %2198 = vmatpush1.msra.mxu0 %v5112_v43  ;;  %3523 = vmatpush3.msra.mxu1 %v5115_v7  ;;  %v6740_v43 = vld [vmem:[#allocation62_spill] sm:$0xff]  ;;  %v6741_v7 = vld [vmem:[#allocation63_spill] sm:$0xff] }
 0x6c6   :  { %2199 = vmatprep.subr.mxu0 %v5118_v41  ;;  %3524 = vmatprep.subr.mxu1 %v6476_v61  ;;  %v6742_v41 = vld [vmem:[#allocation65_spill] sm:$0xff] }
 0x6c7   :  { %2200 = vmatpush1.msra.mxu0 %v5122_v39  ;;  %3525 = vmatpush3.msra.mxu1 %v5125_v42  ;;  %v6743_v39 = vld [vmem:[#allocation66_spill] sm:$0xff] }
 0x6c8   :  { %2201 = vmatprep.subr.mxu0 %v5128_v40  ;;  %3526 = vmatprep.subr.mxu1 %v6476_v61  ;;  %v5561_v42 = vld [vmem:[#allocation6 + $0x350] sm:$0xff]  ;;  %v5564_v40 = vld [vmem:[#allocation6 + $0x360] sm:$0xff] }
 0x6c9   :  { %2202 = vmatpush1.msra.mxu0 %v5132_v56  ;;  %3527 = vmatpush3.msra.mxu1 %v5135_v10  ;;  %v5567_v56 = vld [vmem:[#allocation6 + $0x348] sm:$0xff]  ;;  %v5570_v10 = vld [vmem:[#allocation6 + $0x358] sm:$0xff] }
 0x6ca   :  { %2203 = vmatprep.subr.mxu0 %v5138_v46  ;;  %3528 = vmatprep.subr.mxu1 %v6476_v61  ;;  %v5573_v46 = vld [vmem:[#allocation6 + $0x318] sm:$0xff] }
 0x6cb   :  { %2204 = vmatpush1.msra.mxu0 %v5142_v33  ;;  %3529 = vmatpush3.msra.mxu1 %v5145_v6  ;;  %v5576_v33 = vld [vmem:[#allocation6 + $0x328] sm:$0xff]  ;;  %v5579_v6 = vld [vmem:[#allocation6 + $0x310] sm:$0xff] }
 0x6cc   :  { %2205 = vmatprep.subr.mxu0 %v6665_v23  ;;  %3530 = vmatprep.subr.mxu1 %v6476_v61  ;;  %v5600_v23 = vld [vmem:[#allocation6 + $0x2b8] sm:$0xff] }
 0x6cd   :  { %2206 = vmatpush1.msra.mxu0 %v6666_v26  ;;  %3531 = vmatpush3.msra.mxu1 %v6667_v36  ;;  %v5603_v26 = vld [vmem:[#allocation6 + $0x2a0] sm:$0xff]  ;;  %v5606_v36 = vld [vmem:[#allocation6 + $0x2b0] sm:$0xff] }
 0x6ce   :  { %2207 = vmatprep.subr.mxu0 %v6668_v15  ;;  %3532 = vmatprep.subr.mxu1 %v6476_v61  ;;  %v5609_v15 = vld [vmem:[#allocation6 + $0x270] sm:$0xff] }
 0x6cf   :  { %2208 = vmatpush1.msra.mxu0 %v6669_v52  ;;  %3533 = vmatpush3.msra.mxu1 %v6670_v22  ;;  %v5612_v52 = vld [vmem:[#allocation6 + $0x280] sm:$0xff]  ;;  %v5615_v22 = vld [vmem:[#allocation6 + $0x268] sm:$0xff] }
 0x6d0   :  { %2209 = vmatprep.subr.mxu0 %v6671_v21  ;;  %3534 = vmatprep.subr.mxu1 %v6476_v61  ;;  %v5618_v21 = vld [vmem:[#allocation6 + $0x278] sm:$0xff] }
 0x6d1   :  { %2210 = vmatpush1.msra.mxu0 %v6672_v20  ;;  %3535 = vmatpush3.msra.mxu1 %v6673_v19  ;;  %v5621_v20 = vld [vmem:[#allocation6 + $0x238] sm:$0xff]  ;;  %v5624_v19 = vld [vmem:[#allocation6 + $0x248] sm:$0xff] }
 0x6d2   :  { %2211 = vmatprep.subr.mxu0 %v6674_v18  ;;  %3536 = vmatprep.subr.mxu1 %v6476_v61  ;;  %v5627_v18 = vld [vmem:[#allocation6 + $0x230] sm:$0xff] }
 0x6d3   :  { %2212 = vmatpush1.msra.mxu0 %v6675_v37  ;;  %3537 = vmatpush3.msra.mxu1 %v6737_v47  ;;  %v5630_v37 = vld [vmem:[#allocation6 + $0x240] sm:$0xff]  ;;  %v5723_v47 = vld [vmem:[#allocation6 + $0x70] sm:$0xff] }
 0x6d4   :  { %2213 = vmatprep.subr.mxu0 %v6738_v3  ;;  %3538 = vmatprep.subr.mxu1 %v6476_v61  ;;  %6758 = vst [vmem:[#allocation69_spill] sm:$0xff] %v5723_v47  ;;  %v5726_v3 = vld [vmem:[#allocation6 + $0x80] sm:$0xff] }
 0x6d5   :  { %2214 = vmatpush1.msra.mxu0 %v6739_v34  ;;  %3539 = vmatpush3.msra.mxu1 %v6740_v43  ;;  %6759 = vst [vmem:[#allocation70_spill] sm:$0xff] %v5726_v3  ;;  %v5729_v34 = vld [vmem:[#allocation6 + $0x40] sm:$0xff]  ;;  %v5732_v43 = vld [vmem:[#allocation6 + $0x50] sm:$0xff] }
 0x6d6   :  { %2215 = vmatprep.subr.mxu0 %v6741_v7  ;;  %3540 = vmatprep.subr.mxu1 %v6476_v61  ;;  %6760 = vst [vmem:[#allocation71_spill] sm:$0xff] %v5729_v34  ;;  %6761 = vst [vmem:[#allocation72_spill] sm:$0xff] %v5732_v43  ;;  %v5735_v7 = vld [vmem:[#allocation6 + $0x38] sm:$0xff] }
 0x6d7   :  { %2216 = vmatpush1.msra.mxu0 %v6681_v35  ;;  %3541 = vmatpush3.msra.mxu1 %v6742_v41  ;;  %v5648_v35 = vld [vmem:[#allocation6 + $0x1d8] sm:$0xff]  ;;  %6762 = vst [vmem:[#allocation74_spill] sm:$0xff] %v5735_v7  ;;  %v5738_v41 = vld [vmem:[#allocation6 + $0x48] sm:$0xff] }
 0x6d8   :  { %2217 = vmatprep.subr.mxu0 %v6743_v39  ;;  %3542 = vmatprep.subr.mxu1 %v6476_v61  ;;  %6763 = vst [vmem:[#allocation75_spill] sm:$0xff] %v5738_v41  ;;  %v5741_v39 = vld [vmem:[#allocation6 + $0x8] sm:$0xff] }
 0x6d9   :  { %2218 = vmatpush1.msra.mxu0 %v6684_v27  ;;  %3543 = vmatpush3.msra.mxu1 %v6685_v25  ;;  %v5636_v25 = vld [vmem:[#allocation6 + $0x210] sm:$0xff]  ;;  %6764 = vst [vmem:[#allocation45_spill] sm:$0xff] %v5741_v39 }
 0x6da   :  { %2219 = vmatprep.subr.mxu0 %v6686_v14  ;;  %3544 = vmatprep.subr.mxu1 %v6476_v61  ;;  %v5633_v14 = vld [vmem:[#allocation6 + $0x200] sm:$0xff]  ;;  %v5657_v27 = vld [vmem:[#allocation6 + $0x190] sm:$0xff] }
 0x6db   :  { %2220 = vmatpush1.msra.mxu0 %v6687_v32  ;;  %3545 = vmatpush3.msra.mxu1 %v6688_v30  ;;  %v5642_v32 = vld [vmem:[#allocation6 + $0x208] sm:$0xff] }
 0x6dc   :  { %2221 = vmatprep.subr.mxu0 %v6689_v31  ;;  %3546 = vmatprep.subr.mxu1 %v6476_v61  ;;  %v5639_v31 = vld [vmem:[#allocation6 + $0x1f8] sm:$0xff]  ;;  %v5645_v30 = vld [vmem:[#allocation6 + $0x1c8] sm:$0xff] }
 0x6dd   :  { %2222 = vmatpush1.msra.mxu0 %v5232_v5  ;;  %3547 = vmatpush3.msra.mxu1 %v6690_v28  ;;  %v5588_v5 = vld [vmem:[#allocation6 + $0x2f0] sm:$0xff] }
 0x6de   :  { %2223 = vmatprep.subr.mxu0 %v6691_v44  ;;  %3548 = vmatprep.subr.mxu1 %v6476_v61  ;;  %v5651_v44 = vld [vmem:[#allocation6 + $0x1c0] sm:$0xff]  ;;  %v5654_v28 = vld [vmem:[#allocation6 + $0x1d0] sm:$0xff] }
 0x6df   :  { %2224 = vmatpush1.msra.mxu0 %v5242_v51  ;;  %3549 = vmatpush3.msra.mxu1 %v5245_v11  ;;  %v5582_v11 = vld [vmem:[#allocation6 + $0x320] sm:$0xff]  ;;  %v5597_v51 = vld [vmem:[#allocation6 + $0x2a8] sm:$0xff] }
 0x6e0   :  { %2225 = vmatprep.subr.mxu0 %v5248_v45  ;;  %3550 = vmatprep.subr.mxu1 %v6476_v61  ;;  %v5594_v45 = vld [vmem:[#allocation6 + $0x2e8] sm:$0xff] }
 0x6e1   :  { %2226 = vmatpush1.msra.mxu0 %v5252_v4  ;;  %2259 = vmatprep.mubr.f32.mxu0 %v6476_v61  ;;  %v5591_v4 = vld [vmem:[#allocation6 + $0x2d8] sm:$0xff] }
 0x6e2   :  { %3551 = vmatpush3.msra.mxu1 %v5256_v9  ;;  %3552 = vmatprep.mubr.msk.f32.mxu1 %vm4173_vm0, %v6476_v61  ;;  %v5585_v9 = vld [vmem:[#allocation6 + $0x2e0] sm:$0xff] }
 0x6e3   :  { %2260 = vmatmul.mubr.f32.vlgmr.msra.gmra.mxu0 %v5490_v57  ;;  %3553 = vmatmul.mubr.f32.vlgmr.msra.gmra.mxu1 %v5490_v57  ;;  %v5720_v57 = vld [vmem:[#allocation6 + $0x88] sm:$0xff] }
 0x6e4   :  { %2426 = vmatprep.subr.mxu0 %v5561_v42  ;;  %2497 = vmatprep.subr.mxu1 %v5564_v40  ;;  %6757 = vst [vmem:[#allocation68_spill] sm:$0xff] %v5720_v57 }
 0x6e5   :  { %2427 = vmatpush1.msra.mxu0 %v5567_v56  ;;  %2498 = vmatpush1.msra.mxu1 %v5570_v10 }
 0x6e6   :  { %2428 = vmatprep.subr.mxu0 %v5573_v46  ;;  %2499 = vmatprep.subr.mxu1 %v5576_v33 }
 0x6e7   :  { %2429 = vmatpush1.msra.mxu0 %v5579_v6  ;;  %2500 = vmatpush1.msra.mxu1 %v5582_v11 }
 0x6e8   :  { %2430 = vmatprep.subr.mxu0 %v5585_v9  ;;  %2501 = vmatprep.subr.mxu1 %v5588_v5 }
 0x6e9   :  { %2431 = vmatpush1.msra.mxu0 %v5591_v4  ;;  %2502 = vmatpush1.msra.mxu1 %v5594_v45 }
 0x6ea   :  { %2432 = vmatprep.subr.mxu0 %v5597_v51  ;;  %2503 = vmatprep.subr.mxu1 %v5600_v23 }
 0x6eb   :  { %2433 = vmatpush1.msra.mxu0 %v5603_v26  ;;  %2504 = vmatpush1.msra.mxu1 %v5606_v36 }
 0x6ec   :  { %2434 = vmatprep.subr.mxu0 %v5609_v15  ;;  %2505 = vmatprep.subr.mxu1 %v5612_v52 }
 0x6ed   :  { %2435 = vmatpush1.msra.mxu0 %v5615_v22  ;;  %2506 = vmatpush1.msra.mxu1 %v5618_v21 }
 0x6ee   :  { %2436 = vmatprep.subr.mxu0 %v5621_v20  ;;  %2507 = vmatprep.subr.mxu1 %v5624_v19 }
 0x6ef   :  { %2437 = vmatpush1.msra.mxu0 %v5627_v18  ;;  %2508 = vmatpush1.msra.mxu1 %v5630_v37 }
 0x6f0   :  { %2438 = vmatprep.subr.mxu0 %v5633_v14  ;;  %2509 = vmatprep.subr.mxu1 %v5636_v25 }
 0x6f1   :  { %2439 = vmatpush1.msra.mxu0 %v5639_v31  ;;  %2510 = vmatpush1.msra.mxu1 %v5642_v32 }
 0x6f2   :  { %2440 = vmatprep.subr.mxu0 %v5645_v30  ;;  %2511 = vmatprep.subr.mxu1 %v5648_v35 }
 0x6f3   :  { %2441 = vmatpush1.msra.mxu0 %v5651_v44  ;;  %2512 = vmatpush1.msra.mxu1 %v5654_v28 }
 0x6f4   :  { %2442 = vmatprep.subr.mxu0 %v5657_v27  ;;  %2513 = vmatprep.subr.mxu1 %v5660_v53 }
 0x6f5   :  { %2443 = vmatpush1.msra.mxu0 %v5663_v38  ;;  %2514 = vmatpush1.msra.mxu1 %v5666_v16 }
 0x6f6   :  { %2444 = vmatprep.subr.mxu0 %v5669_v0  ;;  %2515 = vmatprep.subr.mxu1 %v5672_v54 }
 0x6f7   :  { %2445 = vmatpush1.msra.mxu0 %v5675_v59  ;;  %2516 = vmatpush1.msra.mxu1 %v5678_v24 }
 0x6f8   :  { %2446 = vmatprep.subr.mxu0 %v5681_v55  ;;  %2517 = vmatprep.subr.mxu1 %v5684_v49 }
 0x6f9   :  { %2447 = vmatpush1.msra.mxu0 %v5687_v12  ;;  %2518 = vmatpush1.msra.mxu1 %v5690_v13  ;;  %v2038_v12 = vld [vmem:[#allocation3 + $0x148] sm:$0xff] }
 0x6fa   :  { %2448 = vmatprep.subr.mxu0 %v5693_v8  ;;  %2519 = vmatprep.subr.mxu1 %v5696_v17 }
 0x6fb   :  { %2449 = vmatpush1.msra.mxu0 %v5699_v2  ;;  %2520 = vmatpush1.msra.mxu1 %v5702_v60 }
 0x6fc   :  { %2450 = vmatprep.subr.mxu0 %v5705_v58  ;;  %2521 = vmatprep.subr.mxu1 %v5708_v62 }
 0x6fd   :  { %2451 = vmatpush1.msra.mxu0 %v5711_v63  ;;  %2522 = vmatpush1.msra.mxu1 %v5714_v1 }
 0x6fe   :  { %2452 = vmatprep.subr.mxu0 %v5717_v48  ;;  %2523 = vmatprep.subr.mxu1 %v5720_v57  ;;  %v2033_v48 = vld [vmem:[#allocation3 + $0x120] sm:$0xff] }
 0x6ff   :  { %2453 = vmatpush1.msra.mxu0 %v5723_v47  ;;  %2524 = vmatpush1.msra.mxu1 %v5726_v3  ;;  %v5744_v3 = vld [vmem:[#allocation6 + $0x18] sm:$0xff] }
 0x700   :  { %2454 = vmatprep.subr.mxu0 %v5729_v34  ;;  %2525 = vmatprep.subr.mxu1 %v5732_v43  ;;  %6765 = vst [vmem:[#allocation46_spill] sm:$0xff] %v5744_v3  ;;  %v5747_v34 = vld [vmem:[#allocation6] sm:$0xff]  ;;  %v5750_v43 = vld [vmem:[#allocation6 + $0x10] sm:$0xff] }
 0x701   :  { %2455 = vmatpush1.msra.mxu0 %v5735_v7  ;;  %2526 = vmatpush1.msra.mxu1 %v5738_v41  ;;  %6766 = vst [vmem:[#allocation47_spill] sm:$0xff] %v5747_v34  ;;  %6767 = vst [vmem:[#allocation48_spill] sm:$0xff] %v5750_v43  ;;  %v5755_v41 = vld [vmem:[#allocation6 + $0x370] sm:$0xff] }
 0x702   :  { %2456 = vmatprep.subr.mxu0 %v5741_v39  ;;  %2527 = vmatprep.subr.mxu1 %v5744_v3  ;;  %6768 = vst [vmem:[#allocation49_spill] sm:$0xff] %v5755_v41  ;;  %v2034_v39 = vld [vmem:[#allocation3 + $0x128] sm:$0xff] }
 0x703   :  { %2457 = vmatpush1.msra.mxu0 %v5747_v34  ;;  %2528 = vmatpush1.msra.mxu1 %v5750_v43  ;;  %v2032_v34 = vld [vmem:[#allocation3 + $0x118] sm:$0xff] }
 0x704   :  { %2490 = vmatprep.mubr.f32.mxu0 %v6476_v61  ;;  %2561 = vmatprep.mubr.f32.mxu1 %v6476_v61 }
 0x705   :  { %2568 = vmatprep.subr.mxu0 %v5755_v41  ;;  %3555 = vmatprep.subr.mxu1 %v6476_v61  ;;  %v2035_v41 = vld [vmem:[#allocation3 + $0x130] sm:$0xff] }
 0x782   :  { %v2190_v3 = vpop.f32.mrf.mxu1  ;;  %v2119_v47 = vpop.f32.mrf.mxu0 }
 0x783   :  { %v2338_v7 = vadd.f32 %v2190_v3, %v2034_v39  ;;  %v2336_v43 = vadd.f32 %v2119_v47, %v2032_v34 }
 0x784   :  { %v2121_v1 = vpop.f32.mrf.mxu0  ;;  %v2192_v17 = vpop.f32.mrf.mxu1 }
 0x785   :  { %v3194_v57 = vmul.f32 -1.442695, %v2338_v7  ;;  %v2337_v63 = vadd.f32 %v2121_v1, %v2033_v48  ;;  %v3192_v62 = vmul.f32 -1.442695, %v2336_v43  ;;  %v2339_v8 = vadd.f32 %v2192_v17, %v2035_v41  ;;  %v2036_v7 = vld [vmem:[#allocation3 + $0x138] sm:$0xff]  ;;  %v2037_v48 = vld [vmem:[#allocation3 + $0x140] sm:$0xff] }
 0x787   :  { %3791 = vpow2.f32 %v3194_v57  ;;  %v3193_v58 = vmul.f32 -1.442695, %v2337_v63  ;;  %v3195_v3 = vmul.f32 -1.442695, %v2339_v8 }
 0x788   :  { %3793 = vpow2.f32 %v3192_v62 }
 0x789   :  { %3795 = vpow2.f32 %v3193_v58 }
 0x794   :  { %v3792_v60 = vpop.eup %3791 }
 0x795   :  { %v2360_v2 = vadd.f32 1.0, %v3792_v60  ;;  %v3794_v13 = vpop.eup %3793 }
 0x796   :  { %v3796_v39 = vpop.eup %3795  ;;  %v2358_v57 = vadd.f32 1.0, %v3794_v13 }
 0x797   :  { %3797 = vrcp.f32 %v2360_v2  ;;  %v2359_v49 = vadd.f32 1.0, %v3796_v39 }
 0x798   :  { %3799 = vpow2.f32 %v3195_v3 }
 0x799   :  { %3801 = vrcp.f32 %v2358_v57 }
 0x79a   :  { %3803 = vrcp.f32 %v2359_v49 }
 0x7a3   :  { %v2261_v47 = vpop.f32.mrf.mxu0  ;;  %v2332_v1 = vpop.f32.mrf.mxu1 }
 0x7a4   :  { %v2340_v63 = vadd.f32 %v2261_v47, %v2036_v7  ;;  %v2342_v62 = vadd.f32 %v2332_v1, %v2038_v12  ;;  %v3798_v58 = vpop.eup %3797 }
 0x7a5   :  { %v2263_v34 = vpop.f32.mrf.mxu0  ;;  %v3554_v60 = vpop.f32.mrf.mxu1  ;;  %2397 = vst [vmem:[#allocation8 + $0xb8] sm:$0xff] %v3798_v58 }
 0x7a6   :  { %v3196_v2 = vmul.f32 -1.442695, %v2340_v63  ;;  %v2375_v17 = vand.u32 2147483647, %v2342_v62  ;;  %v2341_v43 = vadd.f32 %v2263_v34, %v2037_v48  ;;  %v3800_v41 = vpop.eup %3799 }
 0x7a7   :  { %v3802_v3 = vpop.eup %3801  ;;  %v2361_v39 = vadd.f32 1.0, %v3800_v41 }
 0x7a8   :  { %3805 = vpow2.f32 %v3196_v2  ;;  %v2376_v8 = vsub.f32 0.0, %v2375_v17  ;;  %v3804_v55 = vpop.eup %3803 }
 0x7a9   :  { %3807 = vtanh.f32 %v2341_v43  ;;  %v2383_v57 = vmul.f32 %v3804_v55, %v5487_v29 }
 0x7aa   :  { %v2377_v13 = vmul.f32 1.442695, %v2376_v8 }
 0x7ac   :  { %3809 = vpow2.f32 %v2377_v13  ;;  %v2374_v13 = vmax.f32 %v2342_v62, 0.0 }
 0x7ad   :  { %3811 = vrcp.f32 %v2361_v39 }
 0x7b5   :  { %v3806_v7 = vpop.eup %3805 }
 0x7b6   :  { %v3808_v12 = vpop.eup %3807  ;;  %v2362_v47 = vadd.f32 1.0, %v3806_v7 }
 0x7b7   :  { %v2384_v1 = vmul.f32 %v3808_v12, %v3802_v3  ;;  %v2417_v3 = vpop.permute.xlu0 %2416 }
 0x7b8   :  { %3813 = vrcp.f32 %v2362_v47 }
 0x7b9   :  { %v3810_v63 = vpop.eup %3809  ;;  %v2385_v48 = vadd.f32 %v2384_v1, %v2383_v57 }
 0x7ba   :  { %v2379_v49 = vadd.f32 1.0, %v3810_v63  ;;  %v3812_v34 = vpop.eup %3811  ;;  %v5773_v63 = vld [vmem:[#allocation6 + $0x368] sm:$0xff] }
 0x7bb   :  { %2394 = vst [vmem:[#allocation8 + $0xa0] sm:$0xff] %v2385_v48  ;;  %v2387_v17 = vmul.f32 %v3812_v34, %v3808_v12  ;;  %v5786_v34 = vld [vmem:[#allocation6 + $0x340] sm:$0xff] }
 0x7bc   :  { %3815 = vlog2.f32 %v2379_v49  ;;  %v5776_v49 = vld [vmem:[#allocation6 + $0x378] sm:$0xff] }
 0x7c5   :  { %v3814_v60 = vpop.eup %3813 }
 0x7c6   :  { %v2386_v2 = vmul.f32 %v3814_v60, %v5482_v50  ;;  %v5789_v60 = vld [vmem:[#allocation6 + $0x300] sm:$0xff] }
 0x7c8   :  { %v5761_v43 = vadd.f32 %v2387_v17, %v2386_v2  ;;  %v5793_v2 = vld [vmem:[#allocation6 + $0x2f8] sm:$0xff]  ;;  %v5796_v17 = vld [vmem:[#allocation6 + $0x308] sm:$0xff] }
 0x7c9   :  { %v3816_v8 = vpop.eup %3815 }
 0x7ca   :  { %v2381_v41 = vmul.f32 0.6931472, %v3816_v8  ;;  %2395 = vst [vmem:[#allocation8 + $0xa8] sm:$0xff] %v5761_v43  ;;  %v2412_v47 = vsub.f32 %v2385_v48, %v5761_v43  ;;  %v5779_v48 = vld [vmem:[#allocation6 + $0x338] sm:$0xff]  ;;  %v5799_v8 = vld [vmem:[#allocation6 + $0x2c8] sm:$0xff] }
 0x7cc   :  { %v2382_v29 = vadd.f32 %v2381_v41, %v2374_v13  ;;  %v5803_v13 = vld [vmem:[#allocation6 + $0x2c0] sm:$0xff]  ;;  %v5806_v41 = vld [vmem:[#allocation6 + $0x2d0] sm:$0xff] }
 0x7ce   :  { %2396 = vst [vmem:[#allocation8 + $0xb0] sm:$0xff] %v2382_v29  ;;  %v2413_v55 = vsub.f32 0.0, %v2382_v29  ;;  %v5809_v29 = vld [vmem:[#allocation6 + $0x290] sm:$0xff] }
 0x7d0   :  { %v2419_v39 = vmul.f32 %v2417_v3, %v2413_v55  ;;  %v5813_v55 = vld [vmem:[#allocation6 + $0x288] sm:$0xff]  ;;  %v5816_v3 = vld [vmem:[#allocation6 + $0x298] sm:$0xff] }
 0x7d2   :  { %v2420_v7 = vmul.f32 1.442695, %v2419_v39  ;;  %v5819_v39 = vld [vmem:[#allocation6 + $0x258] sm:$0xff] }
 0x7d3   :  { %6769 = vst [vmem:[#allocation50_spill] sm:$0xff] %v5819_v39 }
 0x7d4   :  { %3817 = vpow2.f32 %v2420_v7  ;;  %v5823_v7 = vld [vmem:[#allocation6 + $0x250] sm:$0xff] }
 0x7d5   :  { %6770 = vst [vmem:[#allocation51_spill] sm:$0xff] %v5823_v7 }
 0x7e1   :  { %v3818_v57 = vpop.eup %3817 }
 0x7e2   :  { %v2422_v1 = vmul.f32 %v3818_v57, %v2412_v47  ;;  %v5826_v47 = vld [vmem:[#allocation6 + $0x260] sm:$0xff] }
 0x7e3   :  { %6771 = vst [vmem:[#allocation52_spill] sm:$0xff] %v5826_v47  ;;  %v5829_v57 = vld [vmem:[#allocation6 + $0x220] sm:$0xff] }
 0x7e4   :  { %v5766_v50 = vadd.f32 %v2422_v1, %v5761_v43  ;;  %6772 = vst [vmem:[#allocation53_spill] sm:$0xff] %v5829_v57  ;;  %v5833_v1 = vld [vmem:[#allocation6 + $0x218] sm:$0xff] }
 0x7e5   :  { %6773 = vst [vmem:[#allocation54_spill] sm:$0xff] %v5833_v1 }
 0x7e6   :  { %3819 = vtanh.f32 %v5766_v50 }
 0x7f3   :  { %v3820_v62 = vpop.eup %3819 }
 0x7f4   :  { %v5769_v12 = vmul.f32 %v3820_v62, %v3798_v58  ;;  %v5783_v58 = vld [vmem:[#allocation6 + $0x330] sm:$0xff]  ;;  %v5836_v62 = vld [vmem:[#allocation6 + $0x228] sm:$0xff] }
 0x7f5   :  { %6774 = vst [vmem:[#allocation55_spill] sm:$0xff] %v5836_v62 }
 0x7f6   :  { %2491 = vmatmul.mubr.f32.vlgmr.msra.gmra.mxu0 %v5769_v12  ;;  %2562 = vmatmul.mubr.f32.vlgmr.msra.gmra.mxu1 %v5769_v12 }
 0x7f7   :  { %2569 = vmatpush1.msra.mxu0 %v5773_v63  ;;  %3556 = vmatpush3.msra.mxu1 %v5776_v49 }
 0x7f8   :  { %2570 = vmatprep.subr.mxu0 %v5779_v48  ;;  %3557 = vmatprep.subr.mxu1 %v6476_v61 }
 0x7f9   :  { %2571 = vmatpush1.msra.mxu0 %v5783_v58  ;;  %3558 = vmatpush3.msra.mxu1 %v5786_v34 }
 0x7fa   :  { %2572 = vmatprep.subr.mxu0 %v5789_v60  ;;  %3559 = vmatprep.subr.mxu1 %v6476_v61 }
 0x7fb   :  { %2573 = vmatpush1.msra.mxu0 %v5793_v2  ;;  %3560 = vmatpush3.msra.mxu1 %v5796_v17 }
 0x7fc   :  { %2574 = vmatprep.subr.mxu0 %v5799_v8  ;;  %3561 = vmatprep.subr.mxu1 %v6476_v61 }
 0x7fd   :  { %2575 = vmatpush1.msra.mxu0 %v5803_v13  ;;  %3562 = vmatpush3.msra.mxu1 %v5806_v41 }
 0x7fe   :  { %2576 = vmatprep.subr.mxu0 %v5809_v29  ;;  %3563 = vmatprep.subr.mxu1 %v6476_v61 }
 0x7ff   :  { %2577 = vmatpush1.msra.mxu0 %v5813_v55  ;;  %3564 = vmatpush3.msra.mxu1 %v5816_v3 }
 0x800   :  { %2578 = vmatprep.subr.mxu0 %v5819_v39  ;;  %3565 = vmatprep.subr.mxu1 %v6476_v61  ;;  %v5839_v39 = vld [vmem:[#allocation6 + $0x1e8] sm:$0xff] }
 0x801   :  { %2579 = vmatpush1.msra.mxu0 %v5823_v7  ;;  %3566 = vmatpush3.msra.mxu1 %v5826_v47  ;;  %6775 = vst [vmem:[#allocation73_spill] sm:$0xff] %v5839_v39  ;;  %v5843_v47 = vld [vmem:[#allocation6 + $0x1e0] sm:$0xff]  ;;  %v5849_v7 = vld [vmem:[#allocation6 + $0x1b0] sm:$0xff] }
 0x802   :  { %2580 = vmatprep.subr.mxu0 %v5829_v57  ;;  %3567 = vmatprep.subr.mxu1 %v6476_v61  ;;  %6776 = vst [vmem:[#allocation76_spill] sm:$0xff] %v5843_v47  ;;  %v5846_v57 = vld [vmem:[#allocation6 + $0x1f0] sm:$0xff]  ;;  %6778 = vst [vmem:[#allocation78_spill] sm:$0xff] %v5849_v7 }
 0x803   :  { %2581 = vmatpush1.msra.mxu0 %v5833_v1  ;;  %3568 = vmatpush3.msra.mxu1 %v5836_v62  ;;  %6777 = vst [vmem:[#allocation77_spill] sm:$0xff] %v5846_v57  ;;  %v5853_v62 = vld [vmem:[#allocation6 + $0x1a8] sm:$0xff]  ;;  %v5859_v1 = vld [vmem:[#allocation6 + $0x178] sm:$0xff] }
 0x804   :  { %2582 = vmatprep.subr.mxu0 %v5839_v39  ;;  %3569 = vmatprep.subr.mxu1 %v6476_v61  ;;  %6779 = vst [vmem:[#allocation79_spill] sm:$0xff] %v5853_v62  ;;  %v5856_v39 = vld [vmem:[#allocation6 + $0x1b8] sm:$0xff]  ;;  %6781 = vst [vmem:[#allocation81_spill] sm:$0xff] %v5859_v1 }
 0x805   :  { %2583 = vmatpush1.msra.mxu0 %v5843_v47  ;;  %3570 = vmatpush3.msra.mxu1 %v5846_v57  ;;  %6780 = vst [vmem:[#allocation80_spill] sm:$0xff] %v5856_v39  ;;  %v5863_v57 = vld [vmem:[#allocation6 + $0x170] sm:$0xff]  ;;  %v5869_v47 = vld [vmem:[#allocation6 + $0x140] sm:$0xff] }
 0x806   :  { %2584 = vmatprep.subr.mxu0 %v5849_v7  ;;  %3571 = vmatprep.subr.mxu1 %v6476_v61  ;;  %6782 = vst [vmem:[#allocation82_spill] sm:$0xff] %v5863_v57  ;;  %v5866_v7 = vld [vmem:[#allocation6 + $0x180] sm:$0xff]  ;;  %6784 = vst [vmem:[#allocation12_spill] sm:$0xff] %v5869_v47 }
 0x807   :  { %2585 = vmatpush1.msra.mxu0 %v5853_v62  ;;  %3572 = vmatpush3.msra.mxu1 %v5856_v39  ;;  %6783 = vst [vmem:[#allocation83_spill] sm:$0xff] %v5866_v7  ;;  %v5873_v39 = vld [vmem:[#allocation6 + $0x138] sm:$0xff]  ;;  %v5879_v62 = vld [vmem:[#allocation6 + $0x108] sm:$0xff] }
 0x808   :  { %2586 = vmatprep.subr.mxu0 %v5859_v1  ;;  %3573 = vmatprep.subr.mxu1 %v6476_v61  ;;  %6785 = vst [vmem:[#allocation13_spill] sm:$0xff] %v5873_v39  ;;  %v5876_v1 = vld [vmem:[#allocation6 + $0x148] sm:$0xff]  ;;  %6787 = vst [vmem:[#allocation15_spill] sm:$0xff] %v5879_v62 }
 0x809   :  { %2587 = vmatpush1.msra.mxu0 %v5863_v57  ;;  %3574 = vmatpush3.msra.mxu1 %v5866_v7  ;;  %6786 = vst [vmem:[#allocation14_spill] sm:$0xff] %v5876_v1  ;;  %v5883_v7 = vld [vmem:[#allocation6 + $0x100] sm:$0xff]  ;;  %v5889_v57 = vld [vmem:[#allocation6 + $0xd0] sm:$0xff] }
 0x80a   :  { %2588 = vmatprep.subr.mxu0 %v5869_v47  ;;  %3575 = vmatprep.subr.mxu1 %v6476_v61  ;;  %6788 = vst [vmem:[#allocation16_spill] sm:$0xff] %v5883_v7  ;;  %v5886_v47 = vld [vmem:[#allocation6 + $0x110] sm:$0xff]  ;;  %6790 = vst [vmem:[#allocation18_spill] sm:$0xff] %v5889_v57 }
 0x80b   :  { %2589 = vmatpush1.msra.mxu0 %v5873_v39  ;;  %3576 = vmatpush3.msra.mxu1 %v5876_v1  ;;  %6789 = vst [vmem:[#allocation17_spill] sm:$0xff] %v5886_v47  ;;  %v5893_v1 = vld [vmem:[#allocation6 + $0xc8] sm:$0xff]  ;;  %v5899_v39 = vld [vmem:[#allocation6 + $0x98] sm:$0xff] }
 0x80c   :  { %2590 = vmatprep.subr.mxu0 %v5879_v62  ;;  %3577 = vmatprep.subr.mxu1 %v6476_v61  ;;  %6791 = vst [vmem:[#allocation19_spill] sm:$0xff] %v5893_v1  ;;  %v5896_v62 = vld [vmem:[#allocation6 + $0xd8] sm:$0xff]  ;;  %6793 = vst [vmem:[#allocation21_spill] sm:$0xff] %v5899_v39 }
 0x80d   :  { %2591 = vmatpush1.msra.mxu0 %v5883_v7  ;;  %3578 = vmatpush3.msra.mxu1 %v5886_v47  ;;  %6792 = vst [vmem:[#allocation20_spill] sm:$0xff] %v5896_v62  ;;  %v5903_v47 = vld [vmem:[#allocation6 + $0x90] sm:$0xff]  ;;  %v5909_v7 = vld [vmem:[#allocation6 + $0x60] sm:$0xff] }
 0x80e   :  { %2592 = vmatprep.subr.mxu0 %v5889_v57  ;;  %3579 = vmatprep.subr.mxu1 %v6476_v61  ;;  %v5906_v57 = vld [vmem:[#allocation6 + $0xa0] sm:$0xff]  ;;  %6795 = vst [vmem:[#allocation23_spill] sm:$0xff] %v5909_v7 }
 0x80f   :  { %2593 = vmatpush1.msra.mxu0 %v5893_v1  ;;  %3580 = vmatpush3.msra.mxu1 %v5896_v62  ;;  %6794 = vst [vmem:[#allocation22_spill] sm:$0xff] %v5906_v57  ;;  %v5913_v62 = vld [vmem:[#allocation6 + $0x58] sm:$0xff]  ;;  %v5919_v1 = vld [vmem:[#allocation6 + $0x28] sm:$0xff] }
 0x810   :  { %2594 = vmatprep.subr.mxu0 %v5899_v39  ;;  %3581 = vmatprep.subr.mxu1 %v6476_v61  ;;  %v5916_v39 = vld [vmem:[#allocation6 + $0x68] sm:$0xff] }
 0x811   :  { %2595 = vmatpush1.msra.mxu0 %v5903_v47  ;;  %3582 = vmatpush3.msra.mxu1 %v5906_v57  ;;  %v5923_v57 = vld [vmem:[#allocation6 + $0x20] sm:$0xff] }
 0x812   :  { %2596 = vmatprep.subr.mxu0 %v5909_v7  ;;  %3583 = vmatprep.subr.mxu1 %v6476_v61  ;;  %v5927_v7 = vld [vmem:[#allocation6 + $0x30] sm:$0xff] }
 0x813   :  { %2597 = vmatpush1.msra.mxu0 %v5913_v62  ;;  %3584 = vmatpush3.msra.mxu1 %v5916_v39 }
 0x814   :  { %2598 = vmatprep.subr.mxu0 %v5919_v1  ;;  %3585 = vmatprep.subr.mxu1 %v6476_v61 }
 0x815   :  { %2599 = vmatpush1.msra.mxu0 %v5923_v57  ;;  %2632 = vmatprep.mubr.f32.mxu0 %v6476_v61 }
 0x816   :  { %3586 = vmatpush3.msra.mxu1 %v5927_v7  ;;  %3587 = vmatprep.mubr.msk.f32.mxu1 %vm4173_vm0, %v6476_v61 }
 0x817   :  { %2633 = vmatmul.mubr.f32.vlgmr.msra.gmra.mxu0 %v5769_v12  ;;  %3588 = vmatmul.mubr.f32.vlgmr.msra.gmra.mxu1 %v5769_v12 }
 0x818   :  { %2799 = vmatprep.subr.mxu0 %v5561_v42  ;;  %2870 = vmatprep.subr.mxu1 %v5564_v40  ;;  %v6796_v42 = vld [vmem:[#allocation37_spill] sm:$0xff]  ;;  %v6797_v40 = vld [vmem:[#allocation38_spill] sm:$0xff] }
 0x819   :  { %2800 = vmatpush1.msra.mxu0 %v5567_v56  ;;  %2871 = vmatpush1.msra.mxu1 %v5570_v10  ;;  %v6798_v56 = vld [vmem:[#allocation39_spill] sm:$0xff]  ;;  %v6799_v10 = vld [vmem:[#allocation40_spill] sm:$0xff] }
 0x81a   :  { %2801 = vmatprep.subr.mxu0 %v5573_v46  ;;  %2872 = vmatprep.subr.mxu1 %v5576_v33  ;;  %v6800_v46 = vld [vmem:[#allocation41_spill] sm:$0xff]  ;;  %v6801_v33 = vld [vmem:[#allocation42_spill] sm:$0xff] }
 0x81b   :  { %2802 = vmatpush1.msra.mxu0 %v5579_v6  ;;  %2873 = vmatpush1.msra.mxu1 %v5582_v11  ;;  %v6802_v6 = vld [vmem:[#allocation43_spill] sm:$0xff]  ;;  %v6803_v11 = vld [vmem:[#allocation44_spill] sm:$0xff] }
 0x81c   :  { %2803 = vmatprep.subr.mxu0 %v5585_v9  ;;  %2874 = vmatprep.subr.mxu1 %v5588_v5  ;;  %v6804_v9 = vld [vmem:[#allocation56_spill] sm:$0xff]  ;;  %v6805_v5 = vld [vmem:[#allocation57_spill] sm:$0xff] }
 0x81d   :  { %2804 = vmatpush1.msra.mxu0 %v5591_v4  ;;  %2875 = vmatpush1.msra.mxu1 %v5594_v45  ;;  %v6806_v4 = vld [vmem:[#allocation58_spill] sm:$0xff]  ;;  %v6807_v45 = vld [vmem:[#allocation64_spill] sm:$0xff] }
 0x81e   :  { %2805 = vmatprep.subr.mxu0 %v5597_v51  ;;  %2876 = vmatprep.subr.mxu1 %v5600_v23  ;;  %v6808_v51 = vld [vmem:[#allocation67_spill] sm:$0xff]  ;;  %v6809_v23 = vld [vmem:[#allocation68_spill] sm:$0xff] }
 0x81f   :  { %2806 = vmatpush1.msra.mxu0 %v5603_v26  ;;  %2877 = vmatpush1.msra.mxu1 %v5606_v36  ;;  %v6810_v26 = vld [vmem:[#allocation69_spill] sm:$0xff]  ;;  %v6811_v36 = vld [vmem:[#allocation70_spill] sm:$0xff] }
 0x820   :  { %2807 = vmatprep.subr.mxu0 %v5609_v15  ;;  %2878 = vmatprep.subr.mxu1 %v5612_v52  ;;  %v6812_v15 = vld [vmem:[#allocation71_spill] sm:$0xff]  ;;  %v6813_v52 = vld [vmem:[#allocation72_spill] sm:$0xff] }
 0x821   :  { %2808 = vmatpush1.msra.mxu0 %v5615_v22  ;;  %2879 = vmatpush1.msra.mxu1 %v5618_v21  ;;  %v6814_v22 = vld [vmem:[#allocation74_spill] sm:$0xff]  ;;  %v6815_v21 = vld [vmem:[#allocation75_spill] sm:$0xff] }
 0x822   :  { %2809 = vmatprep.subr.mxu0 %v5621_v20  ;;  %2880 = vmatprep.subr.mxu1 %v5624_v19  ;;  %v6816_v20 = vld [vmem:[#allocation45_spill] sm:$0xff]  ;;  %v6817_v19 = vld [vmem:[#allocation46_spill] sm:$0xff] }
 0x823   :  { %2810 = vmatpush1.msra.mxu0 %v5627_v18  ;;  %2881 = vmatpush1.msra.mxu1 %v5630_v37  ;;  %v6818_v18 = vld [vmem:[#allocation47_spill] sm:$0xff]  ;;  %v6819_v37 = vld [vmem:[#allocation48_spill] sm:$0xff] }
 0x824   :  { %2811 = vmatprep.subr.mxu0 %v5633_v14  ;;  %2882 = vmatprep.subr.mxu1 %v5636_v25  ;;  %v6820_v14 = vld [vmem:[#allocation49_spill] sm:$0xff]  ;;  %v2407_v25 = vld [vmem:[#allocation3 + $0x160] sm:$0xff] }
 0x825   :  { %2812 = vmatpush1.msra.mxu0 %v5639_v31  ;;  %2883 = vmatpush1.msra.mxu1 %v5642_v32 }
 0x826   :  { %2813 = vmatprep.subr.mxu0 %v5645_v30  ;;  %2884 = vmatprep.subr.mxu1 %v5648_v35 }
 0x827   :  { %2814 = vmatpush1.msra.mxu0 %v5651_v44  ;;  %2885 = vmatpush1.msra.mxu1 %v5654_v28  ;;  %v2405_v44 = vld [vmem:[#allocation3 + $0x150] sm:$0xff]  ;;  %v2406_v28 = vld [vmem:[#allocation3 + $0x158] sm:$0xff] }
 0x828   :  { %2815 = vmatprep.subr.mxu0 %v5657_v27  ;;  %2886 = vmatprep.subr.mxu1 %v5660_v53 }
 0x829   :  { %2816 = vmatpush1.msra.mxu0 %v5663_v38  ;;  %2887 = vmatpush1.msra.mxu1 %v5666_v16 }
 0x82a   :  { %2817 = vmatprep.subr.mxu0 %v5669_v0  ;;  %2888 = vmatprep.subr.mxu1 %v5672_v54 }
 0x82b   :  { %2818 = vmatpush1.msra.mxu0 %v5675_v59  ;;  %2889 = vmatpush1.msra.mxu1 %v5678_v24  ;;  %v2408_v24 = vld [vmem:[#allocation3 + $0x168] sm:$0xff] }
 0x82c   :  { %2819 = vmatprep.subr.mxu0 %v6796_v42  ;;  %2890 = vmatprep.subr.mxu1 %v6797_v40 }
 0x82d   :  { %2820 = vmatpush1.msra.mxu0 %v6798_v56  ;;  %2891 = vmatpush1.msra.mxu1 %v6799_v10 }
 0x82e   :  { %2821 = vmatprep.subr.mxu0 %v6800_v46  ;;  %2892 = vmatprep.subr.mxu1 %v6801_v33  ;;  %v2409_v46 = vld [vmem:[#allocation3 + $0x170] sm:$0xff]  ;;  %v2411_v33 = vld [vmem:[#allocation3 + $0x180] sm:$0xff] }
 0x82f   :  { %2822 = vmatpush1.msra.mxu0 %v6802_v6  ;;  %2893 = vmatpush1.msra.mxu1 %v6803_v11 }
 0x830   :  { %2823 = vmatprep.subr.mxu0 %v6804_v9  ;;  %2894 = vmatprep.subr.mxu1 %v6805_v5 }
 0x831   :  { %2824 = vmatpush1.msra.mxu0 %v6806_v4  ;;  %2895 = vmatpush1.msra.mxu1 %v6807_v45  ;;  %v2410_v4 = vld [vmem:[#allocation3 + $0x178] sm:$0xff] }
 0x832   :  { %2825 = vmatprep.subr.mxu0 %v6808_v51  ;;  %2896 = vmatprep.subr.mxu1 %v6809_v23 }
 0x833   :  { %2826 = vmatpush1.msra.mxu0 %v6810_v26  ;;  %2897 = vmatpush1.msra.mxu1 %v6811_v36 }
 0x834   :  { %2827 = vmatprep.subr.mxu0 %v6812_v15  ;;  %2898 = vmatprep.subr.mxu1 %v6813_v52 }
 0x835   :  { %2828 = vmatpush1.msra.mxu0 %v6814_v22  ;;  %2899 = vmatpush1.msra.mxu1 %v6815_v21 }
 0x836   :  { %2829 = vmatprep.subr.mxu0 %v6816_v20  ;;  %2900 = vmatprep.subr.mxu1 %v6817_v19 }
 0x837   :  { %2830 = vmatpush1.msra.mxu0 %v6818_v18  ;;  %2901 = vmatpush1.msra.mxu1 %v6819_v37 }
 0x838   :  { %2863 = vmatprep.mubr.f32.mxu0 %v6476_v61  ;;  %2934 = vmatprep.mubr.f32.mxu1 %v6476_v61 }
 0x839   :  { %2941 = vmatprep.subr.mxu0 %v6820_v14  ;;  %3590 = vmatprep.subr.mxu1 %v6476_v61 }
 0x8b6   :  { %v2563_v31 = vpop.f32.mrf.mxu1  ;;  %v2492_v30 = vpop.f32.mrf.mxu0 }
 0x8b7   :  { %v2711_v32 = vadd.f32 %v2563_v31, %v2407_v25  ;;  %v2709_v53 = vadd.f32 %v2492_v30, %v2405_v44 }
 0x8b8   :  { %v2494_v27 = vpop.f32.mrf.mxu0  ;;  %v2565_v12 = vpop.f32.mrf.mxu1 }
 0x8b9   :  { %v3200_v35 = vmul.f32 -1.442695, %v2711_v32  ;;  %v2710_v38 = vadd.f32 %v2494_v27, %v2406_v28  ;;  %v3198_v16 = vmul.f32 -1.442695, %v2709_v53  ;;  %v2712_v42 = vadd.f32 %v2565_v12, %v2408_v24 }
 0x8bb   :  { %3821 = vpow2.f32 %v3200_v35  ;;  %v3199_v0 = vmul.f32 -1.442695, %v2710_v38  ;;  %v3201_v56 = vmul.f32 -1.442695, %v2712_v42 }
 0x8bc   :  { %3823 = vpow2.f32 %v3198_v16 }
 0x8bd   :  { %3825 = vpow2.f32 %v3199_v0 }
 0x8c8   :  { %v3822_v54 = vpop.eup %3821 }
 0x8c9   :  { %v2733_v59 = vadd.f32 1.0, %v3822_v54  ;;  %v3824_v40 = vpop.eup %3823 }
 0x8ca   :  { %v3826_v10 = vpop.eup %3825  ;;  %v2731_v6 = vadd.f32 1.0, %v3824_v40  ;;  %v2790_v40 = vpop.permute.xlu1 %2789 }
 0x8cb   :  { %3827 = vrcp.f32 %v2733_v59  ;;  %v2732_v11 = vadd.f32 1.0, %v3826_v10 }
 0x8cc   :  { %3829 = vpow2.f32 %v3201_v56 }
 0x8cd   :  { %3831 = vrcp.f32 %v2731_v6 }
 0x8ce   :  { %3833 = vrcp.f32 %v2732_v11 }
 0x8d7   :  { %v2634_v9 = vpop.f32.mrf.mxu0  ;;  %v2705_v5 = vpop.f32.mrf.mxu1 }
 0x8d8   :  { %v2713_v45 = vadd.f32 %v2634_v9, %v2409_v46  ;;  %v2715_v51 = vadd.f32 %v2705_v5, %v2411_v33  ;;  %v3828_v23 = vpop.eup %3827  ;;  %v6835_v5 = vld [vmem:[#allocation83_spill] sm:$0xff] }
 0x8d9   :  { %v2636_v26 = vpop.f32.mrf.mxu0  ;;  %v3589_v36 = vpop.f32.mrf.mxu1  ;;  %2770 = vst [vmem:[#allocation8 + $0xd8] sm:$0xff] %v3828_v23 }
 0x8da   :  { %v3202_v15 = vmul.f32 -1.442695, %v2713_v45  ;;  %v2748_v52 = vand.u32 2147483647, %v2715_v51  ;;  %v2714_v22 = vadd.f32 %v2636_v26, %v2410_v4  ;;  %v3830_v19 = vpop.eup %3829  ;;  %v2747_v24 = vmax.f32 %v2715_v51, 0.0  ;;  %v6836_v4 = vld [vmem:[#allocation12_spill] sm:$0xff] }
 0x8db   :  { %v3832_v18 = vpop.eup %3831  ;;  %v2734_v37 = vadd.f32 1.0, %v3830_v19  ;;  %v6837_v45 = vld [vmem:[#allocation13_spill] sm:$0xff]  ;;  %v6838_v51 = vld [vmem:[#allocation14_spill] sm:$0xff]  ;;  %v6840_v26 = vld [vmem:[#allocation16_spill] sm:$0xff] }
 0x8dc   :  { %3835 = vpow2.f32 %v3202_v15  ;;  %v2749_v21 = vsub.f32 0.0, %v2748_v52  ;;  %v3834_v14 = vpop.eup %3833  ;;  %v6841_v36 = vld [vmem:[#allocation17_spill] sm:$0xff]  ;;  %v6842_v15 = vld [vmem:[#allocation18_spill] sm:$0xff]  ;;  %v6843_v52 = vld [vmem:[#allocation19_spill] sm:$0xff] }
 0x8dd   :  { %3837 = vtanh.f32 %v2714_v22  ;;  %v2756_v30 = vmul.f32 %v3834_v14, %v5766_v50  ;;  %v6844_v22 = vld [vmem:[#allocation20_spill] sm:$0xff]  ;;  %v6847_v19 = vld [vmem:[#allocation23_spill] sm:$0xff]  ;;  %v2779_v14 = vld [vmem:[#allocation3 + $0x190] sm:$0xff] }
 0x8de   :  { %v2750_v20 = vmul.f32 1.442695, %v2749_v21  ;;  %v6845_v21 = vld [vmem:[#allocation21_spill] sm:$0xff] }
 0x8e0   :  { %3839 = vpow2.f32 %v2750_v20  ;;  %v6846_v20 = vld [vmem:[#allocation22_spill] sm:$0xff] }
 0x8e1   :  { %3841 = vrcp.f32 %v2734_v37  ;;  %v2778_v37 = vld [vmem:[#allocation3 + $0x188] sm:$0xff] }
 0x8e9   :  { %v3836_v25 = vpop.eup %3835 }
 0x8ea   :  { %v3838_v31 = vpop.eup %3837  ;;  %v2735_v32 = vadd.f32 1.0, %v3836_v25 }
 0x8eb   :  { %v2757_v35 = vmul.f32 %v3838_v31, %v3832_v18 }
 0x8ec   :  { %3843 = vrcp.f32 %v2735_v32 }
 0x8ed   :  { %v3840_v44 = vpop.eup %3839  ;;  %v2758_v28 = vadd.f32 %v2757_v35, %v2756_v30  ;;  %v2781_v35 = vld [vmem:[#allocation3 + $0x1a0] sm:$0xff] }
 0x8ee   :  { %v2752_v27 = vadd.f32 1.0, %v3840_v44  ;;  %v3842_v53 = vpop.eup %3841 }
 0x8ef   :  { %2767 = vst [vmem:[#allocation8 + $0xc0] sm:$0xff] %v2758_v28  ;;  %v2760_v0 = vmul.f32 %v3842_v53, %v3838_v31 }
 0x8f0   :  { %3845 = vlog2.f32 %v2752_v27 }
 0x8f9   :  { %v3844_v38 = vpop.eup %3843 }
 0x8fa   :  { %v2759_v16 = vmul.f32 %v3844_v38, %v5761_v43 }
 0x8fc   :  { %v6004_v54 = vadd.f32 %v2760_v0, %v2759_v16  ;;  %v2782_v16 = vld [vmem:[#allocation3 + $0x1a8] sm:$0xff]  ;;  %v2784_v0 = vld [vmem:[#allocation3 + $0x1b8] sm:$0xff] }
 0x8fd   :  { %v3846_v59 = vpop.eup %3845 }
 0x8fe   :  { %v2754_v12 = vmul.f32 0.6931472, %v3846_v59  ;;  %2768 = vst [vmem:[#allocation8 + $0xc8] sm:$0xff] %v6004_v54  ;;  %v2785_v46 = vsub.f32 %v2758_v28, %v6004_v54 }
 0x900   :  { %v2755_v50 = vadd.f32 %v2754_v12, %v2747_v24 }
 0x902   :  { %2769 = vst [vmem:[#allocation8 + $0xd0] sm:$0xff] %v2755_v50  ;;  %v2786_v42 = vsub.f32 0.0, %v2755_v50 }
 0x904   :  { %v2792_v56 = vmul.f32 %v2790_v40, %v2786_v42  ;;  %v2783_v42 = vld [vmem:[#allocation3 + $0x1b0] sm:$0xff] }
 0x906   :  { %v2793_v10 = vmul.f32 1.442695, %v2792_v56 }
 0x908   :  { %3847 = vpow2.f32 %v2793_v10 }
 0x915   :  { %v3848_v33 = vpop.eup %3847 }
 0x916   :  { %v2795_v6 = vmul.f32 %v3848_v33, %v2785_v46 }
 0x918   :  { %v6009_v43 = vadd.f32 %v2795_v6, %v6004_v54 }
 0x91a   :  { %3849 = vtanh.f32 %v6009_v43 }
 0x927   :  { %v3850_v11 = vpop.eup %3849 }
 0x928   :  { %v6012_v9 = vmul.f32 %v3850_v11, %v3828_v23  ;;  %v6839_v23 = vld [vmem:[#allocation15_spill] sm:$0xff] }
 0x92a   :  { %2864 = vmatmul.mubr.f32.vlgmr.msra.gmra.mxu0 %v6012_v9  ;;  %2935 = vmatmul.mubr.f32.vlgmr.msra.gmra.mxu1 %v6012_v9 }
 0x92b   :  { %2942 = vmatpush1.msra.mxu0 %v5773_v63  ;;  %3591 = vmatpush3.msra.mxu1 %v5776_v49  ;;  %v6821_v63 = vld [vmem:[#allocation50_spill] sm:$0xff]  ;;  %v6822_v49 = vld [vmem:[#allocation51_spill] sm:$0xff] }
 0x92c   :  { %2943 = vmatprep.subr.mxu0 %v5779_v48  ;;  %3592 = vmatprep.subr.mxu1 %v6476_v61  ;;  %v6823_v48 = vld [vmem:[#allocation52_spill] sm:$0xff] }
 0x92d   :  { %2944 = vmatpush1.msra.mxu0 %v5783_v58  ;;  %3593 = vmatpush3.msra.mxu1 %v5786_v34  ;;  %v6824_v58 = vld [vmem:[#allocation53_spill] sm:$0xff]  ;;  %v6825_v34 = vld [vmem:[#allocation54_spill] sm:$0xff] }
 0x92e   :  { %2945 = vmatprep.subr.mxu0 %v5789_v60  ;;  %3594 = vmatprep.subr.mxu1 %v6476_v61  ;;  %v6826_v60 = vld [vmem:[#allocation55_spill] sm:$0xff] }
 0x92f   :  { %2946 = vmatpush1.msra.mxu0 %v5793_v2  ;;  %3595 = vmatpush3.msra.mxu1 %v5796_v17  ;;  %v6827_v2 = vld [vmem:[#allocation73_spill] sm:$0xff]  ;;  %v6828_v17 = vld [vmem:[#allocation76_spill] sm:$0xff] }
 0x930   :  { %2947 = vmatprep.subr.mxu0 %v5799_v8  ;;  %3596 = vmatprep.subr.mxu1 %v6476_v61  ;;  %v6829_v8 = vld [vmem:[#allocation77_spill] sm:$0xff] }
 0x931   :  { %2948 = vmatpush1.msra.mxu0 %v5803_v13  ;;  %3597 = vmatpush3.msra.mxu1 %v5806_v41  ;;  %v6830_v13 = vld [vmem:[#allocation78_spill] sm:$0xff]  ;;  %v6831_v41 = vld [vmem:[#allocation79_spill] sm:$0xff] }
 0x932   :  { %2949 = vmatprep.subr.mxu0 %v5809_v29  ;;  %3598 = vmatprep.subr.mxu1 %v6476_v61  ;;  %v6832_v29 = vld [vmem:[#allocation80_spill] sm:$0xff] }
 0x933   :  { %2950 = vmatpush1.msra.mxu0 %v5813_v55  ;;  %3599 = vmatpush3.msra.mxu1 %v5816_v3  ;;  %v6833_v55 = vld [vmem:[#allocation81_spill] sm:$0xff]  ;;  %v6834_v3 = vld [vmem:[#allocation82_spill] sm:$0xff] }
 0x934   :  { %2951 = vmatprep.subr.mxu0 %v6821_v63  ;;  %3600 = vmatprep.subr.mxu1 %v6476_v61 }
 0x935   :  { %2952 = vmatpush1.msra.mxu0 %v6822_v49  ;;  %3601 = vmatpush3.msra.mxu1 %v6823_v48 }
 0x936   :  { %2953 = vmatprep.subr.mxu0 %v6824_v58  ;;  %3602 = vmatprep.subr.mxu1 %v6476_v61 }
 0x937   :  { %2954 = vmatpush1.msra.mxu0 %v6825_v34  ;;  %3603 = vmatpush3.msra.mxu1 %v6826_v60 }
 0x938   :  { %2955 = vmatprep.subr.mxu0 %v6827_v2  ;;  %3604 = vmatprep.subr.mxu1 %v6476_v61 }
 0x939   :  { %2956 = vmatpush1.msra.mxu0 %v6828_v17  ;;  %3605 = vmatpush3.msra.mxu1 %v6829_v8 }
 0x93a   :  { %2957 = vmatprep.subr.mxu0 %v6830_v13  ;;  %3606 = vmatprep.subr.mxu1 %v6476_v61 }
 0x93b   :  { %2958 = vmatpush1.msra.mxu0 %v6831_v41  ;;  %3607 = vmatpush3.msra.mxu1 %v6832_v29 }
 0x93c   :  { %2959 = vmatprep.subr.mxu0 %v6833_v55  ;;  %3608 = vmatprep.subr.mxu1 %v6476_v61 }
 0x93d   :  { %2960 = vmatpush1.msra.mxu0 %v6834_v3  ;;  %3609 = vmatpush3.msra.mxu1 %v6835_v5 }
 0x93e   :  { %2961 = vmatprep.subr.mxu0 %v6836_v4  ;;  %3610 = vmatprep.subr.mxu1 %v6476_v61 }
 0x93f   :  { %2962 = vmatpush1.msra.mxu0 %v6837_v45  ;;  %3611 = vmatpush3.msra.mxu1 %v6838_v51 }
 0x940   :  { %2963 = vmatprep.subr.mxu0 %v6839_v23  ;;  %3612 = vmatprep.subr.mxu1 %v6476_v61 }
 0x941   :  { %2964 = vmatpush1.msra.mxu0 %v6840_v26  ;;  %3613 = vmatpush3.msra.mxu1 %v6841_v36 }
 0x942   :  { %2965 = vmatprep.subr.mxu0 %v6842_v15  ;;  %3614 = vmatprep.subr.mxu1 %v6476_v61 }
 0x943   :  { %2966 = vmatpush1.msra.mxu0 %v6843_v52  ;;  %3615 = vmatpush3.msra.mxu1 %v6844_v22 }
 0x944   :  { %2967 = vmatprep.subr.mxu0 %v6845_v21  ;;  %3616 = vmatprep.subr.mxu1 %v6476_v61 }
 0x945   :  { %2968 = vmatpush1.msra.mxu0 %v5903_v47  ;;  %3617 = vmatpush3.msra.mxu1 %v6846_v20  ;;  %v2780_v47 = vld [vmem:[#allocation3 + $0x198] sm:$0xff] }
 0x946   :  { %2969 = vmatprep.subr.mxu0 %v6847_v19  ;;  %3618 = vmatprep.subr.mxu1 %v6476_v61 }
 0x947   :  { %2970 = vmatpush1.msra.mxu0 %v5913_v62  ;;  %3619 = vmatpush3.msra.mxu1 %v5916_v39 }
 0x948   :  { %2971 = vmatprep.subr.mxu0 %v5919_v1  ;;  %3620 = vmatprep.subr.mxu1 %v6476_v61 }
 0x949   :  { %2972 = vmatpush1.msra.mxu0 %v5923_v57  ;;  %3005 = vmatprep.mubr.f32.mxu0 %v6476_v61 }
 0x94a   :  { %3621 = vmatpush3.msra.mxu1 %v5927_v7  ;;  %3622 = vmatprep.mubr.msk.f32.mxu1 %vm4173_vm0, %v6476_v61 }
 0x94b   :  { %3006 = vmatmul.mubr.f32.vlgmr.msra.gmra.mxu0 %v6012_v9  ;;  %3623 = vmatmul.mubr.f32.vlgmr.msra.gmra.mxu1 %v6012_v9 }
 0x9ea   :  { %v2936_v62 = vpop.f32.mrf.mxu1  ;;  %v2865_v18 = vpop.f32.mrf.mxu0 }
 0x9eb   :  { %v3084_v39 = vadd.f32 %v2936_v62, %v2780_v47  ;;  %v3082_v25 = vadd.f32 %v2865_v18, %v2778_v37 }
 0x9ec   :  { %v2867_v57 = vpop.f32.mrf.mxu0  ;;  %v2938_v44 = vpop.f32.mrf.mxu1 }
 0x9ed   :  { %v3206_v1 = vmul.f32 -1.442695, %v3084_v39  ;;  %v3083_v31 = vadd.f32 %v2867_v57, %v2779_v14  ;;  %v3204_v32 = vmul.f32 -1.442695, %v3082_v25  ;;  %v3085_v28 = vadd.f32 %v2938_v44, %v2781_v35 }
 0x9ef   :  { %3851 = vpow2.f32 %v3206_v1  ;;  %v3205_v7 = vmul.f32 -1.442695, %v3083_v31  ;;  %v3207_v53 = vmul.f32 -1.442695, %v3085_v28 }
 0x9f0   :  { %3853 = vpow2.f32 %v3204_v32 }
 0x9f1   :  { %3855 = vpow2.f32 %v3205_v7 }
 0x9fc   :  { %v3852_v61 = vpop.eup %3851 }
 0x9fd   :  { %v3106_v30 = vadd.f32 1.0, %v3852_v61  ;;  %v3854_v27 = vpop.eup %3853 }
 0x9fe   :  { %v3856_v38 = vpop.eup %3855  ;;  %v3104_v59 = vadd.f32 1.0, %v3854_v27 }
 0x9ff   :  { %3857 = vrcp.f32 %v3106_v30  ;;  %v3105_v24 = vadd.f32 1.0, %v3856_v38 }
 0xa00   :  { %3859 = vpow2.f32 %v3207_v53 }
 0xa01   :  { %3861 = vrcp.f32 %v3104_v59 }
 0xa02   :  { %3863 = vrcp.f32 %v3105_v24 }
 0xa0b   :  { %v3007_v12 = vpop.f32.mrf.mxu0  ;;  %v3078_v50 = vpop.f32.mrf.mxu1 }
 0xa0c   :  { %v3086_v40 = vadd.f32 %v3007_v12, %v2782_v16  ;;  %v3088_v56 = vadd.f32 %v3078_v50, %v2784_v0  ;;  %v3858_v10 = vpop.eup %3857 }
 0xa0d   :  { %v3009_v46 = vpop.f32.mrf.mxu0  ;;  %v3624_v33 = vpop.f32.mrf.mxu1  ;;  %3143 = vst [vmem:[#allocation8 + $0xf8] sm:$0xff] %v3858_v10 }
 0xa0e   :  { %v3208_v6 = vmul.f32 -1.442695, %v3086_v40  ;;  %v3121_v11 = vand.u32 2147483647, %v3088_v56  ;;  %v3087_v9 = vadd.f32 %v3009_v46, %v2783_v42  ;;  %v3860_v48 = vpop.eup %3859  ;;  %v3120_v36 = vmax.f32 %v3088_v56, 0.0 }
 0xa0f   :  { %v3862_v58 = vpop.eup %3861  ;;  %v3107_v34 = vadd.f32 1.0, %v3860_v48 }
 0xa10   :  { %3865 = vpow2.f32 %v3208_v6  ;;  %v3122_v63 = vsub.f32 0.0, %v3121_v11  ;;  %v3864_v60 = vpop.eup %3863 }
 0xa11   :  { %3867 = vtanh.f32 %v3087_v9  ;;  %v3129_v13 = vmul.f32 %v3864_v60, %v6009_v43 }
 0xa12   :  { %v3123_v49 = vmul.f32 1.442695, %v3122_v63 }
 0xa14   :  { %3869 = vpow2.f32 %v3123_v49 }
 0xa15   :  { %3871 = vrcp.f32 %v3107_v34 }
 0xa1d   :  { %v3866_v2 = vpop.eup %3865 }
 0xa1e   :  { %v3868_v17 = vpop.eup %3867  ;;  %v3108_v8 = vadd.f32 1.0, %v3866_v2 }
 0xa1f   :  { %v3130_v41 = vmul.f32 %v3868_v17, %v3862_v58 }
 0xa20   :  { %3873 = vrcp.f32 %v3108_v8 }
 0xa21   :  { %v3870_v29 = vpop.eup %3869  ;;  %v3131_v55 = vadd.f32 %v3130_v41, %v3129_v13 }
 0xa22   :  { %v3125_v3 = vadd.f32 1.0, %v3870_v29  ;;  %v3872_v5 = vpop.eup %3871 }
 0xa23   :  { %3140 = vst [vmem:[#allocation8 + $0xe0] sm:$0xff] %v3131_v55  ;;  %v3133_v51 = vmul.f32 %v3872_v5, %v3868_v17 }
 0xa24   :  { %3875 = vlog2.f32 %v3125_v3 }
 0xa2d   :  { %v3874_v4 = vpop.eup %3873 }
 0xa2e   :  { %v3132_v45 = vmul.f32 %v3874_v4, %v6004_v54 }
 0xa30   :  { %v3134_v23 = vadd.f32 %v3133_v51, %v3132_v45 }
 0xa31   :  { %v3876_v26 = vpop.eup %3875 }
 0xa32   :  { %v3127_v15 = vmul.f32 0.6931472, %v3876_v26  ;;  %3141 = vst [vmem:[#allocation8 + $0xe8] sm:$0xff] %v3134_v23 }
 0xa34   :  { %v3128_v43 = vadd.f32 %v3127_v15, %v3120_v36 }
 0xa36   :  { %3142 = vst [vmem:[#allocation8 + $0xf0] sm:$0xff] %v3128_v43 }
 0xa37   :  { %4152 = shalt.err (!%p4149_p0)
}
 0xa38   :  { %s4175_s13 = smov 512   ;;  %s4176_s14 = smov 32  }
 0xa39   :  { %3155 = dma.vmem_to_hbm [thread:$0]  %s3150_s11, 4096, %s6091_s3, [#allocation5], %s4175_s13, %s4175_s13, %s4176_s14  }
 0xa3a   :  { %4165 = dma.done.wait [#allocation5], 4096  }
 0xa3b   :  { %4166 = vsyncadd [#allocation5], 4294963200 }
 0xa3c   :  { %3159 = vsyncpa [#allocation4], 1 }
 0xa3d   :  { %3160 = vsyncpa [#allocation7], 1 }
 0xa3e   :  { %3161 = vsyncpa [#allocation5], 1 }

</bundles_post_ra>
